<compile_context>
chip_gen: v5e
topology: v5e:2x2
jax: 0.10.0
libtpu: 0.0.40
codegen_flags: <defaults>
</compile_context>

<pallas_src>
from math import sqrt

import jax
import jax.numpy as jnp
from jax import lax
from jax.experimental import pallas as pl
from jax.experimental.pallas import tpu as pltpu


def _swish(x):
    return x * jax.nn.sigmoid(x)


# ---------------------------------------------------------------------------
# Kernel
# ---------------------------------------------------------------------------
def make_update_v_kernel(cfg):
    H, NF, C2, OE, OC = cfg["H"], cfg["NF"], cfg["C2"], cfg["OE"], cfg["OC"]
    FIN, LM1 = cfg["FIN"], cfg["LM1"]
    E_blk, EH_blk, N_blk = cfg["E_blk"], cfg["EH_blk"], cfg["N_blk"]

    # static row offsets inside the packed weight buffers
    rb_linhull, rb_mlp0, rb_mlp1 = 0, H, H + FIN        # wbig   [H+FIN+NF, NF]
    rs_lin2h = 0                                        # wsmall [3H+C2+(LM1+1)*OE, SW]
    rs_cat = rs_lin2h + H
    rs_up = rs_cat + (H + C2)
    rs_lins = rs_up + H
    rs_out = rs_lins + LM1 * OE

    def kernel(idx_ref, j_ref, e2_ref, fea_ref,
               wbig_ref, wlin1h_ref, wsmall_ref, bias_ref, out_ref):
        f32, bf16 = jnp.float32, jnp.bfloat16

        i_row = idx_ref[0:1, 0:E_blk]      # (1, E_blk)   scatter target of e2
        i2_row = idx_ref[1:2, 0:EH_blk]    # (1, EH_blk)  scatter target of e_hull
        j_col = j_ref[...]                 # (EH_blk, 1)  gather source of v_hull

        # v = scatter_sum(e2, i): exact 0/1 one-hot (bf16) matmul on the MXU.
        oh_i = (lax.broadcasted_iota(jnp.int32, (N_blk, E_blk), 0) == i_row).astype(bf16)
        v = jnp.dot(oh_i, e2_ref[...].astype(bf16), preferred_element_type=f32)  # (N, H)

        # v_hull = lin_hull(v)                               (no bias)
        v_hull = jnp.dot(v.astype(bf16), wbig_ref[rb_linhull:rb_linhull + H, :],
                         preferred_element_type=f32)                             # (N, NF)

        # W_hull = mlp_hull[1](act(mlp_hull[0](fea_hull)))
        wh = _swish(jnp.dot(fea_ref[...].astype(bf16), wbig_ref[rb_mlp0:rb_mlp0 + FIN, :],
                            preferred_element_type=f32) + bias_ref[0:1, 0:NF])
        wh = jnp.dot(wh.astype(bf16), wbig_ref[rb_mlp1:rb_mlp1 + NF, :],
                     preferred_element_type=f32) + bias_ref[1:2, 0:NF]            # (EH, NF)

        # e_hull = v_hull[j_] * W_hull        (gather via one-hot matmul)
        gmat = (lax.broadcasted_iota(jnp.int32, (EH_blk, N_blk), 1) == j_col).astype(bf16)
        e_hull = jnp.dot(gmat, v_hull.astype(bf16), preferred_element_type=f32) * wh

        # out_hull = scatter_sum(e_hull, i_)
        oh_i2 = (lax.broadcasted_iota(jnp.int32, (N_blk, EH_blk), 0) == i2_row).astype(bf16)
        out_hull = jnp.dot(oh_i2, e_hull.astype(bf16), preferred_element_type=f32)  # (N, NF)

        # out_hull = lin2_hull(act(lin1_hull(out_hull)))
        out_hull = _swish(jnp.dot(out_hull.astype(bf16), wlin1h_ref[...],
                                  preferred_element_type=f32) + bias_ref[2:3, 0:H])
        out_hull = jnp.dot(out_hull.astype(bf16), wsmall_ref[rs_lin2h:rs_lin2h + H, 0:C2],
                           preferred_element_type=f32) + bias_ref[3:4, 0:C2]         # (N, C2)

        # v = act(lin_cat(cat([v, out_hull], 1)))  -- single K=(H+C2) matmul
        cat = jnp.concatenate([v, out_hull], axis=1).astype(bf16)                    # (N, H+C2)
        vc = _swish(jnp.dot(cat, wsmall_ref[rs_cat:rs_cat + H + C2, 0:H],
                            preferred_element_type=f32) + bias_ref[4:5, 0:H])

        # v = lin_up(v)
        vc = jnp.dot(vc.astype(bf16), wsmall_ref[rs_up:rs_up + H, 0:OE],
                     preferred_element_type=f32) + bias_ref[5:6, 0:OE]

        # v = act(lin(v)) for the (num_output_layers - 1) hidden output layers
        for l in range(LM1):
            r = rs_lins + l * OE
            vc = _swish(jnp.dot(vc.astype(bf16), wsmall_ref[r:r + OE, 0:OE],
                                preferred_element_type=f32)
                        + bias_ref[6 + l:7 + l, 0:OE])

        # v = lin(v)                                          (no bias)
        out_ref[...] = jnp.dot(vc.astype(bf16), wsmall_ref[rs_out:rs_out + OE, 0:OC],
                               preferred_element_type=f32)

        # TODO(synk): for production-size graphs (v7x, 64 MiB VMEM) replace the
        # O(N_blk*E_blk) one-hot scatter/gather with a grid over edge chunks +
        # a VMEM accumulator (pl.when init/finalize) or a sorted-segment
        # scalar-prefetch scheme.

    return kernel


# ---------------------------------------------------------------------------
# Host-side packing + pallas_call wrapper
# ---------------------------------------------------------------------------
def pack_params(params, cfg):
    H, NF, C2, OE, OC, FIN, LM1 = (cfg["H"], cfg["NF"], cfg["C2"], cfg["OE"],
                                   cfg["OC"], cfg["FIN"], cfg["LM1"])
    SW = max(H, C2, OE, OC)

    wbig = jnp.concatenate(
        [params["w_lin_hull"], params["w_mlp0"], params["w_mlp1"]], axis=0
    ).astype(jnp.bfloat16)                                   # (H+FIN+NF, NF)

    def padw(w):
        return jnp.pad(w, ((0, 0), (0, SW - w.shape[1])))

    small = [padw(params["w_lin2h"]), padw(params["w_cat"]), padw(params["w_up"])]
    small += [padw(params["w_lins"][l]) for l in range(LM1)]
    small += [padw(params["w_out"])]
    wsmall = jnp.concatenate(small, axis=0).astype(jnp.bfloat16)   # (3H+C2+(LM1+1)OE, SW)

    wlin1h = params["w_lin1h"].astype(jnp.bfloat16)                # (NF, H)

    def padb(b):
        return jnp.pad(b, ((0, 0), (0, NF - b.shape[1])))

    brows = [padb(params["b_mlp0"]), padb(params["b_mlp1"]), padb(params["b_lin1h"]),
             padb(params["b_lin2h"]), padb(params["b_cat"]), padb(params["b_up"])]
    brows += [padb(params["b_lins"][l]) for l in range(LM1)]
    pad_rows = (-len(brows)) % 8
    if pad_rows:
        brows.append(jnp.zeros((pad_rows, NF), jnp.float32))
    bias = jnp.concatenate(brows, axis=0).astype(jnp.float32)      # (>=8 rows, NF) f32

    return wbig, wlin1h, wsmall, bias


def _cost_estimate(cfg, num_blocks, arrays):
    H, NF, C2, OE, OC, FIN, LM1 = (cfg["H"], cfg["NF"], cfg["C2"], cfg["OE"],
                                   cfg["OC"], cfg["FIN"], cfg["LM1"])
    E_blk, EH_blk, N_blk = cfg["E_blk"], cfg["EH_blk"], cfg["N_blk"]
    mm = (N_blk * E_blk * H            # scatter e2
          + N_blk * H * NF             # lin_hull
          + EH_blk * FIN * NF          # mlp_hull[0]
          + EH_blk * NF * NF           # mlp_hull[1]
          + EH_blk * N_blk * NF        # gather v_hull
          + N_blk * EH_blk * NF        # scatter e_hull
          + N_blk * NF * H             # lin1_hull
          + N_blk * H * C2             # lin2_hull
          + N_blk * (H + C2) * H       # lin_cat
          + N_blk * H * OE             # lin_up
          + LM1 * N_blk * OE * OE      # lins
          + N_blk * OE * OC)           # lin
    flops = 2 * mm * num_blocks
    trans = num_blocks * (EH_blk * NF + 2 * N_blk * H + LM1 * N_blk * OE)  # sigmoids
    nbytes = sum(int(a.size) * a.dtype.itemsize for a in arrays)
    nbytes += num_blocks * N_blk * OC * 4
    return pl.CostEstimate(flops=flops, transcendentals=trans, bytes_accessed=nbytes)


def update_v_pallas(e2, i_idx, fea_hull, j_idx, i2_idx, params, cfg):
    H, FIN, OC = cfg["H"], cfg["FIN"], cfg["OC"]
    E_blk, EH_blk, N_blk = cfg["E_blk"], cfg["EH_blk"], cfg["N_blk"]
    total_E, total_EH = e2.shape[0], fea_hull.shape[0]
    if total_E % E_blk or total_EH % EH_blk:
        raise ValueError("rows must be divisible by the block sizes")
    num_blocks = total_E // E_blk

    # Global -> block-local node indices (graphs are stacked contiguously, so
    # block b owns node rows [b*N_blk, (b+1)*N_blk)).
    i_loc = i_idx.astype(jnp.int32) - (jnp.arange(total_E, dtype=jnp.int32) // E_blk) * N_blk
    i2_loc = i2_idx.astype(jnp.int32) - (jnp.arange(total_EH, dtype=jnp.int32) // EH_blk) * N_blk
    j_loc = j_idx.astype(jnp.int32) - (jnp.arange(total_EH, dtype=jnp.int32) // EH_blk) * N_blk

    # Pack i / i2 into one (num_blocks, 8, IDXW) int32 tile (rows 0 and 1);
    # j stays a (rows, 1) column so the gather one-hot needs no in-kernel reshape.
    IDXW = max(E_blk, EH_blk)
    idx_pack = jnp.zeros((num_blocks, 8, IDXW), jnp.int32)
    idx_pack = idx_pack.at[:, 0, :E_blk].set(i_loc.reshape(num_blocks, E_blk))
    idx_pack = idx_pack.at[:, 1, :EH_blk].set(i2_loc.reshape(num_blocks, EH_blk))
    j_col = j_loc.reshape(num_blocks * EH_blk, 1)

    wbig, wlin1h, wsmall, bias = pack_params(params, cfg)
    kernel = make_update_v_kernel(cfg)

    def whole(arr):  # weight/bias buffers: one resident VMEM copy, constant index map
        return pl.BlockSpec(arr.shape, lambda b: (0,) * arr.ndim)

    in_specs = [
        pl.BlockSpec((None, 8, IDXW), lambda b: (b, 0, 0)),   # packed i / i2
        pl.BlockSpec((EH_blk, 1), lambda b: (b, 0)),          # j column
        pl.BlockSpec((E_blk, H), lambda b: (b, 0)),           # e2 block
        pl.BlockSpec((EH_blk, FIN), lambda b: (b, 0)),        # fea_hull block
        whole(wbig), whole(wlin1h), whole(wsmall), whole(bias),
    ]
    out_spec = pl.BlockSpec((N_blk, OC), lambda b: (b, 0))

    inputs = (idx_pack, j_col, e2.astype(jnp.float32), fea_hull.astype(jnp.float32),
              wbig, wlin1h, wsmall, bias)
    cost = _cost_estimate(cfg, num_blocks, inputs)

    return pl.pallas_call(
        kernel,
        out_shape=jax.ShapeDtypeStruct((num_blocks * N_blk, OC), jnp.float32),
        grid=(num_blocks,),
        in_specs=in_specs,
        out_specs=out_spec,
        compiler_params=pltpu.CompilerParams(
            dimension_semantics=("parallel",),      # v7x: 2 TCs split the graph blocks
            vmem_limit_bytes=32 * 1024 * 1024,
        ),
        cost_estimate=cost,
    )(*inputs)


# ---------------------------------------------------------------------------
# Pure-JAX reference (PyTorch semantics); mxu_dtype=bfloat16 mirrors the
# kernel's MXU-operand rounding so the kernel can be checked tightly.
# ---------------------------------------------------------------------------
def update_v_reference(e2, i_idx, fea_hull, j_idx, i2_idx, params, num_nodes,
                       mxu_dtype=jnp.float32):
    r = lambda x: x.astype(mxu_dtype).astype(jnp.float32)

    def dot(a, b):
        return jnp.dot(a.astype(mxu_dtype), b.astype(mxu_dtype),
                       preferred_element_type=jnp.float32)

    v = jax.ops.segment_sum(r(e2), i_idx, num_segments=num_nodes)
    v_hull = dot(v, params["w_lin_hull"])
    W = _swish(dot(fea_hull, params["w_mlp0"]) + params["b_mlp0"])
    W = dot(W, params["w_mlp1"]) + params["b_mlp1"]
    e_hull = r(v_hull)[j_idx] * W
    out_hull = jax.ops.segment_sum(r(e_hull), i2_idx, num_segments=num_nodes)
    out_hull = _swish(dot(out_hull, params["w_lin1h"]) + params["b_lin1h"])
    out_hull = dot(out_hull, params["w_lin2h"]) + params["b_lin2h"]
    vv = _swish(dot(jnp.concatenate([v, out_hull], axis=1), params["w_cat"])
                + params["b_cat"])
    vv = dot(vv, params["w_up"]) + params["b_up"]
    for l in range(params["w_lins"].shape[0]):
        vv = _swish(dot(vv, params["w_lins"][l]) + params["b_lins"][l])
    return dot(vv, params["w_out"])


# ---------------------------------------------------------------------------
# Synthetic parameters (matching the module's layer shapes)
# ---------------------------------------------------------------------------
def _glorot(key, shape):
    fan_in, fan_out = shape[-2], shape[-1]
    std = sqrt(2.0 / (fan_in + fan_out))
    return (std * jax.random.normal(key, shape)).astype(jnp.float32)


def make_params(key, hidden, out_emb, out_ch, num_output_layers, num_filters,
                cha_rate, cha_scale, isangle_emb_hull):
    fin = 16 if isangle_emb_hull else 7
    c2 = int(cha_scale * out_emb * (1 - cha_rate))
    lm1 = num_output_layers - 1
    ks = jax.random.split(key, 16)
    # TODO(synk): glorot_orthogonal is approximated with scaled normal init (synthetic weights).
    return {
        "w_lin_hull": _glorot(ks[0], (hidden, num_filters)),
        "w_mlp0": _glorot(ks[1], (fin, num_filters)),
        "b_mlp0": (0.1 * jax.random.normal(ks[2], (1, num_filters))).astype(jnp.float32),
        "w_mlp1": _glorot(ks[3], (num_filters, num_filters)),
        "b_mlp1": (0.1 * jax.random.normal(ks[4], (1, num_filters))).astype(jnp.float32),
        "w_lin1h": _glorot(ks[5], (num_filters, hidden)),
        "b_lin1h": (0.1 * jax.random.normal(ks[6], (1, hidden))).astype(jnp.float32),
        "w_lin2h": _glorot(ks[7], (hidden, c2)),
        "b_lin2h": (0.1 * jax.random.normal(ks[8], (1, c2))).astype(jnp.float32),
        "w_cat": _glorot(ks[9], (hidden + c2, hidden)),
        "b_cat": (0.1 * jax.random.normal(ks[10], (1, hidden))).astype(jnp.float32),
        "w_up": _glorot(ks[11], (hidden, out_emb)),
        "b_up": (0.1 * jax.random.normal(ks[12], (1, out_emb))).astype(jnp.float32),
        "w_lins": _glorot(ks[13], (lm1, out_emb, out_emb)),
        "b_lins": jnp.zeros((lm1, 1, out_emb), jnp.float32),   # lin.bias.data.fill_(0)
        "w_out": _glorot(ks[14], (out_emb, out_ch)),            # output_init='GlorotOrthogonal'
    }


if __name__ == "__main__":
    # module hyper-parameters
    hidden_channels = 32
    out_emb_channels = 32
    out_channels = 8
    num_output_layers = 3
    num_filters = 128
    cha_rate = 0.5
    cha_scale = 2
    isangle_emb_hull = True
    fin = 16 if isangle_emb_hull else 7
    c2 = int(cha_scale * out_emb_channels * (1 - cha_rate))

    # graph batch: G small graphs stacked on the row axis, GB graphs per block
    E, EH, N = 16, 16, 8        # per-graph edges / hull edges / nodes
    G = 32                      # graphs in the batch
    GB = 16                     # graphs per grid block -> M in {128, 256} per matmul

    cfg = dict(H=hidden_channels, NF=num_filters, C2=c2, OE=out_emb_channels,
               OC=out_channels, FIN=fin, LM1=num_output_layers - 1,
               E_blk=GB * E, EH_blk=GB * EH, N_blk=GB * N)

    key = jax.random.PRNGKey(0)
    k_p, k_e2, k_fea, k_i, k_j, k_i2 = jax.random.split(key, 6)

    params = make_params(k_p, hidden_channels, out_emb_channels, out_channels,
                         num_output_layers, num_filters, cha_rate, cha_scale,
                         isangle_emb_hull)

    e2 = jax.random.normal(k_e2, (G * E, hidden_channels), jnp.float32)
    fea_hull = jax.random.normal(k_fea, (G * EH, fin), jnp.float32)
    # per-graph indices, offset so graph g owns nodes [g*N, (g+1)*N)
    goff_e = (jnp.arange(G * E, dtype=jnp.int32) // E) * N
    goff_eh = (jnp.arange(G * EH, dtype=jnp.int32) // EH) * N
    i_idx = jax.random.randint(k_i, (G * E,), 0, N, jnp.int32) + goff_e
    j_idx = jax.random.randint(k_j, (G * EH,), 0, N, jnp.int32) + goff_eh
    i2_idx = jax.random.randint(k_i2, (G * EH,), 0, N, jnp.int32) + goff_eh

    out = update_v_pallas(e2, i_idx, fea_hull, j_idx, i2_idx, params, cfg)
    out = jax.block_until_ready(out)

    # (1) bf16-mirrored reference (same MXU-operand rounding as the kernel): tight check
    ref_bf16 = update_v_reference(e2, i_idx, fea_hull, j_idx, i2_idx, params,
                                  G * N, mxu_dtype=jnp.bfloat16)
    # (2) full-f32 reference (module semantics): bounds total bf16-MXU error
    ref_f32 = update_v_reference(e2, i_idx, fea_hull, j_idx, i2_idx, params,
                                 G * N, mxu_dtype=jnp.float32)
    ref_bf16, ref_f32 = jax.block_until_ready((ref_bf16, ref_f32))

    if not jnp.allclose(out, ref_bf16, rtol=2e-2, atol=2e-2):
        raise AssertionError(
            f"bf16-mirror mismatch: max |diff| = {float(jnp.max(jnp.abs(out - ref_bf16)))}")
    if not jnp.allclose(out, ref_f32, rtol=5e-2, atol=5e-2):
        raise AssertionError(
            f"f32 reference mismatch: max |diff| = {float(jnp.max(jnp.abs(out - ref_f32)))}")

    print("KERNEL_OK")
</pallas_src>

<mosaic_0001>
module attributes {stable_mosaic.version = 11 : i64} {
  func.func @kernel(%arg0: i32, %arg1: memref<1x8x256xi32, #tpu.memory_space<vmem>>, %arg2: memref<256x1xi32, #tpu.memory_space<vmem>>, %arg3: memref<256x32xf32, #tpu.memory_space<vmem>>, %arg4: memref<256x16xf32, #tpu.memory_space<vmem>>, %arg5: memref<176x128xbf16, #tpu.memory_space<vmem>>, %arg6: memref<128x32xbf16, #tpu.memory_space<vmem>>, %arg7: memref<224x32xbf16, #tpu.memory_space<vmem>>, %arg8: memref<8x128xf32, #tpu.memory_space<vmem>>, %arg9: memref<128x8xf32, #tpu.memory_space<vmem>>) attributes {dimension_semantics = [#tpu.dimension_semantics<parallel>], iteration_bounds = array<i64: 2>, scalar_prefetch = 0 : i64, scratch_operands = 0 : i64, tpu.core_type = #tpu.core_type<tc>, window_params = [{transform_indices = @transform_0, window_bounds = array<i64: 1, 8, 256>}, {transform_indices = @transform_1, window_bounds = array<i64: 256, 1>}, {transform_indices = @transform_2, window_bounds = array<i64: 256, 32>}, {transform_indices = @transform_3, window_bounds = array<i64: 256, 16>}, {pipeline_mode = #tpu.pipeline_mode<synchronous>, transform_indices = @transform_4, window_bounds = array<i64: 176, 128>}, {pipeline_mode = #tpu.pipeline_mode<synchronous>, transform_indices = @transform_5, window_bounds = array<i64: 128, 32>}, {pipeline_mode = #tpu.pipeline_mode<synchronous>, transform_indices = @transform_6, window_bounds = array<i64: 224, 32>}, {pipeline_mode = #tpu.pipeline_mode<synchronous>, transform_indices = @transform_7, window_bounds = array<i64: 8, 128>}, {transform_indices = @transform_8, window_bounds = array<i64: 128, 8>}]} {
    %c0 = arith.constant 0 : index
    %c0_0 = arith.constant 0 : index
    %c0_1 = arith.constant 0 : index
    %0 = vector.load %arg1[%c0, %c0_0, %c0_1] : memref<1x8x256xi32, #tpu.memory_space<vmem>>, vector<1x1x256xi32>
    %1 = vector.shape_cast %0 : vector<1x1x256xi32> to vector<1x256xi32>
    %c0_2 = arith.constant 0 : index
    %c1 = arith.constant 1 : index
    %c0_3 = arith.constant 0 : index
    %2 = vector.load %arg1[%c0_2, %c1, %c0_3] : memref<1x8x256xi32, #tpu.memory_space<vmem>>, vector<1x1x256xi32>
    %3 = vector.shape_cast %2 : vector<1x1x256xi32> to vector<1x256xi32>
    %c0_4 = arith.constant 0 : index
    %c0_5 = arith.constant 0 : index
    %4 = vector.load %arg2[%c0_4, %c0_5] : memref<256x1xi32, #tpu.memory_space<vmem>>, vector<256x1xi32>
    %5 = tpu.iota {dimensions = array<i32: 0>} : vector<128x256xi32>
    %6 = vector.broadcast %1 : vector<1x256xi32> to vector<128x256xi32>
    %7 = arith.cmpi eq, %5, %6 : vector<128x256xi32>
    %8 = arith.extui %7 : vector<128x256xi1> to vector<128x256xi32>
    %9 = arith.sitofp %8 : vector<128x256xi32> to vector<128x256xf32>
    %10 = arith.truncf %9 : vector<128x256xf32> to vector<128x256xbf16>
    %c0_6 = arith.constant 0 : index
    %c0_7 = arith.constant 0 : index
    %11 = vector.load %arg3[%c0_6, %c0_7] : memref<256x32xf32, #tpu.memory_space<vmem>>, vector<256x32xf32>
    %12 = arith.truncf %11 : vector<256x32xf32> to vector<256x32xbf16>
    %cst = arith.constant dense<0.000000e+00> : vector<128x32xf32>
    %13 = tpu.matmul %10, %12, %cst {dimension_numbers = #tpu.dot_dimension_numbers<[1], [0], [0], [1], [0, 0, 1, 1], [], []>} : vector<128x256xbf16>, vector<256x32xbf16>, vector<128x32xf32> -> vector<128x32xf32>
    %14 = arith.truncf %13 : vector<128x32xf32> to vector<128x32xbf16>
    %c0_8 = arith.constant 0 : index
    %c0_9 = arith.constant 0 : index
    %15 = vector.load %arg5[%c0_8, %c0_9] : memref<176x128xbf16, #tpu.memory_space<vmem>>, vector<32x128xbf16>
    %cst_10 = arith.constant dense<0.000000e+00> : vector<128x128xf32>
    %16 = tpu.matmul %14, %15, %cst_10 {dimension_numbers = #tpu.dot_dimension_numbers<[1], [0], [0], [1], [0, 0, 1, 1], [], []>} : vector<128x32xbf16>, vector<32x128xbf16>, vector<128x128xf32> -> vector<128x128xf32>
    %c0_11 = arith.constant 0 : index
    %c0_12 = arith.constant 0 : index
    %17 = vector.load %arg4[%c0_11, %c0_12] : memref<256x16xf32, #tpu.memory_space<vmem>>, vector<256x16xf32>
    %18 = arith.truncf %17 : vector<256x16xf32> to vector<256x16xbf16>
    %c32 = arith.constant 32 : index
    %c0_13 = arith.constant 0 : index
    %19 = vector.load %arg5[%c32, %c0_13] : memref<176x128xbf16, #tpu.memory_space<vmem>>, vector<16x128xbf16>
    %cst_14 = arith.constant dense<0.000000e+00> : vector<256x128xf32>
    %20 = tpu.matmul %18, %19, %cst_14 {dimension_numbers = #tpu.dot_dimension_numbers<[1], [0], [0], [1], [0, 0, 1, 1], [], []>} : vector<256x16xbf16>, vector<16x128xbf16>, vector<256x128xf32> -> vector<256x128xf32>
    %c0_15 = arith.constant 0 : index
    %c0_16 = arith.constant 0 : index
    %21 = vector.load %arg8[%c0_15, %c0_16] : memref<8x128xf32, #tpu.memory_space<vmem>>, vector<1x128xf32>
    %22 = vector.broadcast %21 : vector<1x128xf32> to vector<256x128xf32>
    %23 = arith.addf %20, %22 : vector<256x128xf32>
    %24 = arith.negf %23 : vector<256x128xf32>
    %25 = math.exp %24 : vector<256x128xf32>
    %cst_17 = arith.constant 1.000000e+00 : f32
    %26 = vector.broadcast %cst_17 : f32 to vector<256x128xf32>
    %27 = arith.addf %26, %25 : vector<256x128xf32>
    %28 = arith.divf %26, %27 : vector<256x128xf32>
    %29 = arith.mulf %23, %28 : vector<256x128xf32>
    %30 = arith.truncf %29 : vector<256x128xf32> to vector<256x128xbf16>
    %c48 = arith.constant 48 : index
    %c0_18 = arith.constant 0 : index
    %31 = vector.load %arg5[%c48, %c0_18] : memref<176x128xbf16, #tpu.memory_space<vmem>>, vector<128x128xbf16>
    %cst_19 = arith.constant dense<0.000000e+00> : vector<256x128xf32>
    %32 = tpu.matmul %30, %31, %cst_19 {dimension_numbers = #tpu.dot_dimension_numbers<[1], [0], [0], [1], [0, 0, 1, 1], [], []>} : vector<256x128xbf16>, vector<128x128xbf16>, vector<256x128xf32> -> vector<256x128xf32>
    %c1_20 = arith.constant 1 : index
    %c0_21 = arith.constant 0 : index
    %33 = vector.load %arg8[%c1_20, %c0_21] : memref<8x128xf32, #tpu.memory_space<vmem>>, vector<1x128xf32>
    %34 = vector.broadcast %33 : vector<1x128xf32> to vector<256x128xf32>
    %35 = arith.addf %32, %34 : vector<256x128xf32>
    %36 = tpu.iota {dimensions = array<i32: 1>} : vector<256x128xi32>
    %37 = vector.broadcast %4 : vector<256x1xi32> to vector<256x128xi32>
    %38 = arith.cmpi eq, %36, %37 : vector<256x128xi32>
    %39 = arith.extui %38 : vector<256x128xi1> to vector<256x128xi32>
    %40 = arith.sitofp %39 : vector<256x128xi32> to vector<256x128xf32>
    %41 = arith.truncf %40 : vector<256x128xf32> to vector<256x128xbf16>
    %42 = arith.truncf %16 : vector<128x128xf32> to vector<128x128xbf16>
    %cst_22 = arith.constant dense<0.000000e+00> : vector<256x128xf32>
    %43 = tpu.matmul %41, %42, %cst_22 {dimension_numbers = #tpu.dot_dimension_numbers<[1], [0], [0], [1], [0, 0, 1, 1], [], []>} : vector<256x128xbf16>, vector<128x128xbf16>, vector<256x128xf32> -> vector<256x128xf32>
    %44 = arith.mulf %43, %35 : vector<256x128xf32>
    %45 = tpu.iota {dimensions = array<i32: 0>} : vector<128x256xi32>
    %46 = vector.broadcast %3 : vector<1x256xi32> to vector<128x256xi32>
    %47 = arith.cmpi eq, %45, %46 : vector<128x256xi32>
    %48 = arith.extui %47 : vector<128x256xi1> to vector<128x256xi32>
    %49 = arith.sitofp %48 : vector<128x256xi32> to vector<128x256xf32>
    %50 = arith.truncf %49 : vector<128x256xf32> to vector<128x256xbf16>
    %51 = arith.truncf %44 : vector<256x128xf32> to vector<256x128xbf16>
    %cst_23 = arith.constant dense<0.000000e+00> : vector<128x128xf32>
    %52 = tpu.matmul %50, %51, %cst_23 {dimension_numbers = #tpu.dot_dimension_numbers<[1], [0], [0], [1], [0, 0, 1, 1], [], []>} : vector<128x256xbf16>, vector<256x128xbf16>, vector<128x128xf32> -> vector<128x128xf32>
    %53 = arith.truncf %52 : vector<128x128xf32> to vector<128x128xbf16>
    %c0_24 = arith.constant 0 : index
    %c0_25 = arith.constant 0 : index
    %54 = vector.load %arg6[%c0_24, %c0_25] : memref<128x32xbf16, #tpu.memory_space<vmem>>, vector<128x32xbf16>
    %cst_26 = arith.constant dense<0.000000e+00> : vector<128x32xf32>
    %55 = tpu.matmul %53, %54, %cst_26 {dimension_numbers = #tpu.dot_dimension_numbers<[1], [0], [0], [1], [0, 0, 1, 1], [], []>} : vector<128x128xbf16>, vector<128x32xbf16>, vector<128x32xf32> -> vector<128x32xf32>
    %c2 = arith.constant 2 : index
    %c0_27 = arith.constant 0 : index
    %56 = vector.load %arg8[%c2, %c0_27] : memref<8x128xf32, #tpu.memory_space<vmem>>, vector<1x32xf32>
    %57 = vector.broadcast %56 : vector<1x32xf32> to vector<128x32xf32>
    %58 = arith.addf %55, %57 : vector<128x32xf32>
    %59 = arith.negf %58 : vector<128x32xf32>
    %60 = math.exp %59 : vector<128x32xf32>
    %cst_28 = arith.constant 1.000000e+00 : f32
    %61 = vector.broadcast %cst_28 : f32 to vector<128x32xf32>
    %62 = arith.addf %61, %60 : vector<128x32xf32>
    %63 = arith.divf %61, %62 : vector<128x32xf32>
    %64 = arith.mulf %58, %63 : vector<128x32xf32>
    %65 = arith.truncf %64 : vector<128x32xf32> to vector<128x32xbf16>
    %c0_29 = arith.constant 0 : index
    %c0_30 = arith.constant 0 : index
    %66 = vector.load %arg7[%c0_29, %c0_30] : memref<224x32xbf16, #tpu.memory_space<vmem>>, vector<32x32xbf16>
    %cst_31 = arith.constant dense<0.000000e+00> : vector<128x32xf32>
    %67 = tpu.matmul %65, %66, %cst_31 {dimension_numbers = #tpu.dot_dimension_numbers<[1], [0], [0], [1], [0, 0, 1, 1], [], []>} : vector<128x32xbf16>, vector<32x32xbf16>, vector<128x32xf32> -> vector<128x32xf32>
    %c3 = arith.constant 3 : index
    %c0_32 = arith.constant 0 : index
    %68 = vector.load %arg8[%c3, %c0_32] : memref<8x128xf32, #tpu.memory_space<vmem>>, vector<1x32xf32>
    %69 = vector.broadcast %68 : vector<1x32xf32> to vector<128x32xf32>
    %70 = arith.addf %67, %69 : vector<128x32xf32>
    %71 = tpu.concatenate %13, %70 in 1 : vector<128x32xf32>, vector<128x32xf32> -> vector<128x64xf32>
    %72 = arith.truncf %71 : vector<128x64xf32> to vector<128x64xbf16>
    %c32_33 = arith.constant 32 : index
    %c0_34 = arith.constant 0 : index
    %73 = vector.load %arg7[%c32_33, %c0_34] : memref<224x32xbf16, #tpu.memory_space<vmem>>, vector<64x32xbf16>
    %cst_35 = arith.constant dense<0.000000e+00> : vector<128x32xf32>
    %74 = tpu.matmul %72, %73, %cst_35 {dimension_numbers = #tpu.dot_dimension_numbers<[1], [0], [0], [1], [0, 0, 1, 1], [], []>} : vector<128x64xbf16>, vector<64x32xbf16>, vector<128x32xf32> -> vector<128x32xf32>
    %c4 = arith.constant 4 : index
    %c0_36 = arith.constant 0 : index
    %75 = vector.load %arg8[%c4, %c0_36] : memref<8x128xf32, #tpu.memory_space<vmem>>, vector<1x32xf32>
    %76 = vector.broadcast %75 : vector<1x32xf32> to vector<128x32xf32>
    %77 = arith.addf %74, %76 : vector<128x32xf32>
    %78 = arith.negf %77 : vector<128x32xf32>
    %79 = math.exp %78 : vector<128x32xf32>
    %cst_37 = arith.constant 1.000000e+00 : f32
    %80 = vector.broadcast %cst_37 : f32 to vector<128x32xf32>
    %81 = arith.addf %80, %79 : vector<128x32xf32>
    %82 = arith.divf %80, %81 : vector<128x32xf32>
    %83 = arith.mulf %77, %82 : vector<128x32xf32>
    %84 = arith.truncf %83 : vector<128x32xf32> to vector<128x32xbf16>
    %c96 = arith.constant 96 : index
    %c0_38 = arith.constant 0 : index
    %85 = vector.load %arg7[%c96, %c0_38] : memref<224x32xbf16, #tpu.memory_space<vmem>>, vector<32x32xbf16>
    %cst_39 = arith.constant dense<0.000000e+00> : vector<128x32xf32>
    %86 = tpu.matmul %84, %85, %cst_39 {dimension_numbers = #tpu.dot_dimension_numbers<[1], [0], [0], [1], [0, 0, 1, 1], [], []>} : vector<128x32xbf16>, vector<32x32xbf16>, vector<128x32xf32> -> vector<128x32xf32>
    %c5 = arith.constant 5 : index
    %c0_40 = arith.constant 0 : index
    %87 = vector.load %arg8[%c5, %c0_40] : memref<8x128xf32, #tpu.memory_space<vmem>>, vector<1x32xf32>
    %88 = vector.broadcast %87 : vector<1x32xf32> to vector<128x32xf32>
    %89 = arith.addf %86, %88 : vector<128x32xf32>
    %90 = arith.truncf %89 : vector<128x32xf32> to vector<128x32xbf16>
    %c128 = arith.constant 128 : index
    %c0_41 = arith.constant 0 : index
    %91 = vector.load %arg7[%c128, %c0_41] : memref<224x32xbf16, #tpu.memory_space<vmem>>, vector<32x32xbf16>
    %cst_42 = arith.constant dense<0.000000e+00> : vector<128x32xf32>
    %92 = tpu.matmul %90, %91, %cst_42 {dimension_numbers = #tpu.dot_dimension_numbers<[1], [0], [0], [1], [0, 0, 1, 1], [], []>} : vector<128x32xbf16>, vector<32x32xbf16>, vector<128x32xf32> -> vector<128x32xf32>
    %c6 = arith.constant 6 : index
    %c0_43 = arith.constant 0 : index
    %93 = vector.load %arg8[%c6, %c0_43] : memref<8x128xf32, #tpu.memory_space<vmem>>, vector<1x32xf32>
    %94 = vector.broadcast %93 : vector<1x32xf32> to vector<128x32xf32>
    %95 = arith.addf %92, %94 : vector<128x32xf32>
    %96 = arith.negf %95 : vector<128x32xf32>
    %97 = math.exp %96 : vector<128x32xf32>
    %cst_44 = arith.constant 1.000000e+00 : f32
    %98 = vector.broadcast %cst_44 : f32 to vector<128x32xf32>
    %99 = arith.addf %98, %97 : vector<128x32xf32>
    %100 = arith.divf %98, %99 : vector<128x32xf32>
    %101 = arith.mulf %95, %100 : vector<128x32xf32>
    %102 = arith.truncf %101 : vector<128x32xf32> to vector<128x32xbf16>
    %c160 = arith.constant 160 : index
    %c0_45 = arith.constant 0 : index
    %103 = vector.load %arg7[%c160, %c0_45] : memref<224x32xbf16, #tpu.memory_space<vmem>>, vector<32x32xbf16>
    %cst_46 = arith.constant dense<0.000000e+00> : vector<128x32xf32>
    %104 = tpu.matmul %102, %103, %cst_46 {dimension_numbers = #tpu.dot_dimension_numbers<[1], [0], [0], [1], [0, 0, 1, 1], [], []>} : vector<128x32xbf16>, vector<32x32xbf16>, vector<128x32xf32> -> vector<128x32xf32>
    %c7 = arith.constant 7 : index
    %c0_47 = arith.constant 0 : index
    %105 = vector.load %arg8[%c7, %c0_47] : memref<8x128xf32, #tpu.memory_space<vmem>>, vector<1x32xf32>
    %106 = vector.broadcast %105 : vector<1x32xf32> to vector<128x32xf32>
    %107 = arith.addf %104, %106 : vector<128x32xf32>
    %108 = arith.negf %107 : vector<128x32xf32>
    %109 = math.exp %108 : vector<128x32xf32>
    %cst_48 = arith.constant 1.000000e+00 : f32
    %110 = vector.broadcast %cst_48 : f32 to vector<128x32xf32>
    %111 = arith.addf %110, %109 : vector<128x32xf32>
    %112 = arith.divf %110, %111 : vector<128x32xf32>
    %113 = arith.mulf %107, %112 : vector<128x32xf32>
    %114 = arith.truncf %113 : vector<128x32xf32> to vector<128x32xbf16>
    %c192 = arith.constant 192 : index
    %c0_49 = arith.constant 0 : index
    %115 = vector.load %arg7[%c192, %c0_49] : memref<224x32xbf16, #tpu.memory_space<vmem>>, vector<32x8xbf16>
    %cst_50 = arith.constant dense<0.000000e+00> : vector<128x8xf32>
    %116 = tpu.matmul %114, %115, %cst_50 {dimension_numbers = #tpu.dot_dimension_numbers<[1], [0], [0], [1], [0, 0, 1, 1], [], []>} : vector<128x32xbf16>, vector<32x8xbf16>, vector<128x8xf32> -> vector<128x8xf32>
    %c0_51 = arith.constant 0 : index
    %c0_52 = arith.constant 0 : index
    %117 = vector.load %arg9[%c0_51, %c0_52] : memref<128x8xf32, #tpu.memory_space<vmem>>, vector<128x8xf32>
    tpu.vector_store %arg9[%c0_51, %c0_52], %116 {strides = array<i32>} : memref<128x8xf32, #tpu.memory_space<vmem>>, vector<128x8xf32>,
    return
  }
  func.func @transform_0(%arg0: i32) -> (i32, i32, i32) {
    %c0_i32 = arith.constant 0 : i32
    %c0_i32_0 = arith.constant 0 : i32
    %c0_i32_1 = arith.constant 0 : i32
    return %arg0, %c0_i32, %c0_i32_0 : i32, i32, i32
  }
  func.func @transform_1(%arg0: i32) -> (i32, i32) {
    %c0_i32 = arith.constant 0 : i32
    %c0_i32_0 = arith.constant 0 : i32
    return %arg0, %c0_i32 : i32, i32
  }
  func.func @transform_2(%arg0: i32) -> (i32, i32) {
    %c0_i32 = arith.constant 0 : i32
    %c0_i32_0 = arith.constant 0 : i32
    return %arg0, %c0_i32 : i32, i32
  }
  func.func @transform_3(%arg0: i32) -> (i32, i32) {
    %c0_i32 = arith.constant 0 : i32
    %c0_i32_0 = arith.constant 0 : i32
    return %arg0, %c0_i32 : i32, i32
  }
  func.func @transform_4(%arg0: i32) -> (i32, i32) {
    %c0_i32 = arith.constant 0 : i32
    %c0_i32_0 = arith.constant 0 : i32
    %c0_i32_1 = arith.constant 0 : i32
    return %c0_i32, %c0_i32_0 : i32, i32
  }
  func.func @transform_5(%arg0: i32) -> (i32, i32) {
    %c0_i32 = arith.constant 0 : i32
    %c0_i32_0 = arith.constant 0 : i32
    %c0_i32_1 = arith.constant 0 : i32
    return %c0_i32, %c0_i32_0 : i32, i32
  }
  func.func @transform_6(%arg0: i32) -> (i32, i32) {
    %c0_i32 = arith.constant 0 : i32
    %c0_i32_0 = arith.constant 0 : i32
    %c0_i32_1 = arith.constant 0 : i32
    return %c0_i32, %c0_i32_0 : i32, i32
  }
  func.func @transform_7(%arg0: i32) -> (i32, i32) {
    %c0_i32 = arith.constant 0 : i32
    %c0_i32_0 = arith.constant 0 : i32
    %c0_i32_1 = arith.constant 0 : i32
    return %c0_i32, %c0_i32_0 : i32, i32
  }
  func.func @transform_8(%arg0: i32) -> (i32, i32) {
    %c0_i32 = arith.constant 0 : i32
    %c0_i32_0 = arith.constant 0 : i32
    return %arg0, %c0_i32 : i32, i32
  }
}

</mosaic_0001>

<bundles_post_ra>
// kernel: tpu_custom_call.1
= control target key start
LH: loop header
LB: loop body
LE: loop exit
PB: predicated region body
PF: predicated region fallthrough
CT: control target
= control target key end

     0   :  { %s5609_s27 = smov 0   ;;  %s7439_s0 = inlined_call_operand.vmem [shape: s32[2,8,256], index: 0, kind: input, shape index: {}]   ;;  %s7440_s1 = inlined_call_operand.vmem [shape: s32[512,1], index: 1, kind: input, shape index: {}]   ;;  %s7441_s2 = inlined_call_operand.vmem [shape: f32[512,32], index: 2, kind: input, shape index: {}]   ;;  %s7442_s3 = inlined_call_operand.vmem [shape: f32[512,16], index: 3, kind: input, shape index: {}]   ;;  %s7443_s4 = inlined_call_operand.vmem [shape: bf16[176,128], index: 4, kind: input, shape index: {}]   ;;  %s7444_s5 = inlined_call_operand.vmem [shape: bf16[128,32], index: 5, kind: input, shape index: {}]   ;;  %s7445_s6 = inlined_call_operand.vmem [shape: bf16[224,32], index: 6, kind: input, shape index: {}]   ;;  %s7446_s7 = inlined_call_operand.vmem [shape: f32[8,128], index: 7, kind: input, shape index: {}]   ;;  %s7447_s8 = inlined_call_operand.vmem [shape: f32[256,8], index: 8, kind: output, shape index: {}]  }
   0x1 LB: > { %s5615_s28 = sadd.s32 4294967295, %s5559_s27   ;;  %p4563_p0 = scmp.ge.s32.totalorder %s5559_s27, 1  ;;  %s5559_s27 = sphi %s5609_s27, %s18_s27  }
   0x2   : > { %p295_p1 = scmp.lt.s32.totalorder %s5559_s27, 3 }
   0x4   : > { %p296_p2 = pnand %p4563_p0, %p295_p1 }
   0x6   : > { %299 = sbr.rel (%p296_p2) target bundleno = 2367 (0x93f), region = 52 }
   0xb   : > { %s4566_s29 = sshll.u32 %s5615_s28, 5  ;;  %p344_p4 = scmp.lt.s32.totalorder %s5615_s28, 1  ;;  %v7450_v32 = vlaneseq  ;;  %v7448_v54 = vmov 1.0|1.0  }
   0xc   : > { %p350_p3 = scmp.lt.s32.totalorder %s4566_s29, 63  ;;  %s5563_s15 = smov 32  }
   0xd   : > { %s345_s12 = scalar_select %p344_p4, %s5615_s28, 1  ;;  %v5662_v39 = vshrl.u32 %v7450_v32, 7 }
   0xe   : > { %s7567_s29 = smov (!%p350_p3, %s4566_s29), 63 }
   0xf   : > { %s5620_s30 = sshll.u32 %s7567_s29, 3  ;;  %s5069_s13 = sshll.u32 %s345_s12, 4  ;;  %v5670_v47 = vadd.s32 8, %v5662_v39  ;;  %v5689_v55 = vadd.s32 16, %v5662_v39  ;;  %v5692_v56 = vadd.s32 24, %v5662_v39  ;;  %v5705_v57 = vadd.s32 32, %v5662_v39 }
  0x10   : > { %s5626_s11 = scalar_lea.vmem %s7441_s2, %s5620_s30  ;;  %s5657_s16 = scalar_lea.vmem %s7439_s0, %s5069_s13  ;;  %v5708_v58 = vadd.s32 40, %v5662_v39  ;;  %v5721_v59 = vadd.s32 48, %v5662_v39  ;;  %v5724_v60 = vadd.s32 56, %v5662_v39  ;;  %v5737_v61 = vadd.s32 64, %v5662_v39 }
  0x11   : > { %v554_v0 = vld [vmem:[%s5626_s11 + $0x70] sm:$0xff]  ;;  %v555_v1 = vld [vmem:[%s5626_s11 + $0x78] sm:$0xff]  ;;  %v552_v5 = vld [vmem:[%s5626_s11 + $0x60] sm:$0xff]  ;;  %v5740_v62 = vadd.s32 72, %v5662_v39  ;;  %v5753_v63 = vadd.s32 80, %v5662_v39  ;;  %s5824_s23 = scalar_lea.vmem %s7442_s3, %s5620_s30  ;;  %s5843_s9 = scalar_lea.vmem %s7440_s1, %s5620_s30 }
  0x12   : > { %v570_v2 = vld [vmem:[%s5626_s11 + $0xf0] sm:$0xff]  ;;  %v579_v3 = vpack.c.bf16 %v555_v1, %v554_v0  ;;  %v571_v4 = vld [vmem:[%s5626_s11 + $0xf8] sm:$0xff]  ;;  %v553_v6 = vld [vmem:[%s5626_s11 + $0x68] sm:$0xff]  ;;  %v5756_v0 = vadd.s32 88, %v5662_v39  ;;  %v5769_v1 = vadd.s32 96, %v5662_v39  ;;  %s4572_s30 = sshll.u32 %s5615_s28, 4 }
  0x13   : > { %v587_v7 = vpack.c.bf16 %v571_v4, %v570_v2  ;;  %v568_v8 = vld [vmem:[%s5626_s11 + $0xe0] sm:$0xff]  ;;  %v569_v9 = vld [vmem:[%s5626_s11 + $0xe8] sm:$0xff]  ;;  %v578_v10 = vpack.c.bf16 %v553_v6, %v552_v5  ;;  %v550_v12 = vld [vmem:[%s5626_s11 + $0x50] sm:$0xff]  ;;  %v5772_v2 = vadd.s32 104, %v5662_v39  ;;  %v5788_v4 = vadd.s32 112, %v5662_v39  ;;  %p368_p5 = scmp.lt.s32.totalorder %s4572_s30, 31 }
  0x14   : > { %588 = vmatpush.bf16.msra.mxu0 %v579_v3  ;;  %v586_v11 = vpack.c.bf16 %v569_v9, %v568_v8  ;;  %v551_v13 = vld [vmem:[%s5626_s11 + $0x58] sm:$0xff]  ;;  %v566_v14 = vld [vmem:[%s5626_s11 + $0xd0] sm:$0xff]  ;;  %v548_v18 = vld [vmem:[%s5626_s11 + $0x40] sm:$0xff]  ;;  %v5791_v5 = vadd.s32 120, %v5662_v39 }
  0x15   : > { %637 = vmatpush.bf16.msra.mxu1 %v587_v7  ;;  %v567_v15 = vld [vmem:[%s5626_s11 + $0xd8] sm:$0xff]  ;;  %v577_v16 = vpack.c.bf16 %v551_v13, %v550_v12  ;;  %v549_v19 = vld [vmem:[%s5626_s11 + $0x48] sm:$0xff]  ;;  %v564_v20 = vld [vmem:[%s5626_s11 + $0xc0] sm:$0xff]  ;;  %s7569_s30 = smov (!%p368_p5, %s4572_s30), 31 }
  0x16   : > { %v585_v17 = vpack.c.bf16 %v567_v15, %v566_v14  ;;  %v565_v21 = vld [vmem:[%s5626_s11 + $0xc8] sm:$0xff]  ;;  %v576_v22 = vpack.c.bf16 %v549_v19, %v548_v18  ;;  %v546_v24 = vld [vmem:[%s5626_s11 + $0x30] sm:$0xff]  ;;  %v547_v25 = vld [vmem:[%s5626_s11 + $0x38] sm:$0xff]  ;;  %s4573_s28 = sshll.u32 %s7569_s30, 3 }
  0x17   : > { %v584_v23 = vpack.c.bf16 %v565_v21, %v564_v20  ;;  %v562_v26 = vld [vmem:[%s5626_s11 + $0xb0] sm:$0xff]  ;;  %v563_v27 = vld [vmem:[%s5626_s11 + $0xb8] sm:$0xff]  ;;  %v575_v28 = vpack.c.bf16 %v547_v25, %v546_v24  ;;  %v544_v30 = vld [vmem:[%s5626_s11 + $0x20] sm:$0xff] }
  0x18   : > { %589 = vmatpush.bf16.msra.mxu0 %v578_v10  ;;  %v583_v29 = vpack.c.bf16 %v563_v27, %v562_v26  ;;  %v545_v31 = vld [vmem:[%s5626_s11 + $0x28] sm:$0xff]  ;;  %v560_v33 = vld [vmem:[%s5626_s11 + $0xa0] sm:$0xff]  ;;  %v542_v37 = vld [vmem:[%s5626_s11 + $0x10] sm:$0xff] }
  0x19   : > { %638 = vmatpush.bf16.msra.mxu1 %v586_v11  ;;  %v561_v34 = vld [vmem:[%s5626_s11 + $0xa8] sm:$0xff]  ;;  %v574_v35 = vpack.c.bf16 %v545_v31, %v544_v30  ;;  %v543_v38 = vld [vmem:[%s5626_s11 + $0x18] sm:$0xff]  ;;  %v558_v40 = vld [vmem:[%s5626_s11 + $0x90] sm:$0xff] }
  0x1a   : > { %v582_v36 = vpack.c.bf16 %v561_v34, %v560_v33  ;;  %v559_v41 = vld [vmem:[%s5626_s11 + $0x98] sm:$0xff]  ;;  %v374_v42 = vld [vmem:[%s5657_s16] ss:$8 sm:$0x3]  ;;  %v573_v43 = vpack.c.bf16 %v543_v38, %v542_v37  ;;  %v5072_v27 = vld [vmem:[%s7443_s4 + $0x10] sm:$0xff] }
  0x1b   : > { %v581_v44 = vpack.c.bf16 %v559_v41, %v558_v40  ;;  %v540_v45 = vld [vmem:[%s5626_s11] sm:$0xff]  ;;  %v541_v46 = vld [vmem:[%s5626_s11 + $0x8] sm:$0xff]  ;;  %v5672_v48 = vperm.slane %v374_v42, 0  ;;  %v5676_v51 = vperm.slane %v374_v42, 1  ;;  %5105 = vmatpush.bf16.msra.mxu3 %v5072_v27  ;;  %v379_v41 = vld [vmem:[%s5843_s9 + $0x10] sm:$0xff] }
  0x1c   : > { %590 = vmatpush.bf16.msra.mxu0 %v577_v16  ;;  %v556_v49 = vld [vmem:[%s5626_s11 + $0x80] sm:$0xff]  ;;  %v557_v50 = vld [vmem:[%s5626_s11 + $0x88] sm:$0xff]  ;;  %v572_v52 = vpack.c.bf16 %v541_v46, %v540_v45  ;;  %v787_v45 = vld [vmem:[%s5824_s23 + $0x18] sm:$0xff] }
  0x1d   : > { %639 = vmatpush.bf16.msra.mxu1 %v585_v17  ;;  %v580_v53 = vpack.c.bf16 %v557_v50, %v556_v49  ;;  %vm428_vm0 = vcmp.eq.s32.totalorder %v5662_v39, %v5672_v48  ;;  %vm430_vm1 = vcmp.eq.s32.totalorder %v5670_v47, %v5672_v48  ;;  %vm429_vm2 = vcmp.eq.s32.totalorder %v5662_v39, %v5676_v51  ;;  %v5071_v3 = vld [vmem:[%s7443_s4 + $0x8] sm:$0xff]  ;;  %v5070_v6 = vld [vmem:[%s7443_s4] sm:$0xff]  ;;  %v380_v50 = vld [vmem:[%s5843_s9 + $0x18] sm:$0xff] }
  0x1e   : > { %vm431_vm3 = vcmp.eq.s32.totalorder %v5670_v47, %v5676_v51  ;;  %vm4607_vm4 = vmpackc.low %vm430_vm1, %vm428_vm0  ;;  %vm432_vm6 = vcmp.eq.s32.totalorder %v5689_v55, %v5672_v48  ;;  %vm434_vm7 = vcmp.eq.s32.totalorder %v5692_v56, %v5672_v48  ;;  %vm433_vm8 = vcmp.eq.s32.totalorder %v5689_v55, %v5676_v51  ;;  %5103 = vmatpush.bf16.msra.mxu2 %v5071_v3  ;;  %v785_v30 = vld [vmem:[%s5824_s23 + $0x8] sm:$0xff]  ;;  %v377_v42 = vld [vmem:[%s5843_s9] sm:$0xff] }
  0x1f   : > { %vm4623_vm5 = vmpackc.low %vm431_vm3, %vm429_vm2  ;;  %vm435_vm9 = vcmp.eq.s32.totalorder %v5692_v56, %v5676_v51  ;;  %vm436_vm12 = vcmp.eq.s32.totalorder %v5705_v57, %v5672_v48  ;;  %vm438_vm13 = vcmp.eq.s32.totalorder %v5708_v58, %v5672_v48  ;;  %vm437_vm14 = vcmp.eq.s32.totalorder %v5705_v57, %v5676_v51  ;;  %v808_v32 = vld [vmem:[%s5824_s23 + $0xc0] sm:$0xff] }
  0x20   : > { %591 = vmatpush.bf16.msra.mxu0 %v576_v22  ;;  %vm4609_vm10 = vmpackc.low %vm434_vm7, %vm432_vm6  ;;  %vm439_vm15 = vcmp.eq.s32.totalorder %v5708_v58, %v5676_v51  ;;  %vm440_vm2 = vcmp.eq.s32.totalorder %v5721_v59, %v5672_v48  ;;  %vm442_vm3 = vcmp.eq.s32.totalorder %v5724_v60, %v5672_v48 }
  0x21   : > { %640 = vmatpush.bf16.msra.mxu1 %v584_v23  ;;  %vm4625_vm11 = vmpackc.low %vm435_vm9, %vm433_vm8  ;;  %vm444_vm8 = vcmp.eq.s32.totalorder %v5737_v61, %v5672_v48  ;;  %vm446_vm9 = vcmp.eq.s32.totalorder %v5740_v62, %v5672_v48 }
  0x22   : > { %vm4611_vm0 = vmpackc.low %vm438_vm13, %vm436_vm12  ;;  %5104 = vmatpush.bf16.msra.mxu2 %v5070_v6 }
  0x23   : > { %vm4627_vm1 = vmpackc.low %vm439_vm15, %vm437_vm14  ;;  %vm448_vm14 = vcmp.eq.s32.totalorder %v5753_v63, %v5672_v48  ;;  %vm450_vm15 = vcmp.eq.s32.totalorder %v5756_v0, %v5672_v48 }
  0x24   : > { %592 = vmatpush.bf16.msra.mxu0 %v575_v28  ;;  %vm4613_vm6 = vmpackc.low %vm442_vm3, %vm440_vm2 }
  0x25   : > { %641 = vmatpush.bf16.msra.mxu1 %v583_v29  ;;  %vm4615_vm12 = vmpackc.low %vm446_vm9, %vm444_vm8  ;;  %v784_v29 = vld [vmem:[%s5824_s23] sm:$0xff] }
  0x26   : > { %vm4617_vm2 = vmpackc.low %vm450_vm15, %vm448_vm14  ;;  %v816_v31 = vpack.c.bf16 %v785_v30, %v784_v29 }
  0x28   : > { %593 = vmatpush.bf16.msra.mxu0 %v574_v35 }
  0x29   : > { %642 = vmatpush.bf16.msra.mxu1 %v582_v36 }
  0x2c   : > { %594 = vmatpush.bf16.msra.mxu0 %v573_v43  ;;  %v786_v43 = vld [vmem:[%s5824_s23 + $0x10] sm:$0xff] }
  0x2d   : > { %643 = vmatpush.bf16.msra.mxu1 %v581_v44  ;;  %v5562_v44 = vmov 0   ;;  %v817_v46 = vpack.c.bf16 %v787_v45, %v786_v43  ;;  %v392_v43 = vld [vmem:[%s5843_s9 + $0x78] sm:$0xff] }
  0x2e   : > { %5118 = vset.pattern.permute.xlu1 %v5562_v44  ;;  %5117 = vset.pattern.permute.xlu0 %v5562_v44 }
  0x2f   : > { %1800 = vperm.xlu1 %5118, %v379_v41   ;;  %1794 = vperm.xlu0 %5117, %v377_v42   ;;  %v793_v41 = vld [vmem:[%s5824_s23 + $0x48] sm:$0xff]  ;;  %v393_v42 = vld [vmem:[%s5843_s9 + $0x80] sm:$0xff] }
  0x30   : > { %595 = vmatpush.bf16.msra.mxu0 %v572_v52  ;;  %5119 = vset.pattern.permute.xlu2 %v5562_v44 }
  0x31   : > { %644 = vmatpush.bf16.msra.mxu1 %v580_v53 }
  0x33   : > { %4608 = vmatmul.msk.bf16.vlgmr.msra.gmra.mxu0 %vm4607_vm4, %v7448_v54  ;;  %vm441_vm4 = vcmp.eq.s32.totalorder %v5721_v59, %v5676_v51 }
  0x34   : > { %4624 = vmatmul.msk.bf16.vlgmr.msra.gmra.mxu1 %vm4623_vm5, %v7448_v54  ;;  %vm443_vm5 = vcmp.eq.s32.totalorder %v5724_v60, %v5676_v51  ;;  %741 = vmatpush.bf16.msrb.mxu0 %v5071_v3 }
  0x35   : > { %vm4629_vm7 = vmpackc.low %vm443_vm5, %vm441_vm4  ;;  %vm452_vm4 = vcmp.eq.s32.totalorder %v5769_v1, %v5672_v48  ;;  %vm454_vm5 = vcmp.eq.s32.totalorder %v5772_v2, %v5672_v48  ;;  %898 = vmatpush.bf16.msrb.mxu1 %v5072_v27 }
  0x36   : > { %vm4619_vm8 = vmpackc.low %vm454_vm5, %vm452_vm4 }
  0x37   : > { %1803 = vperm.xlu1 %5118, %v380_v50   ;;  %v382_v50 = vld [vmem:[%s5843_s9 + $0x28] sm:$0xff] }
  0x38   : > { %742 = vmatpush.bf16.msrb.mxu0 %v5070_v6 }
  0x43   : > { %4610 = vmatmul.msk.bf16.gmra.mxu0 %vm4609_vm10, %v7448_v54  ;;  %vm445_vm10 = vcmp.eq.s32.totalorder %v5737_v61, %v5676_v51 }
  0x44   : > { %4626 = vmatmul.msk.bf16.gmra.mxu1 %vm4625_vm11, %v7448_v54  ;;  %vm447_vm11 = vcmp.eq.s32.totalorder %v5740_v62, %v5676_v51 }
  0x45   : > { %vm4631_vm13 = vmpackc.low %vm447_vm11, %vm445_vm10  ;;  %vm456_vm10 = vcmp.eq.s32.totalorder %v5788_v4, %v5672_v48  ;;  %vm458_vm11 = vcmp.eq.s32.totalorder %v5791_v5, %v5672_v48 }
  0x46   : > { %vm4621_vm14 = vmpackc.low %vm458_vm11, %vm456_vm10 }
  0x53   : > { %4612 = vmatmul.msk.bf16.gmra.mxu0 %vm4611_vm0, %v7448_v54  ;;  %vm449_vm0 = vcmp.eq.s32.totalorder %v5753_v63, %v5676_v51 }
  0x54   : > { %4628 = vmatmul.msk.bf16.gmra.mxu1 %vm4627_vm1, %v7448_v54  ;;  %vm451_vm1 = vcmp.eq.s32.totalorder %v5756_v0, %v5676_v51 }
  0x55   : > { %vm4633_vm3 = vmpackc.low %vm451_vm1, %vm449_vm0  ;;  %vm710_vm0 = vcmask 261120   ;;  %vm842_vm1 = vcmask 130048  }
  0x63   : > { %4614 = vmatmul.msk.bf16.gmra.mxu0 %vm4613_vm6, %v7448_v54  ;;  %vm453_vm6 = vcmp.eq.s32.totalorder %v5769_v1, %v5676_v51 }
  0x64   : > { %4630 = vmatmul.msk.bf16.gmra.mxu1 %vm4629_vm7, %v7448_v54  ;;  %vm455_vm7 = vcmp.eq.s32.totalorder %v5772_v2, %v5676_v51 }
  0x65   : > { %vm4635_vm9 = vmpackc.low %vm455_vm7, %vm453_vm6 }
  0x73   : > { %4616 = vmatmul.msk.bf16.gmra.mxu0 %vm4615_vm12, %v7448_v54  ;;  %vm457_vm12 = vcmp.eq.s32.totalorder %v5788_v4, %v5676_v51 }
  0x74   : > { %4632 = vmatmul.msk.bf16.gmra.mxu1 %vm4631_vm13, %v7448_v54  ;;  %vm459_vm13 = vcmp.eq.s32.totalorder %v5791_v5, %v5676_v51  ;;  %v378_v51 = vld [vmem:[%s5843_s9 + $0x8] sm:$0xff] }
  0x75   : > { %vm4637_vm15 = vmpackc.low %vm459_vm13, %vm457_vm12  ;;  %1797 = vperm.xlu0 %5117, %v378_v51   ;;  %v396_v51 = vld [vmem:[%s5843_s9 + $0x98] sm:$0xff] }
  0x83   : > { %4618 = vmatmul.msk.bf16.gmra.mxu0 %vm4617_vm2, %v7448_v54 }
  0x84   : > { %4634 = vmatmul.msk.bf16.gmra.mxu1 %vm4633_vm3, %v7448_v54 }
  0x93   : > { %4620 = vmatmul.msk.bf16.gmra.mxu0 %vm4619_vm8, %v7448_v54 }
  0x94   : > { %4636 = vmatmul.msk.bf16.gmra.mxu1 %vm4635_vm9, %v7448_v54 }
  0xa3   : > { %4622 = vmatmul.msk.bf16.gmra.mxu0 %vm4621_vm14, %v7448_v54 }
  0xa4   : > { %4638 = vmatmul.msk.bf16.gmra.mxu1 %vm4637_vm15, %v7448_v54 }
  0xb0   : > { %v597_v7 = vpop.f32.mrf.mxu0 }
  0xb1   : > { %v646_v8 = vpop.f32.mrf.mxu1 }
  0xb2   : > { %v5806_v11 = vadd.f32 %v646_v8, %v597_v7  ;;  %v384_v8 = vld [vmem:[%s5843_s9 + $0x38] sm:$0xff] }
  0xb3   : > { %1815 = vperm.xlu1 %5118, %v384_v8  }
  0xb4   : > { %4659 = vmatmul.msk.bf16.vlgmr.msrb.gmra.mxu1 %vm842_vm1, %v816_v31  ;;  %v390_v31 = vld [vmem:[%s5843_s9 + $0x68] sm:$0xff] }
  0xb8   : > { %v599_v9 = vpop.f32.mrf.mxu0 }
  0xb9   : > { %v648_v10 = vpop.f32.mrf.mxu1 }
  0xba   : > { %v5808_v12 = vadd.f32 %v648_v10, %v599_v9  ;;  %v383_v9 = vld [vmem:[%s5843_s9 + $0x30] sm:$0xff]  ;;  %v788_v10 = vld [vmem:[%s5824_s23 + $0x20] sm:$0xff] }
  0xbb   : > { %1812 = vperm.xlu0 %5117, %v383_v9   ;;  %v385_v9 = vld [vmem:[%s5843_s9 + $0x40] sm:$0xff] }
  0xbc   : > { %v686_v13 = vpack.c.bf16 %v5808_v12, %v5806_v11 }
  0xbe   : > { %4647 = vmatmul.msk.bf16.vlgmr.msrb.gmra.mxu0 %vm710_vm0, %v686_v13  ;;  %v789_v13 = vld [vmem:[%s5824_s23 + $0x28] sm:$0xff] }
  0xc0   : > { %v602_v14 = vpop.f32.mrf.mxu0 }
  0xc1   : > { %v651_v15 = vpop.f32.mrf.mxu1 }
  0xc2   : > { %v5813_v18 = vadd.f32 %v651_v15, %v602_v14  ;;  %v818_v14 = vpack.c.bf16 %v789_v13, %v788_v10  ;;  %v399_v10 = vld [vmem:[%s5843_s9 + $0xb0] sm:$0xff]  ;;  %v398_v13 = vld [vmem:[%s5843_s9 + $0xa8] sm:$0xff] }
  0xc4   : > { %4660 = vmatmul.msk.bf16.gmra.mxu1 %vm842_vm1, %v817_v46 }
  0xc8   : > { %v604_v16 = vpop.f32.mrf.mxu0 }
  0xc9   : > { %v653_v17 = vpop.f32.mrf.mxu1 }
  0xca   : > { %v5815_v19 = vadd.f32 %v653_v17, %v604_v16  ;;  %v387_v17 = vld [vmem:[%s5843_s9 + $0x50] sm:$0xff] }
  0xcb   : > { %1824 = vperm.xlu1 %5118, %v387_v17  }
  0xcc   : > { %v687_v20 = vpack.c.bf16 %v5815_v19, %v5813_v18 }
  0xce   : > { %4648 = vmatmul.msk.bf16.gmra.mxu0 %vm710_vm0, %v687_v20  ;;  %v386_v20 = vld [vmem:[%s5843_s9 + $0x48] sm:$0xff] }
  0xcf   : > { %1821 = vperm.xlu0 %5117, %v386_v20  }
  0xd0   : > { %v607_v21 = vpop.f32.mrf.mxu0 }
  0xd1   : > { %v656_v22 = vpop.f32.mrf.mxu1 }
  0xd2   : > { %v5826_v25 = vadd.f32 %v656_v22, %v607_v21  ;;  %v790_v21 = vld [vmem:[%s5824_s23 + $0x30] sm:$0xff]  ;;  %v791_v22 = vld [vmem:[%s5824_s23 + $0x38] sm:$0xff] }
  0xd3   : > { %1833 = vperm.xlu1 %5118, %v390_v31   ;;  %v391_v31 = vld [vmem:[%s5843_s9 + $0x70] sm:$0xff] }
  0xd4   : > { %7462 = vst [vmem:[#allocation2_spill] sm:$0xff] %v5826_v25  ;;  %4661 = vmatmul.msk.bf16.gmra.mxu1 %vm842_vm1, %v818_v14  ;;  %v794_v14 = vld [vmem:[%s5824_s23 + $0x50] sm:$0xff] }
  0xd8   : > { %v609_v23 = vpop.f32.mrf.mxu0 }
  0xd9   : > { %v658_v24 = vpop.f32.mrf.mxu1 }
  0xda   : > { %v5828_v26 = vadd.f32 %v658_v24, %v609_v23  ;;  %v819_v23 = vpack.c.bf16 %v791_v22, %v790_v21 }
  0xdb   : > { %1842 = vperm.xlu1 %5118, %v393_v42   ;;  %v408_v42 = vld [vmem:[%s5843_s9 + $0xf8] sm:$0xff] }
  0xdc   : > { %v688_v28 = vpack.c.bf16 %v5828_v26, %v5826_v25  ;;  %4662 = vmatmul.msk.bf16.vlgmr.msra.gmra.mxu3 %vm842_vm1, %v819_v23  ;;  %v388_v23 = vld [vmem:[%s5843_s9 + $0x58] sm:$0xff] }
  0xde   : > { %4649 = vmatmul.msk.bf16.gmra.mxu0 %vm710_vm0, %v688_v28 }
  0xe0   : > { %v612_v33 = vpop.f32.mrf.mxu0 }
  0xe1   : > { %v661_v34 = vpop.f32.mrf.mxu1 }
  0xe2   : > { %v5845_v37 = vadd.f32 %v661_v34, %v612_v33  ;;  %v389_v33 = vld [vmem:[%s5843_s9 + $0x60] sm:$0xff] }
  0xe3   : > { %v381_v34 = vld [vmem:[%s5843_s9 + $0x20] sm:$0xff]  ;;  %1830 = vperm.xlu0 %5117, %v389_v33   ;;  %1851 = vperm.xlu1 %5118, %v396_v51   ;;  %v400_v51 = vld [vmem:[%s5843_s9 + $0xb8] sm:$0xff] }
  0xe4   : > { %7463 = vst [vmem:[#allocation3_spill] sm:$0xff] %v5845_v37  ;;  %1806 = vperm.xlu2 %5119, %v381_v34   ;;  %v405_v33 = vld [vmem:[%s5843_s9 + $0xe0] sm:$0xff]  ;;  %v404_v34 = vld [vmem:[%s5843_s9 + $0xd8] sm:$0xff] }
  0xe8   : > { %v614_v35 = vpop.f32.mrf.mxu0 }
  0xe9   : > { %v663_v36 = vpop.f32.mrf.mxu1 }
  0xea   : > { %v5847_v38 = vadd.f32 %v663_v36, %v614_v35 }
  0xeb   : > { %1839 = vperm.xlu0 %5117, %v392_v43   ;;  %1860 = vperm.xlu1 %5118, %v399_v10   ;;  %v407_v43 = vld [vmem:[%s5843_s9 + $0xf0] sm:$0xff] }
  0xec   : > { %7464 = vst [vmem:[#allocation4_spill] sm:$0xff] %v5847_v38  ;;  %v689_v40 = vpack.c.bf16 %v5847_v38, %v5845_v37  ;;  %1809 = vperm.xlu2 %5119, %v382_v50  }
  0xee   : > { %4650 = vmatmul.msk.bf16.vlgmr.msra.gmra.mxu2 %vm710_vm0, %v689_v40  ;;  %v792_v40 = vld [vmem:[%s5824_s23 + $0x40] sm:$0xff] }
  0xef   : > { %v820_v44 = vpack.c.bf16 %v793_v41, %v792_v40  ;;  %v394_v41 = vld [vmem:[%s5843_s9 + $0x88] sm:$0xff] }
  0xf0   : > { %v617_v48 = vpop.f32.mrf.mxu0 }
  0xf1   : > { %v666_v49 = vpop.f32.mrf.mxu1  ;;  %4663 = vmatmul.msk.bf16.gmra.mxu3 %vm842_vm1, %v820_v44  ;;  %v397_v44 = vld [vmem:[%s5843_s9 + $0xa0] sm:$0xff] }
  0xf2   : > { %v5859_v3 = vadd.f32 %v666_v49, %v617_v48 }
  0xf4   : > { %7465 = vst [vmem:[#allocation5_spill] sm:$0xff] %v5859_v3  ;;  %1818 = vperm.xlu2 %5119, %v385_v9   ;;  %v5938_v9 = vld [vmem:[%s7446_s7] ss:$0 sm:$0xff] }
  0xf8   : > { %v619_v52 = vpop.f32.mrf.mxu0 }
  0xf9   : > { %v668_v53 = vpop.f32.mrf.mxu1 }
  0xfa   : > { %v5861_v6 = vadd.f32 %v668_v53, %v619_v52  ;;  %v395_v53 = vld [vmem:[%s5843_s9 + $0x90] sm:$0xff] }
  0xfb   : > { %1848 = vperm.xlu0 %5117, %v395_v53   ;;  %v800_v53 = vld [vmem:[%s5824_s23 + $0x80] sm:$0xff] }
  0xfc   : > { %7466 = vst [vmem:[#allocation6_spill] sm:$0xff] %v5861_v6  ;;  %v690_v7 = vpack.c.bf16 %v5861_v6, %v5859_v3  ;;  %1827 = vperm.xlu2 %5119, %v388_v23   ;;  %v802_v23 = vld [vmem:[%s5824_s23 + $0x90] sm:$0xff] }
  0xfe   : > { %4651 = vmatmul.msk.bf16.gmra.mxu2 %vm710_vm0, %v690_v7 }
 0x100   : > { %v622_v15 = vpop.f32.mrf.mxu0 }
 0x101   : > { %v671_v16 = vpop.f32.mrf.mxu1 }
 0x102   : > { %v5876_v28 = vadd.f32 %v671_v16, %v622_v15  ;;  %v795_v15 = vld [vmem:[%s5824_s23 + $0x58] sm:$0xff] }
 0x103   : > { %v821_v16 = vpack.c.bf16 %v795_v15, %v794_v14  ;;  %1857 = vperm.xlu0 %5117, %v398_v13   ;;  %v406_v15 = vld [vmem:[%s5843_s9 + $0xe8] sm:$0xff] }
 0x104   : > { %7467 = vst [vmem:[#allocation7_spill] sm:$0xff] %v5876_v28  ;;  %1836 = vperm.xlu2 %5119, %v391_v31  }
 0x105   : > { %4664 = vmatmul.msk.bf16.gmra.mxu3 %vm842_vm1, %v821_v16  ;;  %v5080_v16 = vld [vmem:[%s7443_s4 + $0x50] sm:$0xff] }
 0x106   : > { %1702 = vmatpush.bf16.msrb.mxu2 %v5080_v16  ;;  %v805_v16 = vld [vmem:[%s5824_s23 + $0xa8] sm:$0xff] }
 0x108   : > { %v624_v24 = vpop.f32.mrf.mxu0 }
 0x109   : > { %v673_v27 = vpop.f32.mrf.mxu1 }
 0x10a   : > { %v5878_v29 = vadd.f32 %v673_v27, %v624_v24  ;;  %v402_v24 = vld [vmem:[%s5843_s9 + $0xc8] sm:$0xff] }
 0x10b   : > { %1869 = vperm.xlu1 %5118, %v402_v24   ;;  %v803_v24 = vld [vmem:[%s5824_s23 + $0x98] sm:$0xff] }
 0x10c   : > { %7468 = vst [vmem:[#allocation8_spill] sm:$0xff] %v5878_v29  ;;  %v691_v30 = vpack.c.bf16 %v5878_v29, %v5876_v28  ;;  %1845 = vperm.xlu2 %5119, %v394_v41   ;;  %v825_v31 = vpack.c.bf16 %v803_v24, %v802_v23  ;;  %v812_v29 = vld [vmem:[%s5824_s23 + $0xe0] sm:$0xff] }
 0x10e   : > { %4652 = vmatmul.msk.bf16.gmra.mxu2 %vm710_vm0, %v691_v30  ;;  %v401_v30 = vld [vmem:[%s5843_s9 + $0xc0] sm:$0xff] }
 0x10f   : > { %1866 = vperm.xlu0 %5117, %v401_v30  }
 0x110   : > { %v627_v35 = vpop.f32.mrf.mxu0 }
 0x111   : > { %v676_v36 = vpop.f32.mrf.mxu1 }
 0x112   : > { %v5891_v48 = vadd.f32 %v676_v36, %v627_v35  ;;  %v796_v35 = vld [vmem:[%s5824_s23 + $0x60] sm:$0xff]  ;;  %v797_v36 = vld [vmem:[%s5824_s23 + $0x68] sm:$0xff] }
 0x113   : > { %1878 = vperm.xlu1 %5118, %v405_v33   ;;  %v822_v40 = vpack.c.bf16 %v797_v36, %v796_v35  ;;  %v5078_v36 = vld [vmem:[%s7443_s4 + $0x40] sm:$0xff] }
 0x114   : > { %7469 = vst [vmem:[#allocation9_spill] sm:$0xff] %v5891_v48  ;;  %1854 = vperm.xlu2 %5119, %v397_v44  }
 0x115   : > { %4665 = vmatmul.msk.bf16.gmra.mxu3 %vm842_vm1, %v822_v40 }
 0x117   : > { %1875 = vperm.xlu0 %5117, %v404_v34   ;;  %v5079_v34 = vld [vmem:[%s7443_s4 + $0x48] sm:$0xff] }
 0x118   : > { %v629_v45 = vpop.f32.mrf.mxu0  ;;  %1703 = vmatpush.bf16.msrb.mxu2 %v5079_v34 }
 0x119   : > { %v678_v46 = vpop.f32.mrf.mxu1 }
 0x11a   : > { %v5893_v49 = vadd.f32 %v678_v46, %v629_v45  ;;  %v798_v45 = vld [vmem:[%s5824_s23 + $0x70] sm:$0xff]  ;;  %v799_v46 = vld [vmem:[%s5824_s23 + $0x78] sm:$0xff] }
 0x11b   : > { %1887 = vperm.xlu1 %5118, %v408_v42   ;;  %v823_v50 = vpack.c.bf16 %v799_v46, %v798_v45 }
 0x11c   : > { %7470 = vst [vmem:[#allocation10_spill] sm:$0xff] %v5893_v49  ;;  %v692_v52 = vpack.c.bf16 %v5893_v49, %v5891_v48  ;;  %1863 = vperm.xlu2 %5119, %v400_v51   ;;  %1704 = vmatpush.bf16.msrb.mxu2 %v5078_v36 }
 0x11e   : > { %4653 = vmatmul.msk.bf16.gmra.mxu2 %vm710_vm0, %v692_v52  ;;  %v403_v52 = vld [vmem:[%s5843_s9 + $0xd0] sm:$0xff] }
 0x11f   : > { %1884 = vperm.xlu0 %5117, %v407_v43  }
 0x120   : > { %v632_v7 = vpop.f32.mrf.mxu0 }
 0x121   : > { %v681_v8 = vpop.f32.mrf.mxu1 }
 0x122   : > { %v5907_v21 = vadd.f32 %v681_v8, %v632_v7  ;;  %v801_v7 = vld [vmem:[%s5824_s23 + $0x88] sm:$0xff] }
 0x123   : > { %v824_v8 = vpack.c.bf16 %v801_v7, %v800_v53 }
 0x124   : > { %7471 = vst [vmem:[#allocation11_spill] sm:$0xff] %v5907_v21  ;;  %1872 = vperm.xlu2 %5119, %v403_v52   ;;  %v5076_v52 = vld [vmem:[%s7443_s4 + $0x30] sm:$0xff] }
 0x125   : > { %4666 = vmatmul.msk.bf16.gmra.mxu3 %vm842_vm1, %v823_v50  ;;  %v5077_v50 = vld [vmem:[%s7443_s4 + $0x38] sm:$0xff] }
 0x126   : > { %1705 = vmatpush.bf16.msrb.mxu2 %v5077_v50 }
 0x128   : > { %v634_v17 = vpop.f32.mrf.mxu0 }
 0x129   : > { %v683_v20 = vpop.f32.mrf.mxu1 }
 0x12a   : > { %v5909_v22 = vadd.f32 %v683_v20, %v634_v17  ;;  %1706 = vmatpush.bf16.msrb.mxu2 %v5076_v52 }
 0x12c   : > { %7472 = vst [vmem:[#allocation12_spill] sm:$0xff] %v5909_v22  ;;  %v693_v27 = vpack.c.bf16 %v5909_v22, %v5907_v21  ;;  %1881 = vperm.xlu2 %5119, %v406_v15   ;;  %v804_v15 = vld [vmem:[%s5824_s23 + $0xa0] sm:$0xff] }
 0x12d   : > { %v826_v23 = vpack.c.bf16 %v805_v16, %v804_v15 }
 0x12e   : > { %4654 = vmatmul.msk.bf16.gmra.mxu2 %vm710_vm0, %v693_v27 }
 0x131   : > { %v900_v10 = vpop.f32.mrf.mxu1 }
 0x132   : > { %v5941_v13 = vadd.f32 %v5938_v9, %v900_v10 }
 0x134   : > { %v4675_v14 = vmul.f32 -1.442695, %v5941_v13 }
 0x135   : > { %4667 = vmatmul.msk.bf16.gmra.mxu3 %vm842_vm1, %v824_v8 }
 0x136   : > { %5168 = vpow2.f32 %v4675_v14 }
 0x139   : > { %v902_v17 = vpop.f32.mrf.mxu1 }
 0x13a   : > { %v5949_v20 = vadd.f32 %v5938_v9, %v902_v17 }
 0x13c   : > { %v5169_v27 = vpop.eup %5168  ;;  %v4676_v30 = vmul.f32 -1.442695, %v5949_v20 }
 0x13d   : > { %v1076_v33 = vadd.f32 1.0, %v5169_v27 }
 0x13e   : > { %5170 = vpow2.f32 %v4676_v30 }
 0x13f   : > { %5172 = vrcp.f32 %v1076_v33  ;;  %vm1113_vm2 = vweird.f32 %v1076_v33  ;;  %v1117_v7 = vand.u32 2147483647, %v1076_v33  ;;  %v1119_v8 = vand.u32 2147483648, %v1076_v33 }
 0x141   : > { %v905_v35 = vpop.f32.mrf.mxu1  ;;  %vm5985_vm5 = vcmp.eq.f32.partialorder %v1117_v7, 8.507059e+37 }
 0x142   : > { %v5962_v40 = vadd.f32 %v5938_v9, %v905_v35  ;;  %v1120_v35 = vor.u32 1.1754944e-38, %v1119_v8 }
 0x144   : > { %v5171_v41 = vpop.eup %5170  ;;  %v4677_v44 = vmul.f32 -1.442695, %v5962_v40 }
 0x145   : > { %4668 = vmatmul.msk.bf16.gmra.mxu3 %vm842_vm1, %v825_v31  ;;  %v5173_v42 = vpop.eup %5172  ;;  %v1077_v43 = vadd.f32 1.0, %v5171_v41 }
 0x146   : > { %v1109_v46 = vmul.f32 %v5173_v42, %v1076_v33  ;;  %vm1114_vm3 = vweird.f32 %v5173_v42 }
 0x147   : > { %5174 = vrcp.f32 %v1077_v43  ;;  %vm5978_vm4 = vmor %vm1113_vm2, %vm1114_vm3  ;;  %vm1128_vm6 = vweird.f32 %v1077_v43  ;;  %v1134_v41 = vand.u32 2147483648, %v1077_v43  ;;  %v1132_v52 = vand.u32 2147483647, %v1077_v43 }
 0x148   : > { %v1110_v51 = vsub.f32 1.0, %v1109_v46  ;;  %5176 = vpow2.f32 %v4677_v44  ;;  %v5075_v46 = vld [vmem:[%s7443_s4 + $0x28] sm:$0xff] }
 0x149   : > { %v907_v10 = vpop.f32.mrf.mxu1  ;;  %1707 = vmatpush.bf16.msrb.mxu2 %v5075_v46  ;;  %v1135_v15 = vor.u32 1.1754944e-38, %v1134_v41  ;;  %vm1133_vm9 = vcmp.eq.f32.partialorder %v1132_v52, 8.507059e+37 }
 0x14a   : > { %v1111_v53 = vmul.f32 %v5173_v42, %v1110_v51  ;;  %v5974_v14 = vadd.f32 %v5938_v9, %v907_v10 }
 0x14c   : > { %v1112_v17 = vadd.f32 %v5173_v42, %v1111_v53  ;;  %v4678_v30 = vmul.f32 -1.442695, %v5974_v14  ;;  %v5074_v53 = vld [vmem:[%s7443_s4 + $0x20] sm:$0xff] }
 0x14d   : > { %v5175_v24 = vpop.eup %5174  ;;  %1708 = vmatpush.bf16.msrb.mxu2 %v5074_v53  ;;  %v806_v53 = vld [vmem:[%s5824_s23 + $0xb0] sm:$0xff] }
 0x14e   : > { %v5177_v31 = vpop.eup %5176  ;;  %v1124_v36 = vmul.f32 %v5175_v24, %v1077_v43  ;;  %5178 = vpow2.f32 %v4678_v30  ;;  %v1116_v50 = vsel %vm5978_vm4, %v5173_v42, %v1112_v17  ;;  %vm1129_vm7 = vweird.f32 %v5175_v24  ;;  %v5073_v43 = vld [vmem:[%s7443_s4 + $0x18] sm:$0xff] }
 0x14f   : > { %v1078_v44 = vadd.f32 1.0, %v5177_v31  ;;  %v1121_v10 = vsel %vm5985_vm5, %v1120_v35, %v1116_v50  ;;  %vm1130_vm8 = vmor %vm1128_vm6, %vm1129_vm7 }
 0x150   : > { %v1125_v51 = vsub.f32 1.0, %v1124_v36  ;;  %v1588_v27 = vmul.f32 %v1121_v10, %v5941_v13 }
 0x151   : > { %5180 = vrcp.f32 %v1078_v44  ;;  %v910_v8 = vpop.f32.mrf.mxu1  ;;  %1709 = vmatpush.bf16.msrb.mxu2 %v5073_v43  ;;  %vm1143_vm10 = vweird.f32 %v1078_v44  ;;  %v1147_v10 = vand.u32 2147483647, %v1078_v44 }
 0x152   : > { %v1126_v7 = vmul.f32 %v5175_v24, %v1125_v51  ;;  %v6002_v16 = vadd.f32 %v5938_v9, %v910_v8  ;;  %v1149_v51 = vand.u32 2147483648, %v1078_v44 }
 0x153   : > { %vm1148_vm13 = vcmp.eq.f32.partialorder %v1147_v10, 8.507059e+37 }
 0x154   : > { %v1127_v42 = vadd.f32 %v5175_v24, %v1126_v7  ;;  %v5179_v17 = vpop.eup %5178  ;;  %v807_v7 = vld [vmem:[%s5824_s23 + $0xb8] sm:$0xff] }
 0x155   : > { %4669 = vmatmul.msk.bf16.gmra.mxu3 %vm842_vm1, %v826_v23  ;;  %v4679_v23 = vmul.f32 -1.442695, %v6002_v16  ;;  %v1079_v36 = vadd.f32 1.0, %v5179_v17 }
 0x156   : > { %v1131_v31 = vsel %vm1130_vm8, %v5175_v24, %v1127_v42 }
 0x157   : > { %v5181_v33 = vpop.eup %5180  ;;  %v1136_v35 = vsel %vm1133_vm9, %v1135_v15, %v1131_v31  ;;  %5182 = vpow2.f32 %v4679_v23  ;;  %v827_v15 = vpack.c.bf16 %v807_v7, %v806_v53  ;;  %v1164_v7 = vand.u32 2147483648, %v1079_v36 }
 0x158   : > { %v1589_v41 = vmul.f32 %v1136_v35, %v5949_v20  ;;  %v1139_v46 = vmul.f32 %v5181_v33, %v1078_v44  ;;  %5184 = vrcp.f32 %v1079_v36  ;;  %vm1144_vm11 = vweird.f32 %v5181_v33 }
 0x159   : > { %v912_v13 = vpop.f32.mrf.mxu1  ;;  %vm6017_vm12 = vmor %vm1143_vm10, %vm1144_vm11  ;;  %v1150_v35 = vor.u32 1.1754944e-38, %v1149_v51  ;;  %vm1158_vm14 = vweird.f32 %v1079_v36  ;;  %v1162_v51 = vand.u32 2147483647, %v1079_v36 }
 0x15a   : > { %v1140_v50 = vsub.f32 1.0, %v1139_v46  ;;  %v1620_v24 = vpack.c.bf16 %v1589_v41, %v1588_v27  ;;  %v6013_v52 = vadd.f32 %v5938_v9, %v912_v13 }
 0x15b   : > { %vm1163_vm3 = vcmp.eq.f32.partialorder %v1162_v51, 8.507059e+37 }
 0x15c   : > { %v1141_v8 = vmul.f32 %v5181_v33, %v1140_v50  ;;  %1710 = vmatmul.bf16.vlgmr.msrb.gmra.mxu2 %v1620_v24  ;;  %v4680_v17 = vmul.f32 -1.442695, %v6013_v52 }
 0x15d   : > { %v5183_v42 = vpop.eup %5182 }
 0x15e   : > { %v5185_v23 = vpop.eup %5184  ;;  %v1142_v27 = vadd.f32 %v5181_v33, %v1141_v8  ;;  %v6024_v43 = vadd.f32 1.0, %v5183_v42  ;;  %5186 = vpow2.f32 %v4680_v17 }
 0x15f   : > { %v1154_v44 = vmul.f32 %v5185_v23, %v1079_v36  ;;  %v915_v46 = vpop.f32.mrf.mxu3  ;;  %vm1159_vm15 = vweird.f32 %v5185_v23 }
 0x160   : > { %v1146_v41 = vsel %vm6017_vm12, %v5181_v33, %v1142_v27  ;;  %5188 = vrcp.f32 %v6024_v43  ;;  %v6031_v13 = vadd.f32 %v5938_v9, %v915_v46  ;;  %vm1160_vm2 = vmor %vm1158_vm14, %vm1159_vm15  ;;  %v1165_v33 = vor.u32 1.1754944e-38, %v1164_v7 }
 0x161   : > { %v1155_v50 = vsub.f32 1.0, %v1154_v44  ;;  %v1151_v24 = vsel %vm1148_vm13, %v1150_v35, %v1146_v41  ;;  %vm1173_vm4 = vweird.f32 %v6024_v43 }
 0x162   : > { %v4681_v8 = vmul.f32 -1.442695, %v6031_v13  ;;  %v1590_v27 = vmul.f32 %v1151_v24, %v5962_v40 }
 0x163   : > { %v1156_v53 = vmul.f32 %v5185_v23, %v1155_v50 }
 0x164   : > { %5190 = vpow2.f32 %v4681_v8 }
 0x165   : > { %4670 = vmatmul.msk.bf16.gmra.mxu3 %vm842_vm1, %v827_v15  ;;  %v5187_v15 = vpop.eup %5186  ;;  %v1157_v42 = vadd.f32 %v5185_v23, %v1156_v53 }
 0x166   : > { %v5189_v10 = vpop.eup %5188  ;;  %v1081_v17 = vadd.f32 1.0, %v5187_v15  ;;  %v809_v15 = vld [vmem:[%s5824_s23 + $0xc8] sm:$0xff] }
 0x167   : > { %v1169_v35 = vmul.f32 %v5189_v10, %v6024_v43  ;;  %v1161_v44 = vsel %vm1160_vm2, %v5185_v23, %v1157_v42  ;;  %v917_v46 = vpop.f32.mrf.mxu3  ;;  %v828_v40 = vpack.c.bf16 %v809_v15, %v808_v32  ;;  %vm1174_vm5 = vweird.f32 %v5189_v10  ;;  %v6048_v42 = vpop.f32.mrf.mxu0 }
 0x168   : > { %5192 = vrcp.f32 %v1081_v17  ;;  %v1166_v41 = vsel %vm1163_vm3, %v1165_v33, %v1161_v44  ;;  %v6040_v53 = vadd.f32 %v5938_v9, %v917_v46  ;;  %v1179_v33 = vand.u32 2147483648, %v6024_v43  ;;  %vm6056_vm6 = vmor %vm1173_vm4, %vm1174_vm5 }
 0x169   : > { %v1170_v36 = vsub.f32 1.0, %v1169_v35  ;;  %v1591_v50 = vmul.f32 %v1166_v41, %v5974_v14  ;;  %v1177_v35 = vand.u32 2147483647, %v6024_v43  ;;  %vm1188_vm8 = vweird.f32 %v1081_v17 }
 0x16a   : > { %v5191_v8 = vpop.eup %5190  ;;  %v4682_v51 = vmul.f32 -1.442695, %v6040_v53  ;;  %v1180_v41 = vor.u32 1.1754944e-38, %v1179_v33 }
 0x16b   : > { %v1171_v7 = vmul.f32 %v5189_v10, %v1170_v36  ;;  %v1621_v54 = vpack.c.bf16 %v1591_v50, %v1590_v27  ;;  %v6046_v23 = vadd.f32 1.0, %v5191_v8  ;;  %vm1178_vm7 = vcmp.eq.f32.partialorder %v1177_v35, 8.507059e+37 }
 0x16c   : > { %5194 = vpow2.f32 %v4682_v51  ;;  %v1192_v8 = vand.u32 2147483647, %v1081_v17 }
 0x16d   : > { %1715 = vmatmul.bf16.gmra.mxu2 %v1621_v54  ;;  %v1172_v27 = vadd.f32 %v5189_v10, %v1171_v7  ;;  %5196 = vrcp.f32 %v6046_v23  ;;  %v1194_v7 = vand.u32 2147483648, %v1081_v17  ;;  %vm1203_vm12 = vweird.f32 %v6046_v23 }
 0x16e   : > { %v5193_v24 = vpop.eup %5192  ;;  %vm1193_vm11 = vcmp.eq.f32.partialorder %v1192_v8, 8.507059e+37  ;;  %v811_v8 = vld [vmem:[%s5824_s23 + $0xd8] sm:$0xff] }
 0x16f   : > { %v1184_v44 = vmul.f32 %v5193_v24, %v1081_v17  ;;  %v1176_v46 = vsel %vm6056_vm6, %v5189_v10, %v1172_v27  ;;  %vm1189_vm9 = vweird.f32 %v5193_v24  ;;  %v1195_v10 = vor.u32 1.1754944e-38, %v1194_v7  ;;  %v6072_v35 = vpop.f32.mrf.mxu0 }
 0x170   : > { %v1181_v33 = vsel %vm1178_vm7, %v1180_v41, %v1176_v46  ;;  %vm1190_vm10 = vmor %vm1188_vm8, %vm1189_vm9 }
 0x171   : > { %v5965_v45 = vpop.f32.mrf.mxu2  ;;  %v1185_v50 = vsub.f32 1.0, %v1184_v44  ;;  %v1592_v32 = vmul.f32 %v1181_v33, %v6002_v16  ;;  %v1207_v16 = vand.u32 2147483647, %v6046_v23 }
 0x172   : > { %v5195_v15 = vpop.eup %5194 }
 0x173   : > { %v5197_v51 = vpop.eup %5196  ;;  %v1186_v21 = vmul.f32 %v5193_v24, %v1185_v50  ;;  %vm1208_vm15 = vcmp.eq.f32.partialorder %v1207_v16, 8.507059e+37 }
 0x174   : > { %v920_v54 = vpop.f32.mrf.mxu3  ;;  %vm1204_vm13 = vweird.f32 %v5197_v51 }
 0x175   : > { %4671 = vmatmul.msk.bf16.gmra.mxu3 %vm842_vm1, %v828_v40  ;;  %v6061_v36 = vadd.f32 %v5938_v9, %v920_v54  ;;  %v6066_v40 = vadd.f32 1.0, %v5195_v15  ;;  %v1199_v54 = vmul.f32 %v5197_v51, %v6046_v23  ;;  %v1187_v27 = vadd.f32 %v5193_v24, %v1186_v21  ;;  %vm6087_vm14 = vmor %vm1203_vm12, %vm1204_vm13 }
 0x176   : > { %v1209_v15 = vand.u32 2147483648, %v6046_v23 }
 0x177   : > { %v4683_v43 = vmul.f32 -1.442695, %v6061_v36  ;;  %v1200_v17 = vsub.f32 1.0, %v1199_v54  ;;  %v1191_v41 = vsel %vm1190_vm10, %v5193_v24, %v1187_v27  ;;  %vm1218_vm2 = vweird.f32 %v6066_v40 }
 0x178   : > { %v1196_v7 = vsel %vm1193_vm11, %v1195_v10, %v1191_v41  ;;  %v1210_v41 = vor.u32 1.1754944e-38, %v1209_v15 }
 0x179   : > { %v5983_v34 = vpop.f32.mrf.mxu2  ;;  %5198 = vpow2.f32 %v4683_v43  ;;  %v1201_v46 = vmul.f32 %v5197_v51, %v1200_v17  ;;  %v1593_v21 = vmul.f32 %v1196_v7, %v6013_v52  ;;  %v810_v43 = vld [vmem:[%s5824_s23 + $0xd0] sm:$0xff] }
 0x17a   : > { %5200 = vrcp.f32 %v6066_v40  ;;  %v829_v49 = vpack.c.bf16 %v811_v8, %v810_v43 }
 0x17b   : > { %v1202_v54 = vadd.f32 %v5197_v51, %v1201_v46  ;;  %v1622_v17 = vpack.c.bf16 %v1593_v21, %v1592_v32 }
 0x17c   : > { %v922_v44 = vpop.f32.mrf.mxu3 }
 0x17d   : > { %v6077_v50 = vadd.f32 %v5938_v9, %v922_v44  ;;  %1720 = vmatmul.bf16.gmra.mxu2 %v1622_v17  ;;  %v1206_v23 = vsel %vm6087_vm14, %v5197_v51, %v1202_v54  ;;  %v1222_v51 = vand.u32 2147483647, %v6066_v40 }
 0x17e   : > { %v1211_v21 = vsel %vm1208_vm15, %v1210_v41, %v1206_v23 }
 0x17f   : > { %v5199_v48 = vpop.eup %5198  ;;  %v4684_v33 = vmul.f32 -1.442695, %v6077_v50  ;;  %v1594_v41 = vmul.f32 %v1211_v21, %v6031_v13  ;;  %vm1223_vm5 = vcmp.eq.f32.partialorder %v1222_v51, 8.507059e+37  ;;  %v813_v13 = vld [vmem:[%s5824_s23 + $0xe8] sm:$0xff] }
 0x180   : > { %v5201_v24 = vpop.eup %5200  ;;  %v6091_v10 = vadd.f32 1.0, %v5199_v48  ;;  %v6100_v48 = vpop.f32.mrf.mxu0 }
 0x181   : > { %v6006_v30 = vpop.f32.mrf.mxu2  ;;  %5202 = vpow2.f32 %v4684_v33  ;;  %v1214_v44 = vmul.f32 %v5201_v24, %v6066_v40  ;;  %vm1219_vm3 = vweird.f32 %v5201_v24 }
 0x182   : > { %5204 = vrcp.f32 %v6091_v10  ;;  %vm1220_vm4 = vmor %vm1218_vm2, %vm1219_vm3  ;;  %vm1233_vm6 = vweird.f32 %v6091_v10 }
 0x183   : > { %v1215_v7 = vsub.f32 1.0, %v1214_v44 }
 0x185   : > { %4672 = vmatmul.msk.bf16.gmra.mxu3 %vm842_vm1, %v829_v49  ;;  %v1216_v43 = vmul.f32 %v5201_v24, %v1215_v7  ;;  %v1224_v49 = vand.u32 2147483648, %v6066_v40 }
 0x187   : > { %v5203_v8 = vpop.eup %5202  ;;  %v1217_v33 = vadd.f32 %v5201_v24, %v1216_v43  ;;  %v1225_v27 = vor.u32 1.1754944e-38, %v1224_v49  ;;  %v1237_v49 = vand.u32 2147483647, %v6091_v10 }
 0x188   : > { %v925_v46 = vpop.f32.mrf.mxu3  ;;  %v5205_v54 = vpop.eup %5204  ;;  %v1085_v16 = vadd.f32 1.0, %v5203_v8 }
 0x189   : > { %v6022_v31 = vpop.f32.mrf.mxu2  ;;  %v6103_v32 = vadd.f32 %v5938_v9, %v925_v46  ;;  %v1229_v44 = vmul.f32 %v5205_v54, %v6091_v10  ;;  %v1221_v23 = vsel %vm1220_vm4, %v5201_v24, %v1217_v33  ;;  %vm1234_vm7 = vweird.f32 %v5205_v54  ;;  %v6119_v24 = vpop.f32.mrf.mxu0 }
 0x18a   : > { %v1226_v7 = vsel %vm1223_vm5, %v1225_v27, %v1221_v23  ;;  %v1239_v33 = vand.u32 2147483648, %v6091_v10  ;;  %v830_v27 = vpack.c.bf16 %v813_v13, %v812_v29  ;;  %vm6123_vm8 = vmor %vm1233_vm6, %vm1234_vm7  ;;  %vm1238_vm9 = vcmp.eq.f32.partialorder %v1237_v49, 8.507059e+37 }
 0x18b   : > { %v4685_v15 = vmul.f32 -1.442695, %v6103_v32  ;;  %v1230_v46 = vsub.f32 1.0, %v1229_v44  ;;  %v1595_v40 = vmul.f32 %v1226_v7, %v6040_v53  ;;  %vm1248_vm10 = vweird.f32 %v1085_v16 }
 0x18c   : > { %v1240_v29 = vor.u32 1.1754944e-38, %v1239_v33  ;;  %v1252_v13 = vand.u32 2147483647, %v1085_v16 }
 0x18d   : > { %5206 = vpow2.f32 %v4685_v15  ;;  %v1231_v8 = vmul.f32 %v5205_v54, %v1230_v46  ;;  %v1623_v15 = vpack.c.bf16 %v1595_v40, %v1594_v41 }
 0x18e   : > { %5208 = vrcp.f32 %v1085_v16  ;;  %vm1253_vm13 = vcmp.eq.f32.partialorder %v1252_v13, 8.507059e+37 }
 0x18f   : > { %v1232_v51 = vadd.f32 %v5205_v54, %v1231_v8  ;;  %1725 = vmatmul.bf16.gmra.mxu2 %v1623_v15 }
 0x190   : > { %v927_v28 = vpop.f32.mrf.mxu3 }
 0x191   : > { %v6034_v20 = vpop.f32.mrf.mxu2  ;;  %v6114_v43 = vadd.f32 %v5938_v9, %v927_v28  ;;  %v1236_v10 = vsel %vm6123_vm8, %v5205_v54, %v1232_v51 }
 0x192   : > { %v1241_v51 = vsel %vm1238_vm9, %v1240_v29, %v1236_v10 }
 0x193   : > { %v5207_v21 = vpop.eup %5206  ;;  %v4686_v53 = vmul.f32 -1.442695, %v6114_v43  ;;  %v1596_v10 = vmul.f32 %v1241_v51, %v6061_v36 }
 0x194   : > { %v5209_v44 = vpop.eup %5208  ;;  %v6127_v28 = vadd.f32 1.0, %v5207_v21  ;;  %v1254_v21 = vand.u32 2147483648, %v1085_v16 }
 0x195   : > { %5210 = vpow2.f32 %v4686_v53  ;;  %4673 = vmatmul.msk.bf16.gmra.mxu3 %vm842_vm1, %v830_v27  ;;  %v1244_v41 = vmul.f32 %v5209_v44, %v1085_v16  ;;  %vm1249_vm11 = vweird.f32 %v5209_v44 }
 0x196   : > { %5212 = vrcp.f32 %v6127_v28  ;;  %vm6138_vm12 = vmor %vm1248_vm10, %vm1249_vm11  ;;  %v1255_v54 = vor.u32 1.1754944e-38, %v1254_v21  ;;  %vm1263_vm14 = vweird.f32 %v6127_v28  ;;  %v1269_v36 = vand.u32 2147483648, %v6127_v28 }
 0x197   : > { %v1245_v40 = vsub.f32 1.0, %v1244_v41  ;;  %v754_v41 = vpop.f32.mrf.mxu0 }
 0x198   : > { %v930_v8 = vpop.f32.mrf.mxu3 }
 0x199   : > { %v6050_v14 = vpop.f32.mrf.mxu2  ;;  %v6134_v53 = vadd.f32 %v5938_v9, %v930_v8  ;;  %v1246_v27 = vmul.f32 %v5209_v44, %v1245_v40  ;;  %v814_v40 = vld [vmem:[%s5824_s23 + $0xf0] sm:$0xff]  ;;  %v815_v8 = vld [vmem:[%s5824_s23 + $0xf8] sm:$0xff] }
 0x19b   : > { %v5211_v49 = vpop.eup %5210  ;;  %v4687_v33 = vmul.f32 -1.442695, %v6134_v53  ;;  %v1247_v23 = vadd.f32 %v5209_v44, %v1246_v27 }
 0x19c   : > { %v5213_v16 = vpop.eup %5212 }
 0x19d   : > { %5214 = vpow2.f32 %v4687_v33  ;;  %vm1264_vm15 = vweird.f32 %v5213_v16 }
 0x19e   : > { %vm6166_vm2 = vmor %vm1263_vm14, %vm1264_vm15 }
 0x1a0   : > { %v932_v27 = vpop.f32.mrf.mxu3 }
 0x1a1   : > { %v6068_v22 = vpop.f32.mrf.mxu2 }
 0x1a9   : > { %v6093_v52 = vpop.f32.mrf.mxu2 }
 0x1b1   : > { %v779_v17 = vpop.f32.mrf.mxu2 }
 0x1b9   : > { %v781_v46 = vpop.f32.mrf.mxu2 }
 0x1ba   : > { %v2008_v7 = vpack.c.bf16 %v781_v46, %v779_v17  ;;  %v2007_v17 = vpack.c.bf16 %v6093_v52, %v6068_v22  ;;  %v6143_v46 = vadd.f32 1.0, %v5211_v49  ;;  %v1259_v22 = vmul.f32 %v5213_v16, %v6127_v28 }
 0x1bb   : > { %v1251_v52 = vsel %vm6138_vm12, %v5209_v44, %v1247_v23  ;;  %v6157_v44 = vadd.f32 %v5938_v9, %v932_v27 }
 0x1bc   : > { %2009 = vmatpush.bf16.msra.mxu0 %v2008_v7  ;;  %v2006_v7 = vpack.c.bf16 %v6050_v14, %v6034_v20  ;;  %5216 = vrcp.f32 %v6143_v46  ;;  %v1256_v29 = vsel %vm1253_vm13, %v1255_v54, %v1251_v52  ;;  %v1260_v13 = vsub.f32 1.0, %v1259_v22  ;;  %v5215_v54 = vpop.eup %5214 }
 0x1bd   : > { %v1597_v21 = vmul.f32 %v1256_v29, %v6077_v50  ;;  %v831_v20 = vpack.c.bf16 %v815_v8, %v814_v40  ;;  %v2005_v14 = vpack.c.bf16 %v6022_v31, %v6006_v30  ;;  %v1267_v50 = vand.u32 2147483647, %v6127_v28  ;;  %v1795_v28 = vpop.permute.xlu0 %1794  ;;  %v935_v40 = vpop.f32.mrf.mxu3 }
 0x1be   : > { %v4688_v51 = vmul.f32 -1.442695, %v6157_v44  ;;  %v6170_v22 = vadd.f32 1.0, %v5215_v54  ;;  %v2004_v31 = vpack.c.bf16 %v5983_v34, %v5965_v45  ;;  %v1270_v52 = vor.u32 1.1754944e-38, %v1269_v36 }
 0x1bf   : > { %v1624_v15 = vpack.c.bf16 %v1597_v21, %v1596_v10  ;;  %4674 = vmatmul.msk.bf16.gmra.mxu3 %vm842_vm1, %v831_v20  ;;  %vm1268_vm3 = vcmp.eq.f32.partialorder %v1267_v50, 8.507059e+37  ;;  %v6180_v8 = vadd.f32 %v5938_v9, %v935_v40  ;;  %v1284_v45 = vand.u32 2147483648, %v6143_v46 }
 0x1c0   : > { %2010 = vmatpush.bf16.msra.mxu0 %v2007_v17  ;;  %v1261_v17 = vmul.f32 %v5213_v16, %v1260_v13  ;;  %5218 = vpow2.f32 %v4688_v51  ;;  %vm1278_vm1 = vweird.f32 %v6143_v46  ;;  %v1282_v36 = vand.u32 2147483647, %v6143_v46 }
 0x1c1   : > { %5220 = vrcp.f32 %v6170_v22  ;;  %1730 = vmatmul.bf16.gmra.mxu2 %v1624_v15  ;;  %v1285_v15 = vor.u32 1.1754944e-38, %v1284_v45  ;;  %v7489_v54 = vlaneseq  ;;  %v2002_v51 = vpack.c.bf16 %v6119_v24, %v6100_v48 }
 0x1c2   : > { %v1262_v49 = vadd.f32 %v5213_v16, %v1261_v17  ;;  %v5217_v33 = vpop.eup %5216  ;;  %v4689_v17 = vmul.f32 -1.442695, %v6180_v8  ;;  %vm1283_vm6 = vcmp.eq.f32.partialorder %v1282_v36, 8.507059e+37  ;;  %vm1293_vm9 = vweird.f32 %v6170_v22 }
 0x1c3   : > { %v1274_v30 = vmul.f32 %v5217_v33, %v6143_v46  ;;  %vm1279_vm4 = vweird.f32 %v5217_v33  ;;  %v1299_v40 = vand.u32 2147483648, %v6170_v22 }
 0x1c4   : > { %2011 = vmatpush.bf16.msra.mxu0 %v2006_v7  ;;  %v756_v7 = vpop.f32.mrf.mxu0  ;;  %v1266_v10 = vsel %vm6166_vm2, %v5213_v16, %v1262_v49  ;;  %vm1280_vm5 = vmor %vm1278_vm1, %vm1279_vm4  ;;  %5222 = vpow2.f32 %v4689_v17 }
 0x1c5   : > { %v1275_v29 = vsub.f32 1.0, %v1274_v30  ;;  %v2003_v21 = vpack.c.bf16 %v756_v7, %v754_v41  ;;  %v1271_v27 = vsel %vm1268_vm3, %v1270_v52, %v1266_v10  ;;  %v6189_v41 = vand.u32 127, %v7489_v54  ;;  %v937_v46 = vpop.f32.mrf.mxu3  ;;  %v1798_v7 = vpop.permute.xlu0 %1797 }
 0x1c6   : > { %v5219_v34 = vpop.eup %5218  ;;  %v1598_v23 = vmul.f32 %v1271_v27, %v6103_v32  ;;  %v7492_v27 = vmov 1.0|1.0   ;;  %v1300_v17 = vor.u32 1.1754944e-38, %v1299_v40 }
 0x1c7   : > { %v1276_v13 = vmul.f32 %v5217_v33, %v1275_v29  ;;  %v5221_v16 = vpop.eup %5220  ;;  %v6198_v29 = vadd.f32 %v5938_v9, %v937_v46  ;;  %vm1889_vm7 = vcmp.eq.s32.totalorder %v6189_v41, %v1795_v28  ;;  %vm1890_vm8 = vcmp.eq.s32.totalorder %v6189_v41, %v1798_v7 }
 0x1c8   : > { %2012 = vmatpush.bf16.msra.mxu0 %v2005_v14  ;;  %v6185_v14 = vadd.f32 1.0, %v5219_v34  ;;  %v1289_v49 = vmul.f32 %v5221_v16, %v6170_v22  ;;  %vm1294_vm10 = vweird.f32 %v5221_v16  ;;  %vm4771_vm11 = vmpackc.low %vm1890_vm8, %vm1889_vm7  ;;  %v1801_v34 = vpop.permute.xlu1 %1800 }
 0x1c9   : > { %v1277_v20 = vadd.f32 %v5217_v33, %v1276_v13  ;;  %v4690_v24 = vmul.f32 -1.442695, %v6198_v29  ;;  %vm6211_vm12 = vmor %vm1293_vm9, %vm1294_vm10 }
 0x1ca   : > { %5224 = vrcp.f32 %v6185_v14  ;;  %v1290_v30 = vsub.f32 1.0, %v1289_v49  ;;  %v5223_v32 = vpop.eup %5222  ;;  %v1314_v54 = vand.u32 2147483648, %v6185_v14  ;;  %vm1308_vm14 = vweird.f32 %v6185_v14 }
 0x1cb   : > { %v1281_v50 = vsel %vm1280_vm5, %v5217_v33, %v1277_v20  ;;  %v2001_v33 = vpack.c.bf16 %v6072_v35, %v6048_v42  ;;  %v6207_v13 = vadd.f32 1.0, %v5223_v32  ;;  %v1297_v42 = vand.u32 2147483647, %v6170_v22 }
 0x1cc   : > { %2013 = vmatpush.bf16.msra.mxu0 %v2004_v31  ;;  %v1286_v31 = vsel %vm1283_vm6, %v1285_v15, %v1281_v50  ;;  %v1291_v10 = vmul.f32 %v5221_v16, %v1290_v30  ;;  %5226 = vpow2.f32 %v4690_v24  ;;  %v1315_v46 = vor.u32 1.1754944e-38, %v1314_v54 }
 0x1cd   : > { %v1599_v52 = vmul.f32 %v1286_v31, %v6114_v43  ;;  %5228 = vrcp.f32 %v6207_v13  ;;  %v940_v20 = vpop.f32.mrf.mxu3  ;;  %vm1298_vm13 = vcmp.eq.f32.partialorder %v1297_v42, 8.507059e+37  ;;  %vm1323_vm1 = vweird.f32 %v6207_v13 }
 0x1ce   : > { %v6220_v22 = vadd.f32 %v5938_v9, %v940_v20  ;;  %vm1891_vm5 = vcmp.eq.s32.totalorder %v6189_v41, %v1801_v34 }
 0x1cf   : > { %v1625_v48 = vpack.c.bf16 %v1599_v52, %v1598_v23 }
 0x1d0   : > { %2014 = vmatpush.bf16.msra.mxu0 %v2003_v21  ;;  %v5225_v43 = vpop.eup %5224  ;;  %v1292_v21 = vadd.f32 %v5221_v16, %v1291_v10  ;;  %v4691_v50 = vmul.f32 -1.442695, %v6220_v22  ;;  %v1804_v42 = vpop.permute.xlu1 %1803 }
 0x1d1   : > { %v1304_v35 = vmul.f32 %v5225_v43, %v6185_v14  ;;  %1735 = vmatmul.bf16.gmra.mxu2 %v1625_v48  ;;  %vm1309_vm15 = vweird.f32 %v5225_v43  ;;  %vm1892_vm6 = vcmp.eq.s32.totalorder %v6189_v41, %v1804_v42 }
 0x1d2   : > { %v1296_v36 = vsel %vm6211_vm12, %v5221_v16, %v1292_v21  ;;  %v5227_v49 = vpop.eup %5226  ;;  %vm1310_vm2 = vmor %vm1308_vm14, %vm1309_vm15  ;;  %v1312_v16 = vand.u32 2147483647, %v6185_v14  ;;  %5230 = vpow2.f32 %v4691_v50  ;;  %v1329_v14 = vand.u32 2147483648, %v6207_v13 }
 0x1d3   : > { %v1305_v45 = vsub.f32 1.0, %v1304_v35  ;;  %v5229_v23 = vpop.eup %5228  ;;  %v1301_v30 = vsel %vm1298_vm13, %v1300_v17, %v1296_v36  ;;  %v1091_v31 = vadd.f32 1.0, %v5227_v49  ;;  %v1327_v17 = vand.u32 2147483647, %v6207_v13  ;;  %vm4773_vm8 = vmpackc.low %vm1892_vm6, %vm1891_vm5  ;;  %v1807_v49 = vpop.permute.xlu2 %1806 }
 0x1d4   : > { %2015 = vmatpush.bf16.msra.mxu0 %v2002_v51  ;;  %v1319_v52 = vmul.f32 %v5229_v23, %v6207_v13  ;;  %v1600_v10 = vmul.f32 %v1301_v30, %v6134_v53  ;;  %vm1313_vm3 = vcmp.eq.f32.partialorder %v1312_v16, 8.507059e+37  ;;  %vm1324_vm4 = vweird.f32 %v5229_v23 }
 0x1d5   : > { %v1306_v15 = vmul.f32 %v5225_v43, %v1305_v45  ;;  %5232 = vrcp.f32 %v1091_v31  ;;  %v942_v48 = vpop.f32.mrf.mxu3  ;;  %vm6240_vm7 = vmor %vm1323_vm1, %vm1324_vm4  ;;  %v1344_v34 = vand.u32 2147483648, %v1091_v31  ;;  %vm1338_vm9 = vweird.f32 %v1091_v31 }
 0x1d6   : > { %v6229_v40 = vadd.f32 %v5938_v9, %v942_v48  ;;  %v1342_v13 = vand.u32 2147483647, %v1091_v31 }
 0x1d7   : > { %v1307_v51 = vadd.f32 %v5225_v43, %v1306_v15  ;;  %v1330_v15 = vor.u32 1.1754944e-38, %v1329_v14 }
 0x1d8   : > { %2016 = vmatpush.bf16.msra.mxu0 %v2001_v33  ;;  %v1320_v33 = vsub.f32 1.0, %v1319_v52  ;;  %v4692_v53 = vmul.f32 -1.442695, %v6229_v40  ;;  %vm1343_vm13 = vcmp.eq.f32.partialorder %v1342_v13, 8.507059e+37 }
 0x1d9   : > { %v1311_v7 = vsel %vm1310_vm2, %v5225_v43, %v1307_v51  ;;  %v5231_v43 = vpop.eup %5230  ;;  %vm1893_vm2 = vcmp.eq.s32.totalorder %v6189_v41, %v1807_v49 }
 0x1da   : > { %v1316_v32 = vsel %vm1313_vm3, %v1315_v46, %v1311_v7  ;;  %v1321_v24 = vmul.f32 %v5229_v23, %v1320_v33  ;;  %v6238_v20 = vadd.f32 1.0, %v5231_v43  ;;  %5234 = vpow2.f32 %v4692_v53 }
 0x1db   : > { %4772 = vmatmul.msk.bf16.vlgmr.msra.gmra.mxu0 %vm4771_vm11, %v7492_v27  ;;  %v1601_v21 = vmul.f32 %v1316_v32, %v6157_v44  ;;  %v5233_v28 = vpop.eup %5232  ;;  %vm1328_vm11 = vcmp.eq.f32.partialorder %v1327_v17, 8.507059e+37  ;;  %v1345_v46 = vor.u32 1.1754944e-38, %v1344_v34 }
 0x1dc   : > { %v1322_v45 = vadd.f32 %v5229_v23, %v1321_v24  ;;  %v1334_v36 = vmul.f32 %v5233_v28, %v1091_v31  ;;  %5236 = vrcp.f32 %v6238_v20  ;;  %vm1339_vm10 = vweird.f32 %v5233_v28 }
 0x1dd   : > { %v1626_v35 = vpack.c.bf16 %v1601_v21, %v1600_v10  ;;  %v945_v51 = vpop.f32.mrf.mxu3  ;;  %vm1340_vm12 = vmor %vm1338_vm9, %vm1339_vm10  ;;  %vm1353_vm14 = vweird.f32 %v6238_v20 }
 0x1de   : > { %v1335_v54 = vsub.f32 1.0, %v1334_v36  ;;  %v1326_v50 = vsel %vm6240_vm7, %v5229_v23, %v1322_v45  ;;  %v6249_v16 = vadd.f32 %v5938_v9, %v945_v51  ;;  %v1810_v45 = vpop.permute.xlu2 %1809 }
 0x1df   : > { %v1331_v7 = vsel %vm1328_vm11, %v1330_v15, %v1326_v50  ;;  %vm1894_vm3 = vcmp.eq.s32.totalorder %v6189_v41, %v1810_v45  ;;  %v1357_v15 = vand.u32 2147483647, %v6238_v20 }
 0x1e0   : > { %v1336_v30 = vmul.f32 %v5233_v28, %v1335_v54  ;;  %v5235_v52 = vpop.eup %5234  ;;  %v4693_v33 = vmul.f32 -1.442695, %v6249_v16  ;;  %v1602_v23 = vmul.f32 %v1331_v7, %v6180_v8  ;;  %vm4775_vm4 = vmpackc.low %vm1894_vm3, %vm1893_vm2 }
 0x1e1   : > { %1740 = vmatmul.bf16.gmra.mxu2 %v1626_v35  ;;  %v1093_v31 = vadd.f32 1.0, %v5235_v52  ;;  %vm1358_vm7 = vcmp.eq.f32.partialorder %v1357_v15, 8.507059e+37  ;;  %v6277_v52 = vld [vmem:[%s7446_s7] ss:$0 sm:$0xff] }
 0x1e2   : > { %v1337_v10 = vadd.f32 %v5233_v28, %v1336_v30  ;;  %v5237_v48 = vpop.eup %5236  ;;  %5238 = vpow2.f32 %v4693_v33 }
 0x1e3   : > { %v1349_v24 = vmul.f32 %v5237_v48, %v6238_v20  ;;  %5240 = vrcp.f32 %v1093_v31  ;;  %vm1354_vm15 = vweird.f32 %v5237_v48  ;;  %v1374_v50 = vand.u32 2147483648, %v1093_v31 }
 0x1e4   : > { %v1341_v32 = vsel %vm1340_vm12, %v5233_v28, %v1337_v10  ;;  %v1359_v28 = vand.u32 2147483648, %v6238_v20  ;;  %vm6266_vm1 = vmor %vm1353_vm14, %vm1354_vm15  ;;  %vm1368_vm5 = vweird.f32 %v1093_v31  ;;  %v1372_v20 = vand.u32 2147483647, %v1093_v31 }
 0x1e5   : > { %v1346_v21 = vsel %vm1343_vm13, %v1345_v46, %v1341_v32  ;;  %v1350_v14 = vsub.f32 1.0, %v1349_v24  ;;  %v947_v43 = vpop.f32.mrf.mxu3  ;;  %v1375_v10 = vor.u32 1.1754944e-38, %v1374_v50 }
 0x1e6   : > { %v1603_v42 = vmul.f32 %v1346_v21, %v6198_v29  ;;  %v6256_v35 = vadd.f32 %v5938_v9, %v947_v43  ;;  %v1360_v13 = vor.u32 1.1754944e-38, %v1359_v28  ;;  %vm1373_vm9 = vcmp.eq.f32.partialorder %v1372_v20, 8.507059e+37 }
 0x1e7   : > { %v1351_v53 = vmul.f32 %v5237_v48, %v1350_v14 }
 0x1e8   : > { %v1627_v17 = vpack.c.bf16 %v1603_v42, %v1602_v23  ;;  %v5239_v44 = vpop.eup %5238  ;;  %v4694_v8 = vmul.f32 -1.442695, %v6256_v35 }
 0x1e9   : > { %v5241_v29 = vpop.eup %5240  ;;  %v1352_v36 = vadd.f32 %v5237_v48, %v1351_v53  ;;  %v6264_v9 = vadd.f32 1.0, %v5239_v44 }
 0x1ea   : > { %v1364_v54 = vmul.f32 %v5241_v29, %v1093_v31  ;;  %5242 = vpow2.f32 %v4694_v8  ;;  %vm1369_vm6 = vweird.f32 %v5241_v29  ;;  %v1816_v8 = vpop.permute.xlu1 %1815 }
 0x1eb   : > { %4774 = vmatmul.msk.bf16.gmra.mxu0 %vm4773_vm8, %v7492_v27  ;;  %5244 = vrcp.f32 %v6264_v9  ;;  %v1356_v51 = vsel %vm6266_vm1, %v5237_v48, %v1352_v36  ;;  %vm1370_vm8 = vmor %vm1368_vm5, %vm1369_vm6  ;;  %v1813_v36 = vpop.permute.xlu0 %1812  ;;  %vm1383_vm10 = vweird.f32 %v6264_v9  ;;  %vm1896_vm12 = vcmp.eq.s32.totalorder %v6189_v41, %v1816_v8 }
 0x1ec   : > { %v1365_v49 = vsub.f32 1.0, %v1364_v54  ;;  %v1361_v32 = vsel %vm1358_vm7, %v1360_v13, %v1356_v51  ;;  %vm1895_vm13 = vcmp.eq.s32.totalorder %v6189_v41, %v1813_v36  ;;  %v1387_v13 = vand.u32 2147483647, %v6264_v9 }
 0x1ed   : > { %v950_v30 = vpop.f32.mrf.mxu3  ;;  %v1604_v14 = vmul.f32 %v1361_v32, %v6220_v22  ;;  %vm4777_vm15 = vmpackc.low %vm1896_vm12, %vm1895_vm13 }
 0x1ee   : > { %v1366_v46 = vmul.f32 %v5241_v29, %v1365_v49  ;;  %v6280_v7 = vadd.f32 %v6277_v52, %v950_v30  ;;  %vm1388_vm1 = vcmp.eq.f32.partialorder %v1387_v13, 8.507059e+37  ;;  %v6317_v13 = vpop.f32.mrf.mxu2 }
 0x1f0   : > { %v5243_v33 = vpop.eup %5242  ;;  %v1367_v24 = vadd.f32 %v5241_v29, %v1366_v46  ;;  %v4695_v31 = vmul.f32 -1.442695, %v6280_v7 }
 0x1f1   : > { %1745 = vmatmul.bf16.gmra.mxu2 %v1627_v17  ;;  %v5245_v48 = vpop.eup %5244  ;;  %v1095_v23 = vadd.f32 1.0, %v5243_v33 }
 0x1f2   : > { %v1371_v21 = vsel %vm1370_vm8, %v5241_v29, %v1367_v24  ;;  %v1379_v42 = vmul.f32 %v5245_v48, %v6264_v9  ;;  %5246 = vpow2.f32 %v4695_v31  ;;  %vm1384_vm11 = vweird.f32 %v5245_v48 }
 0x1f3   : > { %v1376_v43 = vsel %vm1373_vm9, %v1375_v10, %v1371_v21  ;;  %5248 = vrcp.f32 %v1095_v23  ;;  %v1389_v29 = vand.u32 2147483648, %v6264_v9  ;;  %vm6297_vm14 = vmor %vm1383_vm10, %vm1384_vm11  ;;  %v1404_v30 = vand.u32 2147483648, %v1095_v23 }
 0x1f4   : > { %v1605_v53 = vmul.f32 %v1376_v43, %v6229_v40  ;;  %v1380_v45 = vsub.f32 1.0, %v1379_v42  ;;  %vm1398_vm2 = vweird.f32 %v1095_v23  ;;  %v1402_v9 = vand.u32 2147483647, %v1095_v23 }
 0x1f5   : > { %v952_v28 = vpop.f32.mrf.mxu3  ;;  %v1390_v51 = vor.u32 1.1754944e-38, %v1389_v29  ;;  %v1405_v31 = vor.u32 1.1754944e-38, %v1404_v30 }
 0x1f6   : > { %v1381_v17 = vmul.f32 %v5245_v48, %v1380_v45  ;;  %v6287_v44 = vadd.f32 %v6277_v52, %v952_v28  ;;  %v1628_v15 = vpack.c.bf16 %v1605_v53, %v1604_v14  ;;  %vm1403_vm5 = vcmp.eq.f32.partialorder %v1402_v9, 8.507059e+37 }
 0x1f8   : > { %v5247_v34 = vpop.eup %5246  ;;  %v4696_v22 = vmul.f32 -1.442695, %v6287_v44  ;;  %v1382_v54 = vadd.f32 %v5245_v48, %v1381_v17 }
 0x1f9   : > { %v5249_v40 = vpop.eup %5248  ;;  %v6295_v50 = vadd.f32 1.0, %v5247_v34 }
 0x1fa   : > { %v1394_v20 = vmul.f32 %v5249_v40, %v1095_v23  ;;  %5250 = vpow2.f32 %v4696_v22  ;;  %vm1399_vm3 = vweird.f32 %v5249_v40  ;;  %v1386_v10 = vsel %vm6297_vm14, %v5245_v48, %v1382_v54  ;;  %v1819_v54 = vpop.permute.xlu2 %1818 }
 0x1fb   : > { %4776 = vmatmul.msk.bf16.gmra.mxu0 %vm4775_vm4, %v7492_v27  ;;  %5252 = vrcp.f32 %v6295_v50  ;;  %vm1400_vm4 = vmor %vm1398_vm2, %vm1399_vm3  ;;  %v1391_v42 = vsel %vm1388_vm1, %v1390_v51, %v1386_v10  ;;  %vm1413_vm6 = vweird.f32 %v6295_v50  ;;  %vm1897_vm9 = vcmp.eq.s32.totalorder %v6189_v41, %v1819_v54 }
 0x1fc   : > { %v1395_v46 = vsub.f32 1.0, %v1394_v20  ;;  %v1606_v48 = vmul.f32 %v1391_v42, %v6249_v16  ;;  %v1417_v30 = vand.u32 2147483647, %v6295_v50 }
 0x1fd   : > { %v955_v33 = vpop.f32.mrf.mxu3 }
 0x1fe   : > { %v1396_v32 = vmul.f32 %v5249_v40, %v1395_v46  ;;  %v6306_v24 = vadd.f32 %v6277_v52, %v955_v33  ;;  %vm1418_vm14 = vcmp.eq.f32.partialorder %v1417_v30, 8.507059e+37  ;;  %v1825_v30 = vpop.permute.xlu1 %1824 }
 0x200   : > { %v5251_v21 = vpop.eup %5250  ;;  %v1397_v14 = vadd.f32 %v5249_v40, %v1396_v32  ;;  %v4697_v43 = vmul.f32 -1.442695, %v6306_v24 }
 0x201   : > { %1750 = vmatmul.bf16.gmra.mxu2 %v1628_v15  ;;  %v5253_v53 = vpop.eup %5252  ;;  %v1097_v45 = vadd.f32 1.0, %v5251_v21  ;;  %v1822_v15 = vpop.permute.xlu0 %1821 }
 0x202   : > { %v1401_v23 = vsel %vm1400_vm4, %v5249_v40, %v1397_v14  ;;  %v1409_v28 = vmul.f32 %v5253_v53, %v6295_v50  ;;  %5254 = vpow2.f32 %v4697_v43  ;;  %vm1414_vm7 = vweird.f32 %v5253_v53  ;;  %v1828_v9 = vpop.permute.xlu2 %1827 }
 0x203   : > { %v1406_v17 = vsel %vm1403_vm5, %v1405_v31, %v1401_v23  ;;  %5256 = vrcp.f32 %v1097_v45  ;;  %v1419_v40 = vand.u32 2147483648, %v6295_v50  ;;  %vm1898_vm8 = vcmp.eq.s32.totalorder %v6189_v41, %v1822_v15  ;;  %vm6325_vm10 = vmor %vm1413_vm6, %vm1414_vm7 }
 0x204   : > { %v1607_v8 = vmul.f32 %v1406_v17, %v6256_v35  ;;  %v1410_v36 = vsub.f32 1.0, %v1409_v28  ;;  %vm4779_vm11 = vmpackc.low %vm1898_vm8, %vm1897_vm9  ;;  %v1434_v32 = vand.u32 2147483648, %v1097_v45  ;;  %vm1428_vm12 = vweird.f32 %v1097_v45 }
 0x205   : > { %v957_v29 = vpop.f32.mrf.mxu3  ;;  %v1420_v33 = vor.u32 1.1754944e-38, %v1419_v40  ;;  %v1432_v50 = vand.u32 2147483647, %v1097_v45  ;;  %vm1899_vm4 = vcmp.eq.s32.totalorder %v6189_v41, %v1825_v30  ;;  %vm1900_vm5 = vcmp.eq.s32.totalorder %v6189_v41, %v1828_v9 }
 0x206   : > { %v1411_v34 = vmul.f32 %v5253_v53, %v1410_v36  ;;  %v6313_v22 = vadd.f32 %v6277_v52, %v957_v29  ;;  %v1629_v16 = vpack.c.bf16 %v1607_v8, %v1606_v48  ;;  %v1435_v23 = vor.u32 1.1754944e-38, %v1434_v32  ;;  %v6337_v29 = vpop.f32.mrf.mxu2  ;;  %vm4781_vm7 = vmpackc.low %vm1900_vm5, %vm1899_vm4 }
 0x207   : > { %vm1433_vm2 = vcmp.eq.f32.partialorder %v1432_v50, 8.507059e+37 }
 0x208   : > { %v5255_v49 = vpop.eup %5254  ;;  %v4698_v35 = vmul.f32 -1.442695, %v6313_v22  ;;  %v1412_v51 = vadd.f32 %v5253_v53, %v1411_v34 }
 0x209   : > { %v5257_v20 = vpop.eup %5256  ;;  %v6323_v46 = vadd.f32 1.0, %v5255_v49 }
 0x20a   : > { %v1424_v10 = vmul.f32 %v5257_v20, %v1097_v45  ;;  %5258 = vpow2.f32 %v4698_v35  ;;  %vm1429_vm13 = vweird.f32 %v5257_v20  ;;  %v1416_v21 = vsel %vm6325_vm10, %v5253_v53, %v1412_v51 }
 0x20b   : > { %4778 = vmatmul.msk.bf16.gmra.mxu0 %vm4777_vm15, %v7492_v27  ;;  %5260 = vrcp.f32 %v6323_v46  ;;  %vm1430_vm15 = vmor %vm1428_vm12, %vm1429_vm13  ;;  %v1421_v48 = vsel %vm1418_vm14, %v1420_v33, %v1416_v21  ;;  %vm1443_vm3 = vweird.f32 %v6323_v46 }
 0x20c   : > { %v1425_v31 = vsub.f32 1.0, %v1424_v10  ;;  %v1608_v34 = vmul.f32 %v1421_v48, %v6280_v7 }
 0x20d   : > { %v960_v42 = vpop.f32.mrf.mxu3 }
 0x20e   : > { %v1426_v14 = vmul.f32 %v5257_v20, %v1425_v31  ;;  %v6334_v43 = vadd.f32 %v6277_v52, %v960_v42  ;;  %v1447_v31 = vand.u32 2147483647, %v6323_v46 }
 0x210   : > { %v5259_v28 = vpop.eup %5258  ;;  %v1427_v17 = vadd.f32 %v5257_v20, %v1426_v14  ;;  %v4699_v8 = vmul.f32 -1.442695, %v6334_v43  ;;  %vm1448_vm10 = vcmp.eq.f32.partialorder %v1447_v31, 8.507059e+37 }
 0x211   : > { %1755 = vmatmul.bf16.gmra.mxu2 %v1629_v16  ;;  %v5261_v36 = vpop.eup %5260  ;;  %v1099_v45 = vadd.f32 1.0, %v5259_v28  ;;  %v6357_v28 = vpop.f32.mrf.mxu2 }
 0x212   : > { %v1431_v15 = vsel %vm1430_vm15, %v5257_v20, %v1427_v17  ;;  %v1439_v53 = vmul.f32 %v5261_v36, %v6323_v46  ;;  %5262 = vpow2.f32 %v4699_v8  ;;  %vm1444_vm1 = vweird.f32 %v5261_v36 }
 0x213   : > { %v1436_v54 = vsel %vm1433_vm2, %v1435_v23, %v1431_v15  ;;  %5264 = vrcp.f32 %v1099_v45  ;;  %v1449_v20 = vand.u32 2147483648, %v6323_v46  ;;  %vm6353_vm6 = vmor %vm1443_vm3, %vm1444_vm1  ;;  %v1464_v23 = vand.u32 2147483648, %v1099_v45 }
 0x214   : > { %v1609_v40 = vmul.f32 %v1436_v54, %v6287_v44  ;;  %v1440_v16 = vsub.f32 1.0, %v1439_v53  ;;  %vm1458_vm8 = vweird.f32 %v1099_v45  ;;  %v1462_v46 = vand.u32 2147483647, %v1099_v45 }
 0x215   : > { %v962_v49 = vpop.f32.mrf.mxu3  ;;  %v1450_v14 = vor.u32 1.1754944e-38, %v1449_v20 }
 0x216   : > { %v1441_v35 = vmul.f32 %v5261_v36, %v1440_v16  ;;  %v6343_v51 = vadd.f32 %v6277_v52, %v962_v49  ;;  %v1630_v10 = vpack.c.bf16 %v1609_v40, %v1608_v34  ;;  %v1465_v34 = vor.u32 1.1754944e-38, %v1464_v23 }
 0x217   : > { %vm1463_vm12 = vcmp.eq.f32.partialorder %v1462_v46, 8.507059e+37 }
 0x218   : > { %v5263_v33 = vpop.eup %5262  ;;  %v4700_v7 = vmul.f32 -1.442695, %v6343_v51  ;;  %v1442_v32 = vadd.f32 %v5261_v36, %v1441_v35 }
 0x219   : > { %v5265_v44 = vpop.eup %5264  ;;  %v6351_v50 = vadd.f32 1.0, %v5263_v33 }
 0x21a   : > { %v1454_v42 = vmul.f32 %v5265_v44, %v1099_v45  ;;  %5266 = vpow2.f32 %v4700_v7  ;;  %vm1459_vm9 = vweird.f32 %v5265_v44  ;;  %v1446_v17 = vsel %vm6353_vm6, %v5261_v36, %v1442_v32  ;;  %v6370_v7 = vpop.f32.mrf.mxu2 }
 0x21b   : > { %4780 = vmatmul.msk.bf16.gmra.mxu0 %vm4779_vm11, %v7492_v27  ;;  %5268 = vrcp.f32 %v6351_v50  ;;  %vm1460_vm11 = vmor %vm1458_vm8, %vm1459_vm9  ;;  %v1451_v40 = vsel %vm1448_vm10, %v1450_v14, %v1446_v17  ;;  %v1831_v14 = vpop.permute.xlu0 %1830  ;;  %vm1473_vm13 = vweird.f32 %v6351_v50  ;;  %v1477_v17 = vand.u32 2147483647, %v6351_v50 }
 0x21c   : > { %v1455_v48 = vsub.f32 1.0, %v1454_v42  ;;  %v1610_v36 = vmul.f32 %v1451_v40, %v6306_v24  ;;  %v1834_v42 = vpop.permute.xlu1 %1833  ;;  %vm1901_vm2 = vcmp.eq.s32.totalorder %v6189_v41, %v1831_v14 }
 0x21d   : > { %v965_v8 = vpop.f32.mrf.mxu3  ;;  %vm1902_vm15 = vcmp.eq.s32.totalorder %v6189_v41, %v1834_v42  ;;  %vm1478_vm6 = vcmp.eq.f32.partialorder %v1477_v17, 8.507059e+37 }
 0x21e   : > { %v1456_v15 = vmul.f32 %v5265_v44, %v1455_v48  ;;  %v6364_v53 = vadd.f32 %v6277_v52, %v965_v8  ;;  %vm4783_vm1 = vmpackc.low %vm1902_vm15, %vm1901_vm2 }
 0x220   : > { %v5267_v54 = vpop.eup %5266  ;;  %v1457_v16 = vadd.f32 %v5265_v44, %v1456_v15  ;;  %v4701_v49 = vmul.f32 -1.442695, %v6364_v53 }
 0x221   : > { %1760 = vmatmul.bf16.gmra.mxu2 %v1630_v10  ;;  %v5269_v35 = vpop.eup %5268  ;;  %v1101_v30 = vadd.f32 1.0, %v5267_v54 }
 0x222   : > { %v1461_v45 = vsel %vm1460_vm11, %v5265_v44, %v1457_v16  ;;  %v1469_v9 = vmul.f32 %v5269_v35, %v6351_v50  ;;  %5270 = vpow2.f32 %v4701_v49  ;;  %vm1474_vm14 = vweird.f32 %v5269_v35 }
 0x223   : > { %v1466_v20 = vsel %vm1463_vm12, %v1465_v34, %v1461_v45  ;;  %5272 = vrcp.f32 %v1101_v30  ;;  %v1479_v44 = vand.u32 2147483648, %v6351_v50  ;;  %vm6383_vm3 = vmor %vm1473_vm13, %vm1474_vm14  ;;  %v1494_v40 = vand.u32 2147483648, %v1101_v30 }
 0x224   : > { %v1611_v10 = vmul.f32 %v1466_v20, %v6313_v22  ;;  %v1470_v33 = vsub.f32 1.0, %v1469_v9  ;;  %vm1488_vm4 = vweird.f32 %v1101_v30  ;;  %v1492_v50 = vand.u32 2147483647, %v1101_v30 }
 0x225   : > { %v967_v32 = vpop.f32.mrf.mxu3  ;;  %v1480_v54 = vor.u32 1.1754944e-38, %v1479_v44  ;;  %v1495_v20 = vor.u32 1.1754944e-38, %v1494_v40  ;;  %v1837_v40 = vpop.permute.xlu2 %1836 }
 0x226   : > { %v1471_v31 = vmul.f32 %v5269_v35, %v1470_v33  ;;  %v6373_v21 = vadd.f32 %v6277_v52, %v967_v32  ;;  %v1631_v24 = vpack.c.bf16 %v1611_v10, %v1610_v36  ;;  %v6394_v10 = vpop.f32.mrf.mxu2  ;;  %vm1493_vm8 = vcmp.eq.f32.partialorder %v1492_v50, 8.507059e+37 }
 0x227   : > { %vm1903_vm12 = vcmp.eq.s32.totalorder %v6189_v41, %v1837_v40 }
 0x228   : > { %v5271_v23 = vpop.eup %5270  ;;  %v4702_v22 = vmul.f32 -1.442695, %v6373_v21  ;;  %v1472_v46 = vadd.f32 %v5269_v35, %v1471_v31 }
 0x229   : > { %v5273_v48 = vpop.eup %5272  ;;  %v6381_v8 = vadd.f32 1.0, %v5271_v23 }
 0x22a   : > { %v1484_v34 = vmul.f32 %v5273_v48, %v1101_v30  ;;  %5274 = vpow2.f32 %v4702_v22  ;;  %vm1489_vm5 = vweird.f32 %v5273_v48  ;;  %v1476_v49 = vsel %vm6383_vm3, %v5269_v35, %v1472_v46 }
 0x22b   : > { %4782 = vmatmul.msk.bf16.gmra.mxu0 %vm4781_vm7, %v7492_v27  ;;  %5276 = vrcp.f32 %v6381_v8  ;;  %vm1490_vm7 = vmor %vm1488_vm4, %vm1489_vm5  ;;  %v1481_v32 = vsel %vm1478_vm6, %v1480_v54, %v1476_v49  ;;  %v1840_v54 = vpop.permute.xlu0 %1839  ;;  %vm1503_vm9 = vweird.f32 %v6381_v8 }
 0x22c   : > { %v1485_v16 = vsub.f32 1.0, %v1484_v34  ;;  %vm1904_vm11 = vcmp.eq.s32.totalorder %v6189_v41, %v1840_v54 }
 0x22d   : > { %v970_v45 = vpop.f32.mrf.mxu3  ;;  %vm4785_vm14 = vmpackc.low %vm1904_vm11, %vm1903_vm12 }
 0x22e   : > { %v1486_v9 = vmul.f32 %v5273_v48, %v1485_v16  ;;  %v6392_v36 = vadd.f32 %v6277_v52, %v970_v45  ;;  %v1507_v45 = vand.u32 2147483647, %v6381_v8 }
 0x230   : > { %v5275_v33 = vpop.eup %5274  ;;  %v1487_v31 = vadd.f32 %v5273_v48, %v1486_v9  ;;  %v4703_v42 = vmul.f32 -1.442695, %v6392_v36  ;;  %v6409_v9 = vpop.f32.mrf.mxu2  ;;  %vm1508_vm3 = vcmp.eq.f32.partialorder %v1507_v45, 8.507059e+37  ;;  %v6432_v45 = vld [vmem:[%s7446_s7 + $0x1] ss:$0 sm:$0xff] }
 0x231   : > { %1765 = vmatmul.bf16.gmra.mxu2 %v1631_v24  ;;  %v5277_v30 = vpop.eup %5276  ;;  %v1103_v14 = vadd.f32 1.0, %v5275_v33  ;;  %v1612_v24 = vmul.f32 %v1481_v32, %v6334_v43 }
 0x232   : > { %v1491_v44 = vsel %vm1490_vm7, %v5273_v48, %v1487_v31  ;;  %v1499_v35 = vmul.f32 %v5277_v30, %v6381_v8  ;;  %5278 = vpow2.f32 %v4703_v42  ;;  %vm1504_vm10 = vweird.f32 %v5277_v30 }
 0x233   : > { %v1496_v23 = vsel %vm1493_vm8, %v1495_v20, %v1491_v44  ;;  %5280 = vrcp.f32 %v1103_v14  ;;  %v1509_v48 = vand.u32 2147483648, %v6381_v8  ;;  %vm6413_vm13 = vmor %vm1503_vm9, %vm1504_vm10  ;;  %v1524_v42 = vand.u32 2147483648, %v1103_v14 }
 0x234   : > { %v1613_v22 = vmul.f32 %v1496_v23, %v6343_v51  ;;  %v1500_v46 = vsub.f32 1.0, %v1499_v35  ;;  %vm1518_vm15 = vweird.f32 %v1103_v14  ;;  %v1522_v8 = vand.u32 2147483647, %v1103_v14 }
 0x235   : > { %v972_v17 = vpop.f32.mrf.mxu3  ;;  %v1510_v31 = vor.u32 1.1754944e-38, %v1509_v48 }
 0x236   : > { %v1501_v15 = vmul.f32 %v5277_v30, %v1500_v46  ;;  %v6401_v34 = vadd.f32 %v6277_v52, %v972_v17  ;;  %v1632_v16 = vpack.c.bf16 %v1613_v22, %v1612_v24  ;;  %v1525_v46 = vor.u32 1.1754944e-38, %v1524_v42 }
 0x237   : > { %vm1523_vm4 = vcmp.eq.f32.partialorder %v1522_v8, 8.507059e+37  ;;  %v1846_v8 = vpop.permute.xlu2 %1845 }
 0x238   : > { %v5279_v50 = vpop.eup %5278  ;;  %v4704_v43 = vmul.f32 -1.442695, %v6401_v34  ;;  %v1502_v49 = vadd.f32 %v5277_v30, %v1501_v15  ;;  %vm1906_vm8 = vcmp.eq.s32.totalorder %v6189_v41, %v1846_v8 }
 0x239   : > { %v5281_v51 = vpop.eup %5280  ;;  %v6411_v20 = vadd.f32 1.0, %v5279_v50 }
 0x23a   : > { %v1514_v32 = vmul.f32 %v5281_v51, %v1103_v14  ;;  %5282 = vpow2.f32 %v4704_v43  ;;  %vm1519_vm2 = vweird.f32 %v5281_v51  ;;  %v1506_v35 = vsel %vm6413_vm13, %v5277_v30, %v1502_v49  ;;  %v6427_v49 = vpop.f32.mrf.mxu2 }
 0x23b   : > { %4784 = vmatmul.msk.bf16.gmra.mxu0 %vm4783_vm1, %v7492_v27  ;;  %5284 = vrcp.f32 %v6411_v20  ;;  %vm1520_vm1 = vmor %vm1518_vm15, %vm1519_vm2  ;;  %v1511_v15 = vsel %vm1508_vm3, %v1510_v31, %v1506_v35  ;;  %vm1533_vm5 = vweird.f32 %v6411_v20 }
 0x23c   : > { %v1515_v44 = vsub.f32 1.0, %v1514_v32  ;;  %v1614_v30 = vmul.f32 %v1511_v15, %v6364_v53  ;;  %v1539_v53 = vand.u32 2147483648, %v6411_v20  ;;  %v1537_v15 = vand.u32 2147483647, %v6411_v20 }
 0x23e   : > { %v1516_v23 = vmul.f32 %v5281_v51, %v1515_v44  ;;  %v1843_v44 = vpop.permute.xlu1 %1842  ;;  %vm1538_vm13 = vcmp.eq.f32.partialorder %v1537_v15, 8.507059e+37 }
 0x23f   : > { %vm1905_vm7 = vcmp.eq.s32.totalorder %v6189_v41, %v1843_v44  ;;  %v1714_v44 = vadd.f32 %v6432_v45, %v6337_v29 }
 0x240   : > { %v5283_v17 = vpop.eup %5282  ;;  %v1517_v54 = vadd.f32 %v5281_v51, %v1516_v23  ;;  %vm4787_vm10 = vmpackc.low %vm1906_vm8, %vm1905_vm7 }
 0x241   : > { %1770 = vmatmul.bf16.gmra.mxu2 %v1632_v16  ;;  %v5285_v48 = vpop.eup %5284  ;;  %v1105_v16 = vadd.f32 1.0, %v5283_v17 }
 0x242   : > { %v975_v24 = vpop.f32.mrf.mxu3  ;;  %v1521_v14 = vsel %vm1520_vm1, %v5281_v51, %v1517_v54  ;;  %v1529_v50 = vmul.f32 %v5285_v48, %v6411_v20  ;;  %vm1534_vm6 = vweird.f32 %v5285_v48 }
 0x243   : > { %v6422_v22 = vadd.f32 %v6277_v52, %v975_v24  ;;  %v1526_v43 = vsel %vm1523_vm4, %v1525_v46, %v1521_v14  ;;  %vm6450_vm9 = vmor %vm1533_vm5, %vm1534_vm6  ;;  %vm1548_vm11 = vweird.f32 %v1105_v16 }
 0x244   : > { %v1615_v33 = vmul.f32 %v1526_v43, %v6373_v21  ;;  %v1530_v32 = vsub.f32 1.0, %v1529_v50  ;;  %v1712_v21 = vadd.f32 %v6432_v45, %v6317_v13  ;;  %v1554_v13 = vand.u32 2147483648, %v1105_v16 }
 0x245   : > { %v4705_v40 = vmul.f32 -1.442695, %v6422_v22 }
 0x246   : > { %v1531_v42 = vmul.f32 %v5285_v48, %v1530_v32  ;;  %v1633_v35 = vpack.c.bf16 %v1615_v33, %v1614_v30  ;;  %v1540_v30 = vor.u32 1.1754944e-38, %v1539_v53  ;;  %v1552_v33 = vand.u32 2147483647, %v1105_v16  ;;  %v6457_v32 = vpop.f32.mrf.mxu2 }
 0x247   : > { %5286 = vpow2.f32 %v4705_v40 }
 0x248   : > { %5288 = vrcp.f32 %v1105_v16  ;;  %v1532_v17 = vadd.f32 %v5285_v48, %v1531_v42  ;;  %v1555_v42 = vor.u32 1.1754944e-38, %v1554_v13  ;;  %vm1553_vm15 = vcmp.eq.f32.partialorder %v1552_v33, 8.507059e+37  ;;  %v1849_v13 = vpop.permute.xlu0 %1848 }
 0x249   : > { %vm1907_vm3 = vcmp.eq.s32.totalorder %v6189_v41, %v1849_v13 }
 0x24a   : > { %v977_v31 = vpop.f32.mrf.mxu3  ;;  %v1536_v20 = vsel %vm6450_vm9, %v5285_v48, %v1532_v17 }
 0x24b   : > { %4786 = vmatmul.msk.bf16.gmra.mxu0 %vm4785_vm14, %v7492_v27  ;;  %v6436_v51 = vadd.f32 %v6277_v52, %v977_v31  ;;  %v1541_v8 = vsel %vm1538_vm13, %v1540_v30, %v1536_v20  ;;  %v1852_v30 = vpop.permute.xlu1 %1851 }
 0x24c   : > { %v1616_v48 = vmul.f32 %v1541_v8, %v6392_v36  ;;  %vm1908_vm2 = vcmp.eq.s32.totalorder %v6189_v41, %v1852_v30  ;;  %v1717_v36 = vadd.f32 %v6432_v45, %v6357_v28 }
 0x24d   : > { %v5287_v24 = vpop.eup %5286  ;;  %v4706_v23 = vmul.f32 -1.442695, %v6436_v51  ;;  %vm4789_vm5 = vmpackc.low %vm1908_vm2, %vm1907_vm3 }
 0x24e   : > { %v5289_v52 = vpop.eup %5288  ;;  %v1106_v54 = vadd.f32 1.0, %v5287_v24 }
 0x24f   : > { %v1544_v50 = vmul.f32 %v5289_v52, %v1105_v16  ;;  %vm1549_vm12 = vweird.f32 %v5289_v52 }
 0x250   : > { %5290 = vrcp.f32 %v1106_v54  ;;  %vm1550_vm14 = vmor %vm1548_vm11, %vm1549_vm12  ;;  %vm1563_vm1 = vweird.f32 %v1106_v54 }
 0x251   : > { %1775 = vmatmul.bf16.gmra.mxu2 %v1633_v35  ;;  %v1545_v43 = vsub.f32 1.0, %v1544_v50  ;;  %5292 = vpow2.f32 %v4706_v23 }
 0x253   : > { %v1546_v31 = vmul.f32 %v5289_v52, %v1545_v43 }
 0x255   : > { %v1547_v53 = vadd.f32 %v5289_v52, %v1546_v31  ;;  %v1567_v31 = vand.u32 2147483647, %v1106_v54 }
 0x256   : > { %v5291_v35 = vpop.eup %5290 }
 0x257   : > { %v1551_v23 = vsel %vm1550_vm14, %v5289_v52, %v1547_v53  ;;  %v6469_v52 = vpop.f32.mrf.mxu2  ;;  %vm1564_vm4 = vweird.f32 %v5291_v35  ;;  %vm1568_vm7 = vcmp.eq.f32.partialorder %v1567_v31, 8.507059e+37  ;;  %v1855_v31 = vpop.permute.xlu2 %1854 }
 0x258   : > { %v2018_v46 = vpop.f32.mrf.mxu0  ;;  %v1556_v17 = vsel %vm1553_vm15, %v1555_v42, %v1551_v23  ;;  %vm1565_vm6 = vmor %vm1563_vm1, %vm1564_vm4  ;;  %vm1909_vm13 = vcmp.eq.s32.totalorder %v6189_v41, %v1855_v31 }
 0x259   : > { %v6446_v40 = vmul.f32 %v2018_v46, %v1712_v21  ;;  %v5293_v21 = vpop.eup %5292  ;;  %v1559_v46 = vmul.f32 %v5291_v35, %v1106_v54  ;;  %v1617_v50 = vmul.f32 %v1556_v17, %v6401_v34  ;;  %v1569_v34 = vand.u32 2147483648, %v1106_v54 }
 0x25a   : > { %v1107_v15 = vadd.f32 1.0, %v5293_v21  ;;  %v1719_v54 = vadd.f32 %v6432_v45, %v6370_v7 }
 0x25b   : > { %4788 = vmatmul.msk.bf16.gmra.mxu0 %vm4787_vm10, %v7492_v27  ;;  %v1560_v29 = vsub.f32 1.0, %v1559_v46  ;;  %v1634_v33 = vpack.c.bf16 %v1617_v50, %v1616_v48 }
 0x25c   : > { %5294 = vrcp.f32 %v1107_v15  ;;  %vm1578_vm8 = vweird.f32 %v1107_v15  ;;  %v1584_v21 = vand.u32 2147483648, %v1107_v15  ;;  %v1582_v46 = vand.u32 2147483647, %v1107_v15 }
 0x25d   : > { %v1561_v43 = vmul.f32 %v5291_v35, %v1560_v29 }
 0x25e   : > { %v1585_v30 = vor.u32 1.1754944e-38, %v1584_v21  ;;  %vm1583_vm11 = vcmp.eq.f32.partialorder %v1582_v46, 8.507059e+37 }
 0x25f   : > { %v6478_v29 = vpop.f32.mrf.mxu2  ;;  %v1864_v46 = vpop.permute.xlu2 %1863 }
 0x260   : > { %v2020_v24 = vpop.f32.mrf.mxu0  ;;  %vm1912_vm2 = vcmp.eq.s32.totalorder %v6189_v41, %v1864_v46 }
 0x261   : > { %v6461_v16 = vmul.f32 %v2020_v24, %v1714_v44  ;;  %v1562_v44 = vadd.f32 %v5291_v35, %v1561_v43  ;;  %1780 = vmatmul.bf16.gmra.mxu2 %v1634_v33  ;;  %v1570_v24 = vor.u32 1.1754944e-38, %v1569_v34  ;;  %v1722_v34 = vadd.f32 %v6432_v45, %v6394_v10 }
 0x262   : > { %v5295_v8 = vpop.eup %5294 }
 0x263   : > { %v1574_v53 = vmul.f32 %v5295_v8, %v1107_v15  ;;  %v1566_v28 = vsel %vm1565_vm6, %v5291_v35, %v1562_v44  ;;  %vm1579_vm9 = vweird.f32 %v5295_v8 }
 0x264   : > { %v1571_v17 = vsel %vm1568_vm7, %v1570_v24, %v1566_v28  ;;  %vm1580_vm10 = vmor %vm1578_vm8, %vm1579_vm9 }
 0x265   : > { %v1575_v23 = vsub.f32 1.0, %v1574_v53  ;;  %v1618_v33 = vmul.f32 %v1571_v17, %v6422_v22 }
 0x267   : > { %v1576_v48 = vmul.f32 %v5295_v8, %v1575_v23  ;;  %v6492_v22 = vpop.f32.mrf.mxu2  ;;  %v1861_v23 = vpop.permute.xlu1 %1860 }
 0x268   : > { %v2023_v20 = vpop.f32.mrf.mxu0  ;;  %vm1911_vm15 = vcmp.eq.s32.totalorder %v6189_v41, %v1861_v23 }
 0x269   : > { %v6473_v42 = vmul.f32 %v2023_v20, %v1717_v36  ;;  %v1577_v43 = vadd.f32 %v5295_v8, %v1576_v48  ;;  %v1858_v20 = vpop.permute.xlu0 %1857  ;;  %vm4793_vm3 = vmpackc.low %vm1912_vm2, %vm1911_vm15 }
 0x26a   : > { %vm1910_vm12 = vcmp.eq.s32.totalorder %v6189_v41, %v1858_v20 }
 0x26b   : > { %4790 = vmatmul.msk.bf16.gmra.mxu0 %vm4789_vm5, %v7492_v27  ;;  %v1581_v15 = vsel %vm1580_vm10, %v5295_v8, %v1577_v43  ;;  %vm4791_vm14 = vmpackc.low %vm1910_vm12, %vm1909_vm13 }
 0x26c   : > { %v1586_v36 = vsel %vm1583_vm11, %v1585_v30, %v1581_v15 }
 0x26d   : > { %v1619_v7 = vmul.f32 %v1586_v36, %v6436_v51  ;;  %v1724_v51 = vadd.f32 %v6432_v45, %v6409_v9 }
 0x26f   : > { %v1635_v44 = vpack.c.bf16 %v1619_v7, %v1618_v33  ;;  %v6501_v10 = vpop.f32.mrf.mxu2  ;;  %v1870_v15 = vpop.permute.xlu1 %1869 }
 0x270   : > { %v2025_v50 = vpop.f32.mrf.mxu0  ;;  %vm1914_vm1 = vcmp.eq.s32.totalorder %v6189_v41, %v1870_v15 }
 0x271   : > { %v6480_v13 = vmul.f32 %v2025_v50, %v1719_v54  ;;  %1785 = vmatmul.bf16.gmra.mxu2 %v1635_v44  ;;  %v1727_v54 = vadd.f32 %v6432_v45, %v6427_v49  ;;  %v1729_v50 = vadd.f32 %v6432_v45, %v6457_v32  ;;  %v1867_v36 = vpop.permute.xlu0 %1866  ;;  %v1732_v49 = vadd.f32 %v6432_v45, %v6469_v52  ;;  %v1873_v44 = vpop.permute.xlu2 %1872 }
 0x272   : > { %vm1913_vm4 = vcmp.eq.s32.totalorder %v6189_v41, %v1867_v36  ;;  %vm1915_vm7 = vcmp.eq.s32.totalorder %v6189_v41, %v1873_v44 }
 0x273   : > { %vm4795_vm5 = vmpackc.low %vm1914_vm1, %vm1913_vm4 }
 0x277   : > { %v1741_v9 = vpop.f32.mrf.mxu2  ;;  %v1879_v46 = vpop.permute.xlu1 %1878 }
 0x278   : > { %v2028_v53 = vpop.f32.mrf.mxu0  ;;  %vm1917_vm9 = vcmp.eq.s32.totalorder %v6189_v41, %v1879_v46  ;;  %v1742_v28 = vadd.f32 %v6432_v45, %v1741_v9  ;;  %v1734_v9 = vadd.f32 %v6432_v45, %v6478_v29 }
 0x279   : > { %v6490_v24 = vmul.f32 %v2028_v53, %v1722_v34  ;;  %v1876_v53 = vpop.permute.xlu0 %1875  ;;  %v1882_v23 = vpop.permute.xlu2 %1881 }
 0x27a   : > { %vm1916_vm6 = vcmp.eq.s32.totalorder %v6189_v41, %v1876_v53  ;;  %vm1918_vm10 = vcmp.eq.s32.totalorder %v6189_v41, %v1882_v23 }
 0x27b   : > { %4792 = vmatmul.msk.bf16.gmra.mxu0 %vm4791_vm14, %v7492_v27  ;;  %vm4797_vm8 = vmpackc.low %vm1916_vm6, %vm1915_vm7 }
 0x27c   : > { %vm4799_vm11 = vmpackc.low %vm1918_vm10, %vm1917_vm9 }
 0x27f   : > { %v1743_v7 = vpop.f32.mrf.mxu2  ;;  %v1888_v15 = vpop.permute.xlu1 %1887 }
 0x280   : > { %v2030_v8 = vpop.f32.mrf.mxu0  ;;  %vm1920_vm12 = vcmp.eq.s32.totalorder %v6189_v41, %v1888_v15  ;;  %v1744_v46 = vadd.f32 %v6432_v45, %v1743_v7 }
 0x281   : > { %v6497_v21 = vmul.f32 %v2030_v8, %v1724_v51  ;;  %v1885_v36 = vpop.permute.xlu0 %1884 }
 0x282   : > { %vm1919_vm13 = vcmp.eq.s32.totalorder %v6189_v41, %v1885_v36  ;;  %v1739_v41 = vadd.f32 %v6432_v45, %v6501_v10 }
 0x283   : > { %vm4801_vm14 = vmpackc.low %vm1920_vm12, %vm1919_vm13 }
 0x287   : > { %v1746_v34 = vpop.f32.mrf.mxu2 }
 0x288   : > { %v2033_v48 = vpop.f32.mrf.mxu0  ;;  %v1747_v44 = vadd.f32 %v6432_v45, %v1746_v34  ;;  %v1737_v34 = vadd.f32 %v6432_v45, %v6492_v22 }
 0x289   : > { %v6507_v17 = vmul.f32 %v2033_v48, %v1727_v54 }
 0x28b   : > { %4794 = vmatmul.msk.bf16.gmra.mxu0 %vm4793_vm3, %v7492_v27 }
 0x28f   : > { %v1748_v8 = vpop.f32.mrf.mxu2 }
 0x290   : > { %v2035_v30 = vpop.f32.mrf.mxu0  ;;  %v1749_v53 = vadd.f32 %v6432_v45, %v1748_v8 }
 0x291   : > { %v6512_v43 = vmul.f32 %v2035_v30, %v1729_v50 }
 0x293   : > { %v7509_v22 = vpack.c.bf16 %v6512_v43, %v6507_v17  ;;  %v7512_v17 = vpack.c.bf16 %v6461_v16, %v6446_v40 }
 0x297   : > { %v1751_v54 = vpop.f32.mrf.mxu2 }
 0x298   : > { %v2038_v20 = vpop.f32.mrf.mxu0  ;;  %v1752_v8 = vadd.f32 %v6432_v45, %v1751_v54 }
 0x299   : > { %v2106_v31 = vmul.f32 %v2038_v20, %v1732_v49 }
 0x29b   : > { %4796 = vmatmul.msk.bf16.gmra.mxu0 %vm4795_vm5, %v7492_v27 }
 0x29f   : > { %v6527_v50 = vpop.f32.mrf.mxu2 }
 0x2a0   : > { %v2040_v32 = vpop.f32.mrf.mxu0 }
 0x2a7   : > { %v1756_v20 = vpop.f32.mrf.mxu2 }
 0x2a8   : > { %v2043_v51 = vpop.f32.mrf.mxu0 }
 0x2ab   : > { %4798 = vmatmul.msk.bf16.gmra.mxu0 %vm4797_vm8, %v7492_v27 }
 0x2af   : > { %v6536_v3 = vpop.f32.mrf.mxu2 }
 0x2b0   : > { %v2045_v52 = vpop.f32.mrf.mxu0 }
 0x2b1   : > { %v2109_v6 = vmul.f32 %v2045_v52, %v1739_v41 }
 0x2b8   : > { %v2048_v48 = vpop.f32.mrf.mxu0 }
 0x2b9   : > { %v2110_v36 = vmul.f32 %v2048_v48, %v1742_v28  ;;  %v1761_v28 = vpop.f32.mrf.mxu2 }
 0x2ba   : > { %v1762_v54 = vadd.f32 %v6432_v45, %v1761_v28 }
 0x2bb   : > { %4800 = vmatmul.msk.bf16.gmra.mxu0 %vm4799_vm11, %v7492_v27 }
 0x2c0   : > { %v2050_v30 = vpop.f32.mrf.mxu0 }
 0x2c1   : > { %v2111_v33 = vmul.f32 %v2050_v30, %v1744_v46  ;;  %v2108_v30 = vmul.f32 %v2043_v51, %v1737_v34  ;;  %v6553_v52 = vpop.f32.mrf.mxu2 }
 0x2c3   : > { %v2250_v7 = vpack.c.bf16 %v2111_v33, %v2110_v36  ;;  %v1757_v33 = vadd.f32 %v6432_v45, %v1756_v20 }
 0x2c8   : > { %v2053_v49 = vpop.f32.mrf.mxu0 }
 0x2c9   : > { %v2112_v14 = vmul.f32 %v2053_v49, %v1747_v44  ;;  %v2249_v44 = vpack.c.bf16 %v2109_v6, %v2108_v30  ;;  %v7510_v6 = vpack.c.bf16 %v6497_v21, %v6490_v24  ;;  %v1766_v43 = vpop.f32.mrf.mxu2 }
 0x2ca   : > { %v1767_v21 = vadd.f32 %v6432_v45, %v1766_v43 }
 0x2cb   : > { %4802 = vmatmul.msk.bf16.gmra.mxu0 %vm4801_vm14, %v7492_v27 }
 0x2d0   : > { %v2055_v23 = vpop.f32.mrf.mxu0 }
 0x2d1   : > { %v2113_v35 = vmul.f32 %v2055_v23, %v1749_v53  ;;  %v1768_v23 = vpop.f32.mrf.mxu2 }
 0x2d3   : > { %v2251_v15 = vpack.c.bf16 %v2113_v35, %v2112_v14  ;;  %v2107_v35 = vmul.f32 %v2040_v32, %v1734_v9 }
 0x2d5   : > { %2260 = vmatpush.bf16.msra.mxu1 %v2251_v15  ;;  %v2248_v10 = vpack.c.bf16 %v2107_v35, %v2106_v31  ;;  %v7511_v31 = vpack.c.bf16 %v6480_v13, %v6473_v42 }
 0x2d8   : > { %v2058_v49 = vpop.f32.mrf.mxu0 }
 0x2d9   : > { %v6545_v14 = vmul.f32 %v2058_v49, %v1752_v8  ;;  %2261 = vmatpush.bf16.msra.mxu1 %v2250_v7  ;;  %v1771_v24 = vpop.f32.mrf.mxu2 }
 0x2da   : > { %v1772_v36 = vadd.f32 %v6432_v45, %v1771_v24 }
 0x2dd   : > { %2262 = vmatpush.bf16.msra.mxu1 %v2249_v44 }
 0x2e0   : > { %v6547_v48 = vpop.f32.mrf.mxu0 }
 0x2e1   : > { %2263 = vmatpush.bf16.msra.mxu1 %v2248_v10  ;;  %v1773_v13 = vpop.f32.mrf.mxu2 }
 0x2e2   : > { %v1774_v25 = vadd.f32 %v6432_v45, %v1773_v13 }
 0x2e5   : > { %2264 = vmatpush.bf16.msra.mxu1 %v7509_v22 }
 0x2e8   : > { %v2063_v29 = vpop.f32.mrf.mxu0 }
 0x2e9   : > { %v6555_v51 = vmul.f32 %v2063_v29, %v1757_v33  ;;  %2265 = vmatpush.bf16.msra.mxu1 %v7510_v6  ;;  %v1776_v34 = vpop.f32.mrf.mxu2  ;;  %v4574_v33 = vld [vmem:[%s5657_s16 + $0x1] ss:$8 sm:$0x3]  ;;  %s7399_s16 = scalar_lea.vmem %s7447_s8, %s4573_s28 }
 0x2ea   : > { %v6574_v6 = vperm.slane %v4574_v33, 0 }
 0x2ec   : > { %vm2132_vm15 = vcmp.eq.s32.totalorder %v5662_v39, %v6574_v6  ;;  %vm2134_vm2 = vcmp.eq.s32.totalorder %v5670_v47, %v6574_v6  ;;  %vm2136_vm1 = vcmp.eq.s32.totalorder %v5689_v55, %v6574_v6  ;;  %vm2138_vm4 = vcmp.eq.s32.totalorder %v5692_v56, %v6574_v6 }
 0x2ed   : > { %2266 = vmatpush.bf16.msra.mxu1 %v7511_v31  ;;  %vm4835_vm3 = vmpackc.low %vm2134_vm2, %vm2132_vm15  ;;  %vm2140_vm9 = vcmp.eq.s32.totalorder %v5705_v57, %v6574_v6  ;;  %vm2142_vm10 = vcmp.eq.s32.totalorder %v5708_v58, %v6574_v6  ;;  %vm2144_vm15 = vcmp.eq.s32.totalorder %v5721_v59, %v6574_v6  ;;  %vm2146_vm2 = vcmp.eq.s32.totalorder %v5724_v60, %v6574_v6 }
 0x2ee   : > { %vm4837_vm5 = vmpackc.low %vm2138_vm4, %vm2136_vm1 }
 0x2ef   : > { %vm4839_vm11 = vmpackc.low %vm2142_vm10, %vm2140_vm9 }
 0x2f0   : > { %v6563_v32 = vpop.f32.mrf.mxu0 }
 0x2f1   : > { %2267 = vmatpush.bf16.msra.mxu1 %v7512_v17  ;;  %v1778_v7 = vpop.f32.mrf.mxu2 }
 0x2f4   : > { %4836 = vmatmul.msk.bf16.vlgmr.msra.gmra.mxu1 %vm4835_vm3, %v7492_v27  ;;  %vm4841_vm3 = vmpackc.low %vm2146_vm2, %vm2144_vm15 }
 0x2f8   : > { %v2068_v20 = vpop.f32.mrf.mxu0 }
 0x2f9   : > { %v6569_v53 = vmul.f32 %v2068_v20, %v1762_v54  ;;  %v1781_v9 = vpop.f32.mrf.mxu2 }
 0x300   : > { %v2070_v46 = vpop.f32.mrf.mxu0 }
 0x301   : > { %v1783_v35 = vpop.f32.mrf.mxu2 }
 0x302   : > { %v1784_v54 = vadd.f32 %v6432_v45, %v1783_v35 }
 0x304   : > { %4838 = vmatmul.msk.bf16.gmra.mxu1 %vm4837_vm5, %v7492_v27 }
 0x308   : > { %v2073_v15 = vpop.f32.mrf.mxu0 }
 0x309   : > { %v2120_v42 = vmul.f32 %v2073_v15, %v1767_v21  ;;  %v1786_v10 = vpop.f32.mrf.mxu2  ;;  %v1782_v21 = vadd.f32 %v6432_v45, %v1781_v9 }
 0x30a   : > { %v1787_v31 = vadd.f32 %v6432_v45, %v1786_v10 }
 0x310   : > { %v2075_v41 = vpop.f32.mrf.mxu0 }
 0x311   : > { %v1788_v29 = vpop.f32.mrf.mxu2 }
 0x312   : > { %v1789_v17 = vadd.f32 %v6432_v45, %v1788_v29  ;;  %v1777_v29 = vadd.f32 %v6432_v45, %v1776_v34  ;;  %v1764_v34 = vadd.f32 %v6432_v45, %v6553_v52 }
 0x314   : > { %4840 = vmatmul.msk.bf16.gmra.mxu1 %vm4839_vm11, %v7492_v27 }
 0x318   : > { %v2078_v40 = vpop.f32.mrf.mxu0 }
 0x319   : > { %v2122_v16 = vmul.f32 %v2078_v40, %v1772_v36  ;;  %v1779_v40 = vadd.f32 %v6432_v45, %v1778_v7 }
 0x320   : > { %v2080_v8 = vpop.f32.mrf.mxu0 }
 0x324   : > { %4842 = vmatmul.msk.bf16.gmra.mxu1 %vm4841_vm3, %v7492_v27 }
 0x328   : > { %v2083_v49 = vpop.f32.mrf.mxu0 }
 0x329   : > { %v2124_v35 = vmul.f32 %v2083_v49, %v1777_v29 }
 0x330   : > { %v2085_v30 = vpop.f32.mrf.mxu0 }
 0x331   : > { %v2125_v37 = vmul.f32 %v2085_v30, %v1779_v40 }
 0x338   : > { %v2088_v44 = vpop.f32.mrf.mxu0 }
 0x339   : > { %v2126_v10 = vmul.f32 %v2088_v44, %v1782_v21 }
 0x340   : > { %v2090_v28 = vpop.f32.mrf.mxu0 }
 0x341   : > { %v2127_v15 = vmul.f32 %v2090_v28, %v1784_v54 }
 0x343   : > { %v2258_v38 = vpack.c.bf16 %v2127_v15, %v2126_v10 }
 0x348   : > { %v2093_v22 = vpop.f32.mrf.mxu0 }
 0x349   : > { %v2128_v20 = vmul.f32 %v2093_v22, %v1787_v31  ;;  %v2123_v22 = vmul.f32 %v2080_v8, %v1774_v25  ;;  %v2257_v31 = vpack.c.bf16 %v2125_v37, %v2124_v35  ;;  %v2119_v25 = vmul.f32 %v2070_v46, %v1764_v34 }
 0x34b   : > { %v2256_v28 = vpack.c.bf16 %v2123_v22, %v2122_v16  ;;  %v2254_v13 = vpack.c.bf16 %v2119_v25, %v6569_v53  ;;  %v6602_v16 = vperm.slane %v4574_v33, 1 }
 0x34d   : > { %vm2133_vm6 = vcmp.eq.s32.totalorder %v5662_v39, %v6602_v16  ;;  %vm2135_vm7 = vcmp.eq.s32.totalorder %v5670_v47, %v6602_v16  ;;  %vm2137_vm12 = vcmp.eq.s32.totalorder %v5689_v55, %v6602_v16  ;;  %vm2139_vm13 = vcmp.eq.s32.totalorder %v5692_v56, %v6602_v16  ;;  %v5088_v39 = vld [vmem:[%s7444_s5 + $0x38] sm:$0xff]  ;;  %v5087_v47 = vld [vmem:[%s7444_s5 + $0x30] sm:$0xff]  ;;  %v5086_v55 = vld [vmem:[%s7444_s5 + $0x28] sm:$0xff] }
 0x34e   : > { %vm4851_vm8 = vmpackc.low %vm2135_vm7, %vm2133_vm6  ;;  %vm2141_vm1 = vcmp.eq.s32.totalorder %v5705_v57, %v6602_v16  ;;  %vm2143_vm4 = vcmp.eq.s32.totalorder %v5708_v58, %v6602_v16  ;;  %vm2148_vm6 = vcmp.eq.s32.totalorder %v5737_v61, %v6574_v6  ;;  %vm2150_vm7 = vcmp.eq.s32.totalorder %v5740_v62, %v6574_v6  ;;  %2432 = vmatpush.bf16.msrb.mxu1 %v5088_v39  ;;  %v5085_v56 = vld [vmem:[%s7444_s5 + $0x20] sm:$0xff]  ;;  %v5084_v57 = vld [vmem:[%s7444_s5 + $0x18] sm:$0xff] }
 0x34f   : > { %vm4853_vm14 = vmpackc.low %vm2139_vm13, %vm2137_vm12  ;;  %vm2145_vm9 = vcmp.eq.s32.totalorder %v5721_v59, %v6602_v16  ;;  %vm2147_vm10 = vcmp.eq.s32.totalorder %v5724_v60, %v6602_v16  ;;  %vm2152_vm12 = vcmp.eq.s32.totalorder %v5753_v63, %v6574_v6  ;;  %vm2154_vm13 = vcmp.eq.s32.totalorder %v5756_v0, %v6574_v6  ;;  %v5083_v58 = vld [vmem:[%s7444_s5 + $0x10] sm:$0xff]  ;;  %v5082_v60 = vld [vmem:[%s7444_s5 + $0x8] sm:$0xff] }
 0x350   : > { %v2095_v43 = vpop.f32.mrf.mxu0  ;;  %vm4855_vm5 = vmpackc.low %vm2143_vm4, %vm2141_vm1  ;;  %vm2149_vm15 = vcmp.eq.s32.totalorder %v5737_v61, %v6602_v16  ;;  %vm2151_vm2 = vcmp.eq.s32.totalorder %v5740_v62, %v6602_v16  ;;  %vm2156_vm1 = vcmp.eq.s32.totalorder %v5769_v1, %v6574_v6  ;;  %vm2158_vm4 = vcmp.eq.s32.totalorder %v5772_v2, %v6574_v6  ;;  %v5081_v61 = vld [vmem:[%s7444_s5] sm:$0xff] }
 0x351   : > { %v2129_v24 = vmul.f32 %v2095_v43, %v1789_v17  ;;  %v1769_v17 = vadd.f32 %v6432_v45, %v1768_v23  ;;  %vm4857_vm11 = vmpackc.low %vm2147_vm10, %vm2145_vm9  ;;  %vm2160_vm9 = vcmp.eq.s32.totalorder %v5788_v4, %v6574_v6  ;;  %vm2162_vm10 = vcmp.eq.s32.totalorder %v5791_v5, %v6574_v6 }
 0x352   : > { %vm4859_vm3 = vmpackc.low %vm2151_vm2, %vm2149_vm15  ;;  %2433 = vmatpush.bf16.msrb.mxu1 %v5087_v47  ;;  %vm2161_vm15 = vcmp.eq.s32.totalorder %v5788_v4, %v6602_v16  ;;  %vm2163_vm2 = vcmp.eq.s32.totalorder %v5791_v5, %v6602_v16 }
 0x353   : > { %v2259_v36 = vpack.c.bf16 %v2129_v24, %v2128_v20  ;;  %v2121_v9 = vmul.f32 %v2075_v41, %v1769_v17  ;;  %v1754_v41 = vadd.f32 %v6432_v45, %v6527_v50 }
 0x355   : > { %2309 = vmatpush.bf16.msrb.mxu3 %v2259_v36  ;;  %v2255_v37 = vpack.c.bf16 %v2121_v9, %v2120_v42  ;;  %v2115_v52 = vmul.f32 %v6547_v48, %v1754_v41 }
 0x356   : > { %2434 = vmatpush.bf16.msrb.mxu1 %v5086_v55 }
 0x359   : > { %2310 = vmatpush.bf16.msrb.mxu3 %v2258_v38  ;;  %v1759_v38 = vadd.f32 %v6432_v45, %v6536_v3  ;;  %v2252_v3 = vpack.c.bf16 %v2115_v52, %v6545_v14 }
 0x35a   : > { %2435 = vmatpush.bf16.msrb.mxu1 %v5085_v56 }
 0x35b   : > { %v2117_v23 = vmul.f32 %v6563_v32, %v1759_v38 }
 0x35d   : > { %2311 = vmatpush.bf16.msrb.mxu3 %v2257_v31  ;;  %v2253_v8 = vpack.c.bf16 %v2117_v23, %v6555_v51 }
 0x35e   : > { %2436 = vmatpush.bf16.msrb.mxu1 %v5084_v57 }
 0x361   : > { %2312 = vmatpush.bf16.msrb.mxu3 %v2256_v28 }
 0x362   : > { %2437 = vmatpush.bf16.msrb.mxu1 %v5083_v58  ;;  %v6704_v58 = vld [vmem:[%s7446_s7 + $0x2] ss:$0 sm:$0xff] }
 0x365   : > { %2313 = vmatpush.bf16.msrb.mxu3 %v2255_v37 }
 0x366   : > { %2438 = vmatpush.bf16.msrb.mxu1 %v5082_v60 }
 0x369   : > { %2314 = vmatpush.bf16.msrb.mxu3 %v2254_v13 }
 0x36a   : > { %2439 = vmatpush.bf16.msrb.mxu1 %v5081_v61 }
 0x36d   : > { %2315 = vmatpush.bf16.msrb.mxu3 %v2253_v8 }
 0x371   : > { %2316 = vmatpush.bf16.msrb.mxu3 %v2252_v3  ;;  %v2269_v59 = vpop.f32.mrf.mxu1 }
 0x374   : > { %4852 = vmatmul.msk.bf16.vlgmr.msrb.gmra.mxu3 %vm4851_vm8, %v7492_v27  ;;  %vm4843_vm8 = vmpackc.low %vm2150_vm7, %vm2148_vm6  ;;  %vm2153_vm6 = vcmp.eq.s32.totalorder %v5753_v63, %v6602_v16  ;;  %vm2155_vm7 = vcmp.eq.s32.totalorder %v5756_v0, %v6602_v16 }
 0x375   : > { %4844 = vmatmul.msk.bf16.gmra.mxu1 %vm4843_vm8, %v7492_v27  ;;  %vm4861_vm8 = vmpackc.low %vm2155_vm7, %vm2153_vm6 }
 0x379   : > { %v2271_v62 = vpop.f32.mrf.mxu1 }
 0x381   : > { %v2274_v63 = vpop.f32.mrf.mxu1 }
 0x384   : > { %4854 = vmatmul.msk.bf16.gmra.mxu3 %vm4853_vm14, %v7492_v27  ;;  %vm4845_vm14 = vmpackc.low %vm2154_vm13, %vm2152_vm12  ;;  %vm2157_vm12 = vcmp.eq.s32.totalorder %v5769_v1, %v6602_v16  ;;  %vm2159_vm13 = vcmp.eq.s32.totalorder %v5772_v2, %v6602_v16 }
 0x385   : > { %4846 = vmatmul.msk.bf16.gmra.mxu1 %vm4845_vm14, %v7492_v27  ;;  %vm4863_vm14 = vmpackc.low %vm2159_vm13, %vm2157_vm12 }
 0x389   : > { %v2276_v1 = vpop.f32.mrf.mxu1 }
 0x391   : > { %v2279_v14 = vpop.f32.mrf.mxu1 }
 0x394   : > { %4856 = vmatmul.msk.bf16.gmra.mxu3 %vm4855_vm5, %v7492_v27  ;;  %vm4847_vm5 = vmpackc.low %vm2158_vm4, %vm2156_vm1 }
 0x395   : > { %4848 = vmatmul.msk.bf16.gmra.mxu1 %vm4847_vm5, %v7492_v27 }
 0x399   : > { %v2281_v5 = vpop.f32.mrf.mxu1 }
 0x3a1   : > { %v2284_v42 = vpop.f32.mrf.mxu1 }
 0x3a4   : > { %4858 = vmatmul.msk.bf16.gmra.mxu3 %vm4857_vm11, %v7492_v27  ;;  %vm4849_vm11 = vmpackc.low %vm2162_vm10, %vm2160_vm9 }
 0x3a5   : > { %4850 = vmatmul.msk.bf16.gmra.mxu1 %vm4849_vm11, %v7492_v27 }
 0x3b4   : > { %4860 = vmatmul.msk.bf16.gmra.mxu3 %vm4859_vm3, %v7492_v27  ;;  %vm4865_vm3 = vmpackc.low %vm2163_vm2, %vm2161_vm15 }
 0x3c4   : > { %4862 = vmatmul.msk.bf16.gmra.mxu3 %vm4861_vm8, %v7492_v27 }
 0x3d4   : > { %4864 = vmatmul.msk.bf16.gmra.mxu3 %vm4863_vm14, %v7492_v27 }
 0x3e4   : > { %4866 = vmatmul.msk.bf16.gmra.mxu3 %vm4865_vm3, %v7492_v27  ;;  %v2286_v27 = vpop.f32.mrf.mxu1 }
 0x3f2   : > { %v2289_v43 = vpop.f32.mrf.mxu1 }
 0x3f7   : > { %v2318_v0 = vpop.f32.mrf.mxu3 }
 0x3f8   : > { %v2319_v45 = vadd.f32 %v2318_v0, %v2269_v59 }
 0x3fa   : > { %v2291_v15 = vpop.f32.mrf.mxu1 }
 0x3ff   : > { %v2320_v2 = vpop.f32.mrf.mxu3 }
 0x400   : > { %v2321_v50 = vadd.f32 %v2320_v2, %v2271_v62  ;;  %v5090_v62 = vld [vmem:[%s7445_s6 + $0x8] sm:$0xff] }
 0x401   : > { %2857 = vmatpush.bf16.msra.mxu3 %v5090_v62 }
 0x402   : > { %v2358_v4 = vpack.c.bf16 %v2321_v50, %v2319_v45  ;;  %v2294_v40 = vpop.f32.mrf.mxu1 }
 0x404   : > { %2440 = vmatmul.bf16.vlgmr.msrb.gmra.mxu1 %v2358_v4 }
 0x407   : > { %v2323_v48 = vpop.f32.mrf.mxu3 }
 0x408   : > { %v2324_v32 = vadd.f32 %v2323_v48, %v2274_v63  ;;  %v5089_v63 = vld [vmem:[%s7445_s6] sm:$0xff] }
 0x409   : > { %2858 = vmatpush.bf16.msra.mxu3 %v5089_v63 }
 0x40a   : > { %v2296_v17 = vpop.f32.mrf.mxu1 }
 0x40f   : > { %v2325_v51 = vpop.f32.mrf.mxu3 }
 0x410   : > { %v2326_v53 = vadd.f32 %v2325_v51, %v2276_v1 }
 0x412   : > { %v2359_v46 = vpack.c.bf16 %v2326_v53, %v2324_v32  ;;  %v2299_v25 = vpop.f32.mrf.mxu1 }
 0x414   : > { %2445 = vmatmul.bf16.gmra.mxu1 %v2359_v46 }
 0x417   : > { %v2328_v7 = vpop.f32.mrf.mxu3 }
 0x418   : > { %v2329_v30 = vadd.f32 %v2328_v7, %v2279_v14 }
 0x41a   : > { %v2301_v23 = vpop.f32.mrf.mxu1 }
 0x41f   : > { %v2330_v49 = vpop.f32.mrf.mxu3 }
 0x420   : > { %v2331_v44 = vadd.f32 %v2330_v49, %v2281_v5 }
 0x422   : > { %v2360_v33 = vpack.c.bf16 %v2331_v44, %v2329_v30  ;;  %v2304_v8 = vpop.f32.mrf.mxu1 }
 0x424   : > { %2450 = vmatmul.bf16.gmra.mxu1 %v2360_v33 }
 0x427   : > { %v2333_v6 = vpop.f32.mrf.mxu3 }
 0x428   : > { %v2334_v20 = vadd.f32 %v2333_v6, %v2284_v42 }
 0x42a   : > { %v2306_v39 = vpop.f32.mrf.mxu1 }
 0x42f   : > { %v2335_v54 = vpop.f32.mrf.mxu3 }
 0x430   : > { %v2336_v24 = vadd.f32 %v2335_v54, %v2286_v27 }
 0x432   : > { %v2361_v21 = vpack.c.bf16 %v2336_v24, %v2334_v20 }
 0x434   : > { %2455 = vmatmul.bf16.gmra.mxu1 %v2361_v21 }
 0x437   : > { %v2338_v36 = vpop.f32.mrf.mxu3 }
 0x438   : > { %v2339_v29 = vadd.f32 %v2338_v36, %v2289_v43 }
 0x43f   : > { %v2340_v10 = vpop.f32.mrf.mxu3 }
 0x440   : > { %v2341_v35 = vadd.f32 %v2340_v10, %v2291_v15 }
 0x442   : > { %v2362_v22 = vpack.c.bf16 %v2341_v35, %v2339_v29 }
 0x444   : > { %2460 = vmatmul.bf16.gmra.mxu1 %v2362_v22 }
 0x447   : > { %v2343_v31 = vpop.f32.mrf.mxu3 }
 0x448   : > { %v2344_v28 = vadd.f32 %v2343_v31, %v2294_v40 }
 0x44f   : > { %v2345_v9 = vpop.f32.mrf.mxu3 }
 0x450   : > { %v2346_v34 = vadd.f32 %v2345_v9, %v2296_v17 }
 0x452   : > { %v2363_v37 = vpack.c.bf16 %v2346_v34, %v2344_v28 }
 0x454   : > { %2465 = vmatmul.bf16.gmra.mxu1 %v2363_v37 }
 0x457   : > { %v2348_v38 = vpop.f32.mrf.mxu3 }
 0x458   : > { %v2349_v41 = vadd.f32 %v2348_v38, %v2299_v25 }
 0x45f   : > { %v2350_v13 = vpop.f32.mrf.mxu3 }
 0x460   : > { %v2351_v16 = vadd.f32 %v2350_v13, %v2301_v23 }
 0x462   : > { %v2364_v52 = vpack.c.bf16 %v2351_v16, %v2349_v41 }
 0x464   : > { %2470 = vmatmul.bf16.gmra.mxu1 %v2364_v52 }
 0x467   : > { %v2353_v3 = vpop.f32.mrf.mxu3 }
 0x468   : > { %v2354_v55 = vadd.f32 %v2353_v3, %v2304_v8 }
 0x46f   : > { %v2355_v47 = vpop.f32.mrf.mxu3 }
 0x470   : > { %v2356_v56 = vadd.f32 %v2355_v47, %v2306_v39 }
 0x472   : > { %v2365_v57 = vpack.c.bf16 %v2356_v56, %v2354_v55 }
 0x474   : > { %2475 = vmatmul.bf16.gmra.mxu1 %v2365_v57 }
 0x481   : > { %v2441_v59 = vpop.f32.mrf.mxu1 }
 0x482   : > { %v6707_v60 = vadd.f32 %v6704_v58, %v2441_v59 }
 0x484   : > { %v4899_v61 = vmul.f32 -1.442695, %v6707_v60 }
 0x486   : > { %5296 = vpow2.f32 %v4899_v61 }
 0x489   : > { %v2443_v0 = vpop.f32.mrf.mxu1 }
 0x48a   : > { %v2444_v1 = vadd.f32 %v6704_v58, %v2443_v0 }
 0x48c   : > { %v5297_v2 = vpop.eup %5296  ;;  %v4900_v45 = vmul.f32 -1.442695, %v2444_v1 }
 0x48d   : > { %v2529_v50 = vadd.f32 1.0, %v5297_v2 }
 0x48e   : > { %5298 = vpow2.f32 %v4900_v45 }
 0x48f   : > { %5300 = vrcp.f32 %v2529_v50  ;;  %v2556_v54 = vand.u32 2147483648, %v2529_v50  ;;  %vm2550_vm4 = vweird.f32 %v2529_v50  ;;  %v2554_v20 = vand.u32 2147483647, %v2529_v50 }
 0x491   : > { %v2446_v14 = vpop.f32.mrf.mxu1  ;;  %v2557_v22 = vor.u32 1.1754944e-38, %v2556_v54  ;;  %vm2555_vm7 = vcmp.eq.f32.partialorder %v2554_v20, 8.507059e+37 }
 0x492   : > { %v6718_v4 = vadd.f32 %v6704_v58, %v2446_v14 }
 0x494   : > { %v5299_v48 = vpop.eup %5298  ;;  %v4901_v5 = vmul.f32 -1.442695, %v6718_v4 }
 0x495   : > { %v5301_v51 = vpop.eup %5300  ;;  %v2530_v32 = vadd.f32 1.0, %v5299_v48 }
 0x496   : > { %v2546_v53 = vmul.f32 %v5301_v51, %v2529_v50  ;;  %5302 = vpow2.f32 %v4901_v5  ;;  %vm2551_vm1 = vweird.f32 %v5301_v51 }
 0x497   : > { %5304 = vrcp.f32 %v2530_v32  ;;  %vm6728_vm5 = vmor %vm2550_vm4, %vm2551_vm1  ;;  %v2569_v15 = vand.u32 2147483647, %v2530_v32  ;;  %v2571_v36 = vand.u32 2147483648, %v2530_v32  ;;  %vm2565_vm8 = vweird.f32 %v2530_v32 }
 0x498   : > { %v2547_v46 = vsub.f32 1.0, %v2546_v53 }
 0x499   : > { %v2448_v42 = vpop.f32.mrf.mxu1  ;;  %v2572_v25 = vor.u32 1.1754944e-38, %v2571_v36  ;;  %vm2570_vm10 = vcmp.eq.f32.partialorder %v2569_v15, 8.507059e+37 }
 0x49a   : > { %v2548_v7 = vmul.f32 %v5301_v51, %v2547_v46  ;;  %v6722_v49 = vadd.f32 %v6704_v58, %v2448_v42 }
 0x49c   : > { %v5303_v27 = vpop.eup %5302  ;;  %v4902_v30 = vmul.f32 -1.442695, %v6722_v49  ;;  %v2549_v6 = vadd.f32 %v5301_v51, %v2548_v7 }
 0x49d   : > { %v5305_v44 = vpop.eup %5304  ;;  %v6725_v33 = vadd.f32 1.0, %v5303_v27 }
 0x49e   : > { %v2561_v43 = vmul.f32 %v5305_v44, %v2530_v32  ;;  %5306 = vpow2.f32 %v4902_v30  ;;  %v2553_v10 = vsel %vm6728_vm5, %v5301_v51, %v2549_v6  ;;  %vm2566_vm6 = vweird.f32 %v5305_v44 }
 0x49f   : > { %5308 = vrcp.f32 %v6725_v33  ;;  %v2558_v34 = vsel %vm2555_vm7, %v2557_v22, %v2553_v10  ;;  %vm2567_vm9 = vmor %vm2565_vm8, %vm2566_vm6  ;;  %vm2580_vm12 = vweird.f32 %v6725_v33  ;;  %v2584_v63 = vand.u32 2147483647, %v6725_v33 }
 0x4a0   : > { %v2562_v24 = vsub.f32 1.0, %v2561_v43  ;;  %v2785_v41 = vmul.f32 %v2558_v34, %v6707_v60  ;;  %v2586_v60 = vand.u32 2147483648, %v6725_v33 }
 0x4a1   : > { %v2451_v40 = vpop.f32.mrf.mxu1  ;;  %vm2585_vm15 = vcmp.eq.f32.partialorder %v2584_v63, 8.507059e+37 }
 0x4a2   : > { %v2563_v29 = vmul.f32 %v5305_v44, %v2562_v24  ;;  %v6735_v35 = vadd.f32 %v6704_v58, %v2451_v40  ;;  %v2587_v51 = vor.u32 1.1754944e-38, %v2586_v60 }
 0x4a4   : > { %v5307_v31 = vpop.eup %5306  ;;  %v2564_v17 = vadd.f32 %v5305_v44, %v2563_v29  ;;  %v4903_v9 = vmul.f32 -1.442695, %v6735_v35 }
 0x4a5   : > { %v5309_v28 = vpop.eup %5308  ;;  %v2532_v37 = vadd.f32 1.0, %v5307_v31 }
 0x4a6   : > { %v2568_v38 = vsel %vm2567_vm9, %v5305_v44, %v2564_v17  ;;  %v2576_v23 = vmul.f32 %v5309_v28, %v6725_v33  ;;  %5310 = vpow2.f32 %v4903_v9  ;;  %vm2581_vm11 = vweird.f32 %v5309_v28 }
 0x4a7   : > { %v2573_v13 = vsel %vm2570_vm10, %v2572_v25, %v2568_v38  ;;  %5312 = vrcp.f32 %v2532_v37  ;;  %vm6751_vm13 = vmor %vm2580_vm12, %vm2581_vm11  ;;  %v2599_v2 = vand.u32 2147483647, %v2532_v37  ;;  %v2601_v45 = vand.u32 2147483648, %v2532_v37 }
 0x4a8   : > { %v2786_v16 = vmul.f32 %v2573_v13, %v2444_v1  ;;  %v2577_v52 = vsub.f32 1.0, %v2576_v23  ;;  %vm2595_vm2 = vweird.f32 %v2532_v37 }
 0x4a9   : > { %v2453_v8 = vpop.f32.mrf.mxu1  ;;  %v2602_v27 = vor.u32 1.1754944e-38, %v2601_v45  ;;  %vm2600_vm1 = vcmp.eq.f32.partialorder %v2599_v2, 8.507059e+37 }
 0x4aa   : > { %v2801_v3 = vpack.c.bf16 %v2786_v16, %v2785_v41  ;;  %v2578_v39 = vmul.f32 %v5309_v28, %v2577_v52  ;;  %v6741_v47 = vadd.f32 %v6704_v58, %v2453_v8 }
 0x4ac   : > { %v5311_v55 = vpop.eup %5310  ;;  %v4904_v56 = vmul.f32 -1.442695, %v6741_v47  ;;  %4923 = vmatmul.msk.bf16.vlgmr.msra.gmra.mxu3 %vm710_vm0, %v2801_v3  ;;  %v2579_v61 = vadd.f32 %v5309_v28, %v2578_v39 }
 0x4ad   : > { %v5313_v57 = vpop.eup %5312  ;;  %v6745_v59 = vadd.f32 1.0, %v5311_v55 }
 0x4ae   : > { %v2591_v62 = vmul.f32 %v5313_v57, %v2532_v37  ;;  %5314 = vpow2.f32 %v4904_v56  ;;  %v2583_v14 = vsel %vm6751_vm13, %v5309_v28, %v2579_v61  ;;  %vm2596_vm14 = vweird.f32 %v5313_v57 }
 0x4af   : > { %5316 = vrcp.f32 %v6745_v59  ;;  %v2588_v7 = vsel %vm2585_vm15, %v2587_v51, %v2583_v14  ;;  %vm2597_vm3 = vmor %vm2595_vm2, %vm2596_vm14  ;;  %vm2610_vm5 = vweird.f32 %v6745_v59  ;;  %v2614_v17 = vand.u32 2147483647, %v6745_v59 }
 0x4b0   : > { %v2592_v0 = vsub.f32 1.0, %v2591_v62  ;;  %v2787_v43 = vmul.f32 %v2588_v7, %v6718_v4 }
 0x4b1   : > { %v2456_v50 = vpop.f32.mrf.mxu1  ;;  %vm2615_vm8 = vcmp.eq.f32.partialorder %v2614_v17, 8.507059e+37 }
 0x4b2   : > { %v2593_v48 = vmul.f32 %v5313_v57, %v2592_v0  ;;  %v6758_v5 = vadd.f32 %v6704_v58, %v2456_v50 }
 0x4b4   : > { %v5315_v32 = vpop.eup %5314  ;;  %v2594_v53 = vadd.f32 %v5313_v57, %v2593_v48  ;;  %v4905_v46 = vmul.f32 -1.442695, %v6758_v5 }
 0x4b5   : > { %v5317_v42 = vpop.eup %5316  ;;  %v2534_v30 = vadd.f32 1.0, %v5315_v32 }
 0x4b6   : > { %v2598_v44 = vsel %vm2597_vm3, %v5313_v57, %v2594_v53  ;;  %v2606_v33 = vmul.f32 %v5317_v42, %v6745_v59  ;;  %5318 = vpow2.f32 %v4905_v46  ;;  %vm2611_vm4 = vweird.f32 %v5317_v42 }
 0x4b7   : > { %v2603_v6 = vsel %vm2600_vm1, %v2602_v27, %v2598_v44  ;;  %5320 = vrcp.f32 %v2534_v30  ;;  %vm6775_vm6 = vmor %vm2610_vm5, %vm2611_vm4  ;;  %v2629_v34 = vand.u32 2147483647, %v2534_v30  ;;  %v2631_v25 = vand.u32 2147483648, %v2534_v30 }
 0x4b8   : > { %v2788_v54 = vmul.f32 %v2603_v6, %v6722_v49  ;;  %v2607_v20 = vsub.f32 1.0, %v2606_v33  ;;  %v2616_v49 = vand.u32 2147483648, %v6745_v59  ;;  %vm2625_vm9 = vweird.f32 %v2534_v30 }
 0x4b9   : > { %v2458_v24 = vpop.f32.mrf.mxu1  ;;  %v2632_v55 = vor.u32 1.1754944e-38, %v2631_v25  ;;  %vm2630_vm11 = vcmp.eq.f32.partialorder %v2629_v34, 8.507059e+37 }
 0x4ba   : > { %v2802_v21 = vpack.c.bf16 %v2788_v54, %v2787_v43  ;;  %v2608_v15 = vmul.f32 %v5317_v42, %v2607_v20  ;;  %v6765_v36 = vadd.f32 %v6704_v58, %v2458_v24  ;;  %v2617_v41 = vor.u32 1.1754944e-38, %v2616_v49 }
 0x4bc   : > { %v5319_v40 = vpop.eup %5318  ;;  %v4906_v10 = vmul.f32 -1.442695, %v6765_v36  ;;  %4924 = vmatmul.msk.bf16.gmra.mxu3 %vm710_vm0, %v2802_v21  ;;  %v2609_v31 = vadd.f32 %v5317_v42, %v2608_v15 }
 0x4bd   : > { %v5321_v29 = vpop.eup %5320  ;;  %v6769_v22 = vadd.f32 1.0, %v5319_v40 }
 0x4be   : > { %v2621_v4 = vmul.f32 %v5321_v29, %v2534_v30  ;;  %5322 = vpow2.f32 %v4906_v10  ;;  %v2613_v38 = vsel %vm6775_vm6, %v5317_v42, %v2609_v31  ;;  %vm2626_vm7 = vweird.f32 %v5321_v29 }
 0x4bf   : > { %5324 = vrcp.f32 %v6769_v22  ;;  %v2618_v39 = vsel %vm2615_vm8, %v2617_v41, %v2613_v38  ;;  %vm2627_vm10 = vmor %vm2625_vm9, %vm2626_vm7  ;;  %vm2640_vm13 = vweird.f32 %v6769_v22  ;;  %v2644_v53 = vand.u32 2147483647, %v6769_v22 }
 0x4c0   : > { %v2622_v9 = vsub.f32 1.0, %v2621_v4  ;;  %v2789_v62 = vmul.f32 %v2618_v39, %v6735_v35 }
 0x4c1   : > { %v2461_v37 = vpop.f32.mrf.mxu1  ;;  %vm2645_vm2 = vcmp.eq.f32.partialorder %v2644_v53, 8.507059e+37 }
 0x4c2   : > { %v2623_v23 = vmul.f32 %v5321_v29, %v2622_v9  ;;  %v6782_v13 = vadd.f32 %v6704_v58, %v2461_v37 }
 0x4c4   : > { %v5323_v16 = vpop.eup %5322  ;;  %v2624_v52 = vadd.f32 %v5321_v29, %v2623_v23  ;;  %v4907_v8 = vmul.f32 -1.442695, %v6782_v13 }
 0x4c5   : > { %v5325_v3 = vpop.eup %5324  ;;  %v2536_v56 = vadd.f32 1.0, %v5323_v16 }
 0x4c6   : > { %v2628_v57 = vsel %vm2627_vm10, %v5321_v29, %v2624_v52  ;;  %v2636_v59 = vmul.f32 %v5325_v3, %v6769_v22  ;;  %5326 = vpow2.f32 %v4907_v8  ;;  %vm2641_vm12 = vweird.f32 %v5325_v3 }
 0x4c7   : > { %v2633_v61 = vsel %vm2630_vm11, %v2632_v55, %v2628_v57  ;;  %5328 = vrcp.f32 %v2536_v56  ;;  %vm6799_vm14 = vmor %vm2640_vm13, %vm2641_vm12  ;;  %v2659_v7 = vand.u32 2147483647, %v2536_v56  ;;  %v2661_v27 = vand.u32 2147483648, %v2536_v56 }
 0x4c8   : > { %v2790_v60 = vmul.f32 %v2633_v61, %v6741_v47  ;;  %v2637_v63 = vsub.f32 1.0, %v2636_v59  ;;  %v2646_v47 = vand.u32 2147483648, %v6769_v22  ;;  %vm2655_vm3 = vweird.f32 %v2536_v56 }
 0x4c9   : > { %v2463_v0 = vpop.f32.mrf.mxu1  ;;  %v2662_v40 = vor.u32 1.1754944e-38, %v2661_v27  ;;  %vm2660_vm4 = vcmp.eq.f32.partialorder %v2659_v7, 8.507059e+37 }
 0x4ca   : > { %v2803_v1 = vpack.c.bf16 %v2790_v60, %v2789_v62  ;;  %v2638_v2 = vmul.f32 %v5325_v3, %v2637_v63  ;;  %v6789_v45 = vadd.f32 %v6704_v58, %v2463_v0  ;;  %v2647_v43 = vor.u32 1.1754944e-38, %v2646_v47 }
 0x4cc   : > { %v5327_v50 = vpop.eup %5326  ;;  %v4908_v14 = vmul.f32 -1.442695, %v6789_v45  ;;  %4925 = vmatmul.msk.bf16.gmra.mxu3 %vm710_vm0, %v2803_v1  ;;  %v2639_v32 = vadd.f32 %v5325_v3, %v2638_v2 }
 0x4cd   : > { %v5329_v48 = vpop.eup %5328  ;;  %v6793_v51 = vadd.f32 1.0, %v5327_v50 }
 0x4ce   : > { %v2651_v35 = vmul.f32 %v5329_v48, %v2536_v56  ;;  %5330 = vpow2.f32 %v4908_v14  ;;  %v2643_v44 = vsel %vm6799_vm14, %v5325_v3, %v2639_v32  ;;  %vm2656_vm15 = vweird.f32 %v5329_v48 }
 0x4cf   : > { %5332 = vrcp.f32 %v6793_v51  ;;  %v2648_v15 = vsel %vm2645_vm2, %v2647_v43, %v2643_v44  ;;  %vm2657_vm1 = vmor %vm2655_vm3, %vm2656_vm15  ;;  %vm2670_vm6 = vweird.f32 %v6793_v51  ;;  %v2674_v52 = vand.u32 2147483647, %v6793_v51 }
 0x4d0   : > { %v2652_v46 = vsub.f32 1.0, %v2651_v35  ;;  %v2791_v4 = vmul.f32 %v2648_v15, %v6758_v5 }
 0x4d1   : > { %v2466_v30 = vpop.f32.mrf.mxu1  ;;  %vm2675_vm9 = vcmp.eq.f32.partialorder %v2674_v52, 8.507059e+37 }
 0x4d2   : > { %v2653_v33 = vmul.f32 %v5329_v48, %v2652_v46  ;;  %v6806_v6 = vadd.f32 %v6704_v58, %v2466_v30 }
 0x4d4   : > { %v5331_v54 = vpop.eup %5330  ;;  %v2654_v20 = vadd.f32 %v5329_v48, %v2653_v33  ;;  %v4909_v24 = vmul.f32 -1.442695, %v6806_v6 }
 0x4d5   : > { %v5333_v21 = vpop.eup %5332  ;;  %v2538_v10 = vadd.f32 1.0, %v5331_v54 }
 0x4d6   : > { %v2658_v29 = vsel %vm2657_vm1, %v5329_v48, %v2654_v20  ;;  %v2666_v22 = vmul.f32 %v5333_v21, %v6793_v51  ;;  %5334 = vpow2.f32 %v4909_v24  ;;  %vm2671_vm5 = vweird.f32 %v5333_v21 }
 0x4d7   : > { %v2663_v31 = vsel %vm2660_vm4, %v2662_v40, %v2658_v29  ;;  %5336 = vrcp.f32 %v2538_v10  ;;  %vm6823_vm7 = vmor %vm2670_vm6, %vm2671_vm5  ;;  %v2689_v39 = vand.u32 2147483647, %v2538_v10  ;;  %v2691_v55 = vand.u32 2147483648, %v2538_v10 }
 0x4d8   : > { %v2792_v49 = vmul.f32 %v2663_v31, %v6765_v36  ;;  %v2667_v17 = vsub.f32 1.0, %v2666_v22  ;;  %v2676_v36 = vand.u32 2147483648, %v6793_v51  ;;  %vm2685_vm10 = vweird.f32 %v2538_v10 }
 0x4d9   : > { %v2468_v9 = vpop.f32.mrf.mxu1  ;;  %v2692_v50 = vor.u32 1.1754944e-38, %v2691_v55  ;;  %vm2690_vm12 = vcmp.eq.f32.partialorder %v2689_v39, 8.507059e+37 }
 0x4da   : > { %v2804_v28 = vpack.c.bf16 %v2792_v49, %v2791_v4  ;;  %v2668_v34 = vmul.f32 %v5333_v21, %v2667_v17  ;;  %v6813_v25 = vadd.f32 %v6704_v58, %v2468_v9  ;;  %v2677_v62 = vor.u32 1.1754944e-38, %v2676_v36 }
 0x4dc   : > { %v5335_v37 = vpop.eup %5334  ;;  %v4910_v38 = vmul.f32 -1.442695, %v6813_v25  ;;  %4926 = vmatmul.msk.bf16.gmra.mxu3 %vm710_vm0, %v2804_v28  ;;  %v2669_v16 = vadd.f32 %v5333_v21, %v2668_v34 }
 0x4dd   : > { %v5337_v23 = vpop.eup %5336  ;;  %v6817_v41 = vadd.f32 1.0, %v5335_v37 }
 0x4de   : > { %v2681_v5 = vmul.f32 %v5337_v23, %v2538_v10  ;;  %5338 = vpow2.f32 %v4910_v38  ;;  %v2673_v57 = vsel %vm6823_vm7, %v5333_v21, %v2669_v16  ;;  %vm2686_vm8 = vweird.f32 %v5337_v23 }
 0x4df   : > { %5340 = vrcp.f32 %v6817_v41  ;;  %v2678_v2 = vsel %vm2675_vm9, %v2677_v62, %v2673_v57  ;;  %vm2687_vm11 = vmor %vm2685_vm10, %vm2686_vm8  ;;  %vm2700_vm14 = vweird.f32 %v6817_v41  ;;  %v2704_v20 = vand.u32 2147483647, %v6817_v41 }
 0x4e0   : > { %v2682_v8 = vsub.f32 1.0, %v2681_v5  ;;  %v2793_v35 = vmul.f32 %v2678_v2, %v6782_v13 }
 0x4e1   : > { %v2471_v56 = vpop.f32.mrf.mxu1  ;;  %vm2705_vm3 = vcmp.eq.f32.partialorder %v2704_v20, 8.507059e+37 }
 0x4e2   : > { %v2683_v59 = vmul.f32 %v5337_v23, %v2682_v8  ;;  %v6830_v61 = vadd.f32 %v6704_v58, %v2471_v56 }
 0x4e4   : > { %v5339_v60 = vpop.eup %5338  ;;  %v2684_v63 = vadd.f32 %v5337_v23, %v2683_v59  ;;  %v4911_v0 = vmul.f32 -1.442695, %v6830_v61 }
 0x4e5   : > { %v5341_v1 = vpop.eup %5340  ;;  %v2540_v14 = vadd.f32 1.0, %v5339_v60 }
 0x4e6   : > { %v2688_v48 = vsel %vm2687_vm11, %v5337_v23, %v2684_v63  ;;  %v2696_v51 = vmul.f32 %v5341_v1, %v6817_v41  ;;  %5342 = vpow2.f32 %v4911_v0  ;;  %vm2701_vm13 = vweird.f32 %v5341_v1 }
 0x4e7   : > { %v2693_v32 = vsel %vm2690_vm12, %v2692_v50, %v2688_v48  ;;  %5344 = vrcp.f32 %v2540_v14  ;;  %vm6847_vm15 = vmor %vm2700_vm14, %vm2701_vm13  ;;  %v2719_v15 = vand.u32 2147483647, %v2540_v14  ;;  %v2721_v40 = vand.u32 2147483648, %v2540_v14 }
 0x4e8   : > { %v2794_v47 = vmul.f32 %v2693_v32, %v6789_v45  ;;  %v2697_v53 = vsub.f32 1.0, %v2696_v51  ;;  %v2706_v45 = vand.u32 2147483648, %v6817_v41  ;;  %vm2715_vm1 = vweird.f32 %v2540_v14 }
 0x4e9   : > { %v2473_v46 = vpop.f32.mrf.mxu1  ;;  %v2722_v37 = vor.u32 1.1754944e-38, %v2721_v40  ;;  %vm2720_vm5 = vcmp.eq.f32.partialorder %v2719_v15, 8.507059e+37 }
 0x4ea   : > { %v2805_v42 = vpack.c.bf16 %v2794_v47, %v2793_v35  ;;  %v2698_v7 = vmul.f32 %v5341_v1, %v2697_v53  ;;  %v6837_v27 = vadd.f32 %v6704_v58, %v2473_v46  ;;  %v2707_v4 = vor.u32 1.1754944e-38, %v2706_v45 }
 0x4ec   : > { %v5343_v30 = vpop.eup %5342  ;;  %v4912_v44 = vmul.f32 -1.442695, %v6837_v27  ;;  %4927 = vmatmul.msk.bf16.gmra.mxu3 %vm710_vm0, %v2805_v42  ;;  %v2699_v54 = vadd.f32 %v5341_v1, %v2698_v7 }
 0x4ed   : > { %v5345_v33 = vpop.eup %5344  ;;  %v6841_v43 = vadd.f32 1.0, %v5343_v30 }
 0x4ee   : > { %v2711_v13 = vmul.f32 %v5345_v33, %v2540_v14  ;;  %5346 = vpow2.f32 %v4912_v44  ;;  %v2703_v29 = vsel %vm6847_vm15, %v5341_v1, %v2699_v54  ;;  %vm2716_vm2 = vweird.f32 %v5345_v33 }
 0x4ef   : > { %5348 = vrcp.f32 %v6841_v43  ;;  %v2708_v34 = vsel %vm2705_vm3, %v2707_v4, %v2703_v29  ;;  %vm2717_vm4 = vmor %vm2715_vm1, %vm2716_vm2  ;;  %vm2730_vm7 = vweird.f32 %v6841_v43 }
 0x4f0   : > { %v2712_v24 = vsub.f32 1.0, %v2711_v13  ;;  %v2795_v5 = vmul.f32 %v2708_v34, %v6806_v6  ;;  %v2736_v6 = vand.u32 2147483648, %v6841_v43 }
 0x4f1   : > { %v2476_v10 = vpop.f32.mrf.mxu1 }
 0x4f2   : > { %v2713_v22 = vmul.f32 %v5345_v33, %v2712_v24  ;;  %v6854_v31 = vadd.f32 %v6704_v58, %v2476_v10  ;;  %v2737_v14 = vor.u32 1.1754944e-38, %v2736_v6 }
 0x4f4   : > { %v5347_v49 = vpop.eup %5346  ;;  %v2714_v17 = vadd.f32 %v5345_v33, %v2713_v22  ;;  %v4913_v9 = vmul.f32 -1.442695, %v6854_v31 }
 0x4f5   : > { %v5349_v28 = vpop.eup %5348  ;;  %v2542_v38 = vadd.f32 1.0, %v5347_v49 }
 0x4f6   : > { %v2718_v23 = vsel %vm2717_vm4, %v5345_v33, %v2714_v17  ;;  %v2726_v41 = vmul.f32 %v5349_v28, %v6841_v43  ;;  %5350 = vpow2.f32 %v4913_v9  ;;  %vm2731_vm6 = vweird.f32 %v5349_v28 }
 0x4f7   : > { %v2723_v16 = vsel %vm2720_vm5, %v2722_v37, %v2718_v23  ;;  %5352 = vrcp.f32 %v2542_v38  ;;  %vm2732_vm8 = vmor %vm2730_vm7, %vm2731_vm6  ;;  %v2751_v0 = vand.u32 2147483648, %v2542_v38  ;;  %v2749_v50 = vand.u32 2147483647, %v2542_v38  ;;  %v5163_v23 = vld [vmem:[%s7446_s7 + $0x3] ss:$0 sm:$0xff] }
 0x4f8   : > { %v2796_v36 = vmul.f32 %v2723_v16, %v6813_v25  ;;  %v2727_v52 = vsub.f32 1.0, %v2726_v41  ;;  %v2734_v25 = vand.u32 2147483647, %v6841_v43  ;;  %vm2745_vm11 = vweird.f32 %v2542_v38 }
 0x4f9   : > { %v2478_v8 = vpop.f32.mrf.mxu1  ;;  %v2752_v47 = vor.u32 1.1754944e-38, %v2751_v0  ;;  %vm2750_vm13 = vcmp.eq.f32.partialorder %v2749_v50, 8.507059e+37  ;;  %v5092_v50 = vld [vmem:[%s7445_s6 + $0x18] sm:$0xff]  ;;  %vm3022_vm7 = vcmask 523264  }
 0x4fa   : > { %v2806_v3 = vpack.c.bf16 %v2796_v36, %v2795_v5  ;;  %v2728_v39 = vmul.f32 %v5349_v28, %v2727_v52  ;;  %v6861_v55 = vadd.f32 %v6704_v58, %v2478_v8  ;;  %vm2735_vm10 = vcmp.eq.f32.partialorder %v2734_v25, 8.507059e+37 }
 0x4fc   : > { %v5351_v56 = vpop.eup %5350  ;;  %v4914_v57 = vmul.f32 -1.442695, %v6861_v55  ;;  %4928 = vmatmul.msk.bf16.gmra.mxu3 %vm710_vm0, %v2806_v3  ;;  %v2729_v60 = vadd.f32 %v5349_v28, %v2728_v39 }
 0x4fd   : > { %v5353_v59 = vpop.eup %5352  ;;  %v2543_v62 = vadd.f32 1.0, %v5351_v56 }
 0x4fe   : > { %v2741_v63 = vmul.f32 %v5353_v59, %v2542_v38  ;;  %5354 = vpow2.f32 %v4914_v57  ;;  %v2733_v1 = vsel %vm2732_vm8, %v5349_v28, %v2729_v60  ;;  %vm2746_vm9 = vweird.f32 %v5353_v59 }
 0x4ff   : > { %5356 = vrcp.f32 %v2543_v62  ;;  %v2738_v35 = vsel %vm2735_vm10, %v2737_v14, %v2733_v1  ;;  %vm2747_vm12 = vmor %vm2745_vm11, %vm2746_vm9  ;;  %v2766_v24 = vand.u32 2147483648, %v2543_v62  ;;  %vm2760_vm15 = vweird.f32 %v2543_v62 }
 0x500   : > { %v2742_v58 = vsub.f32 1.0, %v2741_v63  ;;  %v2797_v30 = vmul.f32 %v2738_v35, %v6830_v61  ;;  %v2764_v21 = vand.u32 2147483647, %v2543_v62 }
 0x502   : > { %v2743_v2 = vmul.f32 %v5353_v59, %v2742_v58  ;;  %vm2765_vm1 = vcmp.eq.f32.partialorder %v2764_v21, 8.507059e+37 }
 0x504   : > { %v5355_v48 = vpop.eup %5354  ;;  %v2744_v51 = vadd.f32 %v5353_v59, %v2743_v2  ;;  %v5093_v2 = vld [vmem:[%s7445_s6 + $0x20] sm:$0xff] }
 0x505   : > { %v5357_v32 = vpop.eup %5356  ;;  %v2544_v53 = vadd.f32 1.0, %v5355_v48 }
 0x506   : > { %v2748_v46 = vsel %vm2747_vm12, %v5353_v59, %v2744_v51  ;;  %v2756_v42 = vmul.f32 %v5357_v32, %v2543_v62  ;;  %vm2761_vm14 = vweird.f32 %v5357_v32 }
 0x507   : > { %v2753_v7 = vsel %vm2750_vm13, %v2752_v47, %v2748_v46  ;;  %5358 = vrcp.f32 %v2544_v53  ;;  %vm2762_vm2 = vmor %vm2760_vm15, %vm2761_vm14  ;;  %v2781_v40 = vand.u32 2147483648, %v2544_v53  ;;  %v2779_v61 = vand.u32 2147483647, %v2544_v53 }
 0x508   : > { %v2798_v44 = vmul.f32 %v2753_v7, %v6837_v27  ;;  %v2757_v33 = vsub.f32 1.0, %v2756_v42  ;;  %v2767_v27 = vor.u32 1.1754944e-38, %v2766_v24  ;;  %vm2775_vm4 = vweird.f32 %v2544_v53 }
 0x509   : > { %v2782_v49 = vor.u32 1.1754944e-38, %v2781_v40  ;;  %vm2780_vm6 = vcmp.eq.f32.partialorder %v2779_v61, 8.507059e+37 }
 0x50a   : > { %v2807_v43 = vpack.c.bf16 %v2798_v44, %v2797_v30  ;;  %v2758_v54 = vmul.f32 %v5357_v32, %v2757_v33 }
 0x50c   : > { %4929 = vmatmul.msk.bf16.gmra.mxu3 %vm710_vm0, %v2807_v43  ;;  %v2759_v45 = vadd.f32 %v5357_v32, %v2758_v54 }
 0x50d   : > { %v5359_v13 = vpop.eup %5358 }
 0x50e   : > { %v2771_v20 = vmul.f32 %v5359_v13, %v2544_v53  ;;  %v2763_v10 = vsel %vm2762_vm2, %v5357_v32, %v2759_v45  ;;  %vm2776_vm3 = vweird.f32 %v5359_v13  ;;  %v5091_v32 = vld [vmem:[%s7445_s6 + $0x10] sm:$0xff] }
 0x50f   : > { %v2768_v4 = vsel %vm2765_vm1, %v2767_v27, %v2763_v10  ;;  %vm2777_vm5 = vmor %vm2775_vm4, %vm2776_vm3 }
 0x510   : > { %v2772_v15 = vsub.f32 1.0, %v2771_v20  ;;  %v2799_v28 = vmul.f32 %v2768_v4, %v6854_v31  ;;  %v5094_v31 = vld [vmem:[%s7445_s6 + $0x28] sm:$0xff] }
 0x511   : > { %3051 = vmatpush.bf16.msra.mxu2 %v5094_v31 }
 0x512   : > { %v2773_v29 = vmul.f32 %v5359_v13, %v2772_v15 }
 0x514   : > { %v2774_v22 = vadd.f32 %v5359_v13, %v2773_v29 }
 0x515   : > { %3052 = vmatpush.bf16.msra.mxu2 %v5093_v2 }
 0x516   : > { %v2778_v17 = vsel %vm2777_vm5, %v5359_v13, %v2774_v22 }
 0x517   : > { %v2783_v9 = vsel %vm2780_vm6, %v2782_v49, %v2778_v17 }
 0x518   : > { %v2800_v34 = vmul.f32 %v2783_v9, %v6861_v55 }
 0x519   : > { %3053 = vmatpush.bf16.msra.mxu2 %v5092_v50 }
 0x51a   : > { %v2808_v37 = vpack.c.bf16 %v2800_v34, %v2799_v28 }
 0x51c   : > { %4930 = vmatmul.msk.bf16.gmra.mxu3 %vm710_vm0, %v2808_v37 }
 0x51d   : > { %3054 = vmatpush.bf16.msra.mxu2 %v5091_v32  ;;  %v7532_v32 = vld [vmem:[#allocation10_spill] sm:$0xff] }
 0x52f   : > { %v2860_v38 = vpop.f32.mrf.mxu3 }
 0x530   : > { %v2861_v16 = vadd.f32 %v5163_v23, %v2860_v38  ;;  %v7525_v38 = vld [vmem:[#allocation2_spill] sm:$0xff] }
 0x537   : > { %v2862_v41 = vpop.f32.mrf.mxu3 }
 0x538   : > { %v2863_v5 = vadd.f32 %v5163_v23, %v2862_v41 }
 0x53a   : > { %v5120_v36 = vpack.i.bf16 %v2863_v5, %v2861_v16 }
 0x53c   : > { %5121 = vrot.lane.b32.xlu2 %v5120_v36, %s5563_s15  ;;  %v7526_v36 = vld [vmem:[#allocation4_spill] sm:$0xff] }
 0x53f   : > { %v2865_v52 = vpop.f32.mrf.mxu3 }
 0x540   : > { %v2866_v3 = vadd.f32 %v5163_v23, %v2865_v52  ;;  %v7527_v52 = vld [vmem:[#allocation3_spill] sm:$0xff] }
 0x547   : > { %v2867_v8 = vpop.f32.mrf.mxu3 }
 0x548   : > { %v2868_v39 = vadd.f32 %v5163_v23, %v2867_v8 }
 0x54a   : > { %v5125_v55 = vpack.i.bf16 %v2868_v39, %v2866_v3 }
 0x54c   : > { %5126 = vrot.lane.b32.xlu0 %v5125_v55, %s5563_s15 }
 0x54f   : > { %v2870_v56 = vpop.f32.mrf.mxu3 }
 0x550   : > { %v2871_v59 = vadd.f32 %v5163_v23, %v2870_v56  ;;  %v7528_v56 = vld [vmem:[#allocation6_spill] sm:$0xff] }
 0x557   : > { %v2872_v57 = vpop.f32.mrf.mxu3 }
 0x558   : > { %v2873_v62 = vadd.f32 %v5163_v23, %v2872_v57 }
 0x55a   : > { %v5130_v60 = vpack.i.bf16 %v2873_v62, %v2871_v59  ;;  %v7529_v59 = vld [vmem:[#allocation5_spill] sm:$0xff] }
 0x55c   : > { %5131 = vrot.lane.b32.xlu1 %v5130_v60, %s5563_s15 }
 0x55f   : > { %v2875_v63 = vpop.f32.mrf.mxu3 }
 0x560   : > { %v2876_v25 = vadd.f32 %v5163_v23, %v2875_v63 }
 0x567   : > { %v2877_v6 = vpop.f32.mrf.mxu3 }
 0x568   : > { %v2878_v58 = vadd.f32 %v5163_v23, %v2877_v6 }
 0x56a   : > { %v5135_v0 = vpack.i.bf16 %v2878_v58, %v2876_v25  ;;  %v7530_v58 = vld [vmem:[#allocation8_spill] sm:$0xff] }
 0x56c   : > { %5136 = vrot.lane.b32.xlu2 %v5135_v0, %s5563_s15 }
 0x56f   : > { %v2880_v1 = vpop.f32.mrf.mxu3 }
 0x570   : > { %v2881_v48 = vadd.f32 %v5163_v23, %v2880_v1  ;;  %v7531_v1 = vld [vmem:[#allocation7_spill] sm:$0xff] }
 0x577   : > { %v2882_v14 = vpop.f32.mrf.mxu3 }
 0x578   : > { %v2883_v51 = vadd.f32 %v5163_v23, %v2882_v14 }
 0x57a   : > { %v5140_v35 = vpack.i.bf16 %v2883_v51, %v2881_v48 }
 0x57c   : > { %5141 = vrot.lane.b32.xlu0 %v5140_v35, %s5563_s15 }
 0x57f   : > { %v2885_v47 = vpop.f32.mrf.mxu3 }
 0x580   : > { %v2886_v46 = vadd.f32 %v5163_v23, %v2885_v47  ;;  %v7533_v47 = vld [vmem:[#allocation9_spill] sm:$0xff] }
 0x587   : > { %v2887_v53 = vpop.f32.mrf.mxu3 }
 0x588   : > { %v2888_v42 = vadd.f32 %v5163_v23, %v2887_v53 }
 0x58a   : > { %v5145_v7 = vpack.i.bf16 %v2888_v42, %v2886_v46  ;;  %v6938_v42 = vld [vmem:[%s7446_s7 + $0x4] ss:$0 sm:$0xff] }
 0x58c   : > { %5146 = vrot.lane.b32.xlu1 %v5145_v7, %s5563_s15 }
 0x58f   : > { %v2890_v30 = vpop.f32.mrf.mxu3 }
 0x590   : > { %v2891_v13 = vadd.f32 %v5163_v23, %v2890_v30 }
 0x596   : > { %v5122_v44 = vpop.permute.xlu2 %5121 }
 0x597   : > { %v5124_v33 = vunpack.i.h.bf16 %v5122_v44  ;;  %v5123_v43 = vunpack.i.l.bf16 %v5122_v44  ;;  %v2892_v54 = vpop.f32.mrf.mxu3 }
 0x598   : > { %v2893_v45 = vadd.f32 %v5163_v23, %v2892_v54  ;;  %v7534_v54 = vld [vmem:[#allocation12_spill] sm:$0xff] }
 0x599   : > { %v2965_v20 = vsel %vm710_vm0, %v5808_v12, %v5124_v33  ;;  %v2964_v24 = vsel %vm710_vm0, %v5806_v11, %v5123_v43 }
 0x59a   : > { %v2980_v21 = vpack.c.bf16 %v2965_v20, %v2964_v24  ;;  %v5150_v15 = vpack.i.bf16 %v2893_v45, %v2891_v13  ;;  %v7535_v45 = vld [vmem:[#allocation11_spill] sm:$0xff] }
 0x59c   : > { %5151 = vrot.lane.b32.xlu2 %v5150_v15, %s5563_s15  ;;  %4947 = vmatmul.msk.bf16.vlgmr.msra.gmra.mxu2 %vm3022_vm7, %v2980_v21  ;;  %v5095_v15 = vld [vmem:[%s7445_s6 + $0x30] sm:$0xff] }
 0x59f   : > { %v2895_v40 = vpop.f32.mrf.mxu3 }
 0x5a0   : > { %v2896_v29 = vadd.f32 %v5163_v23, %v2895_v40 }
 0x5a7   : > { %v2897_v10 = vpop.f32.mrf.mxu3 }
 0x5a8   : > { %v2898_v61 = vadd.f32 %v5163_v23, %v2897_v10 }
 0x5aa   : > { %v5155_v27 = vpack.i.bf16 %v2898_v61, %v2896_v29 }
 0x5ac   : > { %5156 = vrot.lane.b32.xlu0 %v5155_v27, %s5563_s15 }
 0x5be   : > { %v5127_v22 = vpop.permute.xlu0 %5126 }
 0x5bf   : > { %v5129_v4 = vunpack.i.h.bf16 %v5127_v22  ;;  %v5128_v12 = vunpack.i.l.bf16 %v5127_v22 }
 0x5c1   : > { %v2967_v11 = vsel %vm710_vm0, %v5815_v19, %v5129_v4  ;;  %v2966_v49 = vsel %vm710_vm0, %v5813_v18, %v5128_v12 }
 0x5c2   : > { %v2981_v17 = vpack.c.bf16 %v2967_v11, %v2966_v49 }
 0x5c4   : > { %4948 = vmatmul.msk.bf16.gmra.mxu2 %vm3022_vm7, %v2981_v17 }
 0x5c6   : > { %v5137_v16 = vpop.permute.xlu2 %5136 }
 0x5c7   : > { %v5139_v19 = vunpack.i.h.bf16 %v5137_v16  ;;  %v5138_v5 = vunpack.i.l.bf16 %v5137_v16 }
 0x5c9   : > { %v2971_v18 = vsel %vm710_vm0, %v7526_v36, %v5139_v19  ;;  %v2970_v31 = vsel %vm710_vm0, %v7527_v52, %v5138_v5 }
 0x5ca   : > { %v2983_v8 = vpack.c.bf16 %v2971_v18, %v2970_v31 }
 0x5ce   : > { %v5132_v9 = vpop.permute.xlu1 %5131 }
 0x5cf   : > { %v5134_v28 = vunpack.i.h.bf16 %v5132_v9  ;;  %v5133_v34 = vunpack.i.l.bf16 %v5132_v9 }
 0x5d1   : > { %v2969_v37 = vsel %vm710_vm0, %v5828_v26, %v5134_v28  ;;  %v2968_v23 = vsel %vm710_vm0, %v7525_v38, %v5133_v34  ;;  %v5096_v26 = vld [vmem:[%s7445_s6 + $0x38] sm:$0xff] }
 0x5d2   : > { %v2982_v41 = vpack.c.bf16 %v2969_v37, %v2968_v23  ;;  %3472 = vmatpush.bf16.msrb.mxu0 %v5096_v26 }
 0x5d4   : > { %4949 = vmatmul.msk.bf16.gmra.mxu2 %vm3022_vm7, %v2982_v41 }
 0x5d6   : > { %3473 = vmatpush.bf16.msrb.mxu0 %v5095_v15 }
 0x5e4   : > { %4950 = vmatmul.msk.bf16.gmra.mxu2 %vm3022_vm7, %v2983_v8 }
 0x5ee   : > { %v5142_v3 = vpop.permute.xlu0 %5141 }
 0x5ef   : > { %v5144_v39 = vunpack.i.h.bf16 %v5142_v3  ;;  %v5143_v55 = vunpack.i.l.bf16 %v5142_v3 }
 0x5f1   : > { %v2973_v57 = vsel %vm710_vm0, %v7528_v56, %v5144_v39  ;;  %v2972_v62 = vsel %vm710_vm0, %v7529_v59, %v5143_v55 }
 0x5f2   : > { %v2984_v60 = vpack.c.bf16 %v2973_v57, %v2972_v62 }
 0x5f4   : > { %4951 = vmatmul.msk.bf16.gmra.mxu2 %vm3022_vm7, %v2984_v60 }
 0x5f6   : > { %v5152_v14 = vpop.permute.xlu2 %5151 }
 0x5f7   : > { %v5154_v48 = vunpack.i.h.bf16 %v5152_v14  ;;  %v5153_v51 = vunpack.i.l.bf16 %v5152_v14 }
 0x5f9   : > { %v2977_v35 = vsel %vm710_vm0, %v7532_v32, %v5154_v48  ;;  %v2976_v53 = vsel %vm710_vm0, %v7533_v47, %v5153_v51 }
 0x5fa   : > { %v2986_v46 = vpack.c.bf16 %v2977_v35, %v2976_v53 }
 0x5fe   : > { %v5147_v63 = vpop.permute.xlu1 %5146 }
 0x5ff   : > { %v5149_v6 = vunpack.i.h.bf16 %v5147_v63  ;;  %v5148_v25 = vunpack.i.l.bf16 %v5147_v63 }
 0x601   : > { %v2975_v0 = vsel %vm710_vm0, %v7530_v58, %v5149_v6  ;;  %v2974_v2 = vsel %vm710_vm0, %v7531_v1, %v5148_v25 }
 0x602   : > { %v2985_v50 = vpack.c.bf16 %v2975_v0, %v2974_v2 }
 0x604   : > { %4952 = vmatmul.msk.bf16.gmra.mxu2 %vm3022_vm7, %v2985_v50 }
 0x614   : > { %4953 = vmatmul.msk.bf16.gmra.mxu2 %vm3022_vm7, %v2986_v46 }
 0x61e   : > { %v5157_v7 = vpop.permute.xlu0 %5156 }
 0x61f   : > { %v5159_v30 = vunpack.i.h.bf16 %v5157_v7  ;;  %v5158_v44 = vunpack.i.l.bf16 %v5157_v7  ;;  %v3056_v33 = vpop.f32.mrf.mxu2 }
 0x620   : > { %v3057_v43 = vadd.f32 %v6938_v42, %v3056_v33 }
 0x621   : > { %v2979_v13 = vsel %vm710_vm0, %v7534_v54, %v5159_v30  ;;  %v2978_v20 = vsel %vm710_vm0, %v7535_v45, %v5158_v44 }
 0x622   : > { %v2987_v24 = vpack.c.bf16 %v2979_v13, %v2978_v20  ;;  %v4955_v21 = vmul.f32 -1.442695, %v3057_v43 }
 0x624   : > { %5360 = vpow2.f32 %v4955_v21  ;;  %4954 = vmatmul.msk.bf16.gmra.mxu2 %vm3022_vm7, %v2987_v24 }
 0x627   : > { %v3058_v40 = vpop.f32.mrf.mxu2 }
 0x628   : > { %v3059_v10 = vadd.f32 %v6938_v42, %v3058_v40 }
 0x62a   : > { %v5361_v29 = vpop.eup %5360  ;;  %v4956_v61 = vmul.f32 -1.442695, %v3059_v10 }
 0x62b   : > { %v3144_v27 = vadd.f32 1.0, %v5361_v29 }
 0x62c   : > { %5362 = vpow2.f32 %v4956_v61 }
 0x62d   : > { %5364 = vrcp.f32 %v3144_v27  ;;  %v3171_v37 = vand.u32 2147483648, %v3144_v27  ;;  %vm3165_vm9 = vweird.f32 %v3144_v27  ;;  %v3169_v38 = vand.u32 2147483647, %v3144_v27 }
 0x62f   : > { %v3172_v36 = vor.u32 1.1754944e-38, %v3171_v37  ;;  %vm3170_vm12 = vcmp.eq.f32.partialorder %v3169_v38, 8.507059e+37 }
 0x632   : > { %v5363_v22 = vpop.eup %5362 }
 0x633   : > { %v5365_v4 = vpop.eup %5364  ;;  %v3145_v12 = vadd.f32 1.0, %v5363_v22 }
 0x634   : > { %v3161_v11 = vmul.f32 %v5365_v4, %v3144_v27  ;;  %vm3166_vm8 = vweird.f32 %v5365_v4 }
 0x635   : > { %5366 = vrcp.f32 %v3145_v12  ;;  %vm3167_vm10 = vmor %vm3165_vm9, %vm3166_vm8  ;;  %v3186_v41 = vand.u32 2147483648, %v3145_v12  ;;  %v3184_v5 = vand.u32 2147483647, %v3145_v12  ;;  %vm3180_vm13 = vweird.f32 %v3145_v12 }
 0x636   : > { %v3162_v49 = vsub.f32 1.0, %v3161_v11 }
 0x637   : > { %v3187_v31 = vor.u32 1.1754944e-38, %v3186_v41  ;;  %vm3185_vm15 = vcmp.eq.f32.partialorder %v3184_v5, 8.507059e+37 }
 0x638   : > { %v3163_v17 = vmul.f32 %v5365_v4, %v3162_v49 }
 0x63a   : > { %v3164_v28 = vadd.f32 %v5365_v4, %v3163_v17 }
 0x63b   : > { %v5367_v9 = vpop.eup %5366 }
 0x63c   : > { %v3176_v34 = vmul.f32 %v5367_v9, %v3145_v12  ;;  %v3168_v16 = vsel %vm3167_vm10, %v5365_v4, %v3164_v28  ;;  %vm3181_vm11 = vweird.f32 %v5367_v9 }
 0x63d   : > { %v3173_v52 = vsel %vm3170_vm12, %v3172_v36, %v3168_v16  ;;  %vm3182_vm14 = vmor %vm3180_vm13, %vm3181_vm11 }
 0x63e   : > { %v3177_v23 = vsub.f32 1.0, %v3176_v34  ;;  %v3400_v3 = vmul.f32 %v3173_v52, %v3057_v43 }
 0x640   : > { %v3178_v19 = vmul.f32 %v5367_v9, %v3177_v23 }
 0x642   : > { %v3179_v18 = vadd.f32 %v5367_v9, %v3178_v19 }
 0x644   : > { %v3183_v8 = vsel %vm3182_vm14, %v5367_v9, %v3179_v18 }
 0x645   : > { %v3188_v26 = vsel %vm3185_vm15, %v3187_v31, %v3183_v8 }
 0x646   : > { %v3401_v39 = vmul.f32 %v3188_v26, %v3059_v10 }
 0x647   : > { %v3061_v55 = vpop.f32.mrf.mxu2 }
 0x648   : > { %v3416_v56 = vpack.c.bf16 %v3401_v39, %v3400_v3  ;;  %v3062_v57 = vadd.f32 %v6938_v42, %v3061_v55 }
 0x64a   : > { %v4957_v59 = vmul.f32 -1.442695, %v3062_v57  ;;  %4979 = vmatmul.msk.bf16.vlgmr.msrb.gmra.mxu0 %vm710_vm0, %v3416_v56 }
 0x64c   : > { %5368 = vpow2.f32 %v4957_v59 }
 0x64f   : > { %v3063_v62 = vpop.f32.mrf.mxu2 }
 0x650   : > { %v3064_v60 = vadd.f32 %v6938_v42, %v3063_v62 }
 0x652   : > { %v5369_v63 = vpop.eup %5368  ;;  %v4958_v6 = vmul.f32 -1.442695, %v3064_v60 }
 0x653   : > { %v3146_v25 = vadd.f32 1.0, %v5369_v63 }
 0x654   : > { %5370 = vpow2.f32 %v4958_v6 }
 0x655   : > { %5372 = vrcp.f32 %v3146_v25  ;;  %v3201_v43 = vand.u32 2147483648, %v3146_v25  ;;  %vm3195_vm3 = vweird.f32 %v3146_v25  ;;  %v3199_v54 = vand.u32 2147483647, %v3146_v25 }
 0x657   : > { %v3066_v58 = vpop.f32.mrf.mxu2  ;;  %v3202_v29 = vor.u32 1.1754944e-38, %v3201_v43  ;;  %vm3200_vm5 = vcmp.eq.f32.partialorder %v3199_v54, 8.507059e+37 }
 0x658   : > { %v6954_v0 = vadd.f32 %v6938_v42, %v3066_v58 }
 0x65a   : > { %v5371_v1 = vpop.eup %5370  ;;  %v4959_v2 = vmul.f32 -1.442695, %v6954_v0 }
 0x65b   : > { %v5373_v50 = vpop.eup %5372  ;;  %v3147_v14 = vadd.f32 1.0, %v5371_v1 }
 0x65c   : > { %v3191_v48 = vmul.f32 %v5373_v50, %v3146_v25  ;;  %5374 = vpow2.f32 %v4959_v2  ;;  %vm3196_vm2 = vweird.f32 %v5373_v50 }
 0x65d   : > { %5376 = vrcp.f32 %v3147_v14  ;;  %vm6964_vm1 = vmor %vm3195_vm3, %vm3196_vm2  ;;  %v3214_v20 = vand.u32 2147483647, %v3147_v14  ;;  %v3216_v24 = vand.u32 2147483648, %v3147_v14  ;;  %vm3210_vm6 = vweird.f32 %v3147_v14 }
 0x65e   : > { %v3192_v51 = vsub.f32 1.0, %v3191_v48 }
 0x65f   : > { %v3068_v32 = vpop.f32.mrf.mxu2  ;;  %v3217_v11 = vor.u32 1.1754944e-38, %v3216_v24  ;;  %vm3215_vm8 = vcmp.eq.f32.partialorder %v3214_v20, 8.507059e+37 }
 0x660   : > { %v3193_v35 = vmul.f32 %v5373_v50, %v3192_v51  ;;  %v6958_v47 = vadd.f32 %v6938_v42, %v3068_v32 }
 0x662   : > { %v5375_v53 = vpop.eup %5374  ;;  %v4960_v46 = vmul.f32 -1.442695, %v6958_v47  ;;  %v3194_v44 = vadd.f32 %v5373_v50, %v3193_v35 }
 0x663   : > { %v5377_v7 = vpop.eup %5376  ;;  %v6961_v30 = vadd.f32 1.0, %v5375_v53 }
 0x664   : > { %v3206_v33 = vmul.f32 %v5377_v7, %v3147_v14  ;;  %5378 = vpow2.f32 %v4960_v46  ;;  %v3198_v15 = vsel %vm6964_vm1, %v5373_v50, %v3194_v44  ;;  %vm3211_vm4 = vweird.f32 %v5377_v7 }
 0x665   : > { %5380 = vrcp.f32 %v6961_v30  ;;  %v3203_v12 = vsel %vm3200_vm5, %v3202_v29, %v3198_v15  ;;  %vm3212_vm7 = vmor %vm3210_vm6, %vm3211_vm4  ;;  %v3231_v26 = vand.u32 2147483648, %v6961_v30  ;;  %vm3225_vm10 = vweird.f32 %v6961_v30 }
 0x666   : > { %v3207_v13 = vsub.f32 1.0, %v3206_v33  ;;  %v3402_v34 = vmul.f32 %v3203_v12, %v3062_v57  ;;  %v3229_v3 = vand.u32 2147483647, %v6961_v30 }
 0x667   : > { %v3071_v21 = vpop.f32.mrf.mxu2  ;;  %v3232_v6 = vor.u32 1.1754944e-38, %v3231_v26 }
 0x668   : > { %v3208_v40 = vmul.f32 %v5377_v7, %v3207_v13  ;;  %v6971_v10 = vadd.f32 %v6938_v42, %v3071_v21  ;;  %vm3230_vm13 = vcmp.eq.f32.partialorder %v3229_v3, 8.507059e+37 }
 0x66a   : > { %v5379_v61 = vpop.eup %5378  ;;  %v3209_v27 = vadd.f32 %v5377_v7, %v3208_v40  ;;  %v4961_v22 = vmul.f32 -1.442695, %v6971_v10 }
 0x66b   : > { %v5381_v4 = vpop.eup %5380  ;;  %v3149_v49 = vadd.f32 1.0, %v5379_v61 }
 0x66c   : > { %v3213_v17 = vsel %vm3212_vm7, %v5377_v7, %v3209_v27  ;;  %v3221_v9 = vmul.f32 %v5381_v4, %v6961_v30  ;;  %5382 = vpow2.f32 %v4961_v22  ;;  %vm3226_vm9 = vweird.f32 %v5381_v4 }
 0x66d   : > { %v3218_v28 = vsel %vm3215_vm8, %v3217_v11, %v3213_v17  ;;  %5384 = vrcp.f32 %v3149_v49  ;;  %vm6986_vm11 = vmor %vm3225_vm10, %vm3226_vm9  ;;  %v3244_v56 = vand.u32 2147483647, %v3149_v49  ;;  %v3246_v57 = vand.u32 2147483648, %v3149_v49 }
 0x66e   : > { %v3403_v37 = vmul.f32 %v3218_v28, %v3064_v60  ;;  %v3222_v38 = vsub.f32 1.0, %v3221_v9  ;;  %vm3240_vm14 = vweird.f32 %v3149_v49 }
 0x66f   : > { %v3073_v23 = vpop.f32.mrf.mxu2  ;;  %v3247_v14 = vor.u32 1.1754944e-38, %v3246_v57  ;;  %vm3245_vm2 = vcmp.eq.f32.partialorder %v3244_v56, 8.507059e+37 }
 0x670   : > { %v3417_v41 = vpack.c.bf16 %v3403_v37, %v3402_v34  ;;  %v3223_v16 = vmul.f32 %v5381_v4, %v3222_v38  ;;  %v6976_v19 = vadd.f32 %v6938_v42, %v3073_v23 }
 0x672   : > { %v5383_v5 = vpop.eup %5382  ;;  %v4962_v36 = vmul.f32 -1.442695, %v6976_v19  ;;  %4980 = vmatmul.msk.bf16.gmra.mxu0 %vm710_vm0, %v3417_v41  ;;  %v3224_v31 = vadd.f32 %v5381_v4, %v3223_v16 }
 0x673   : > { %v5385_v18 = vpop.eup %5384  ;;  %v6980_v52 = vadd.f32 1.0, %v5383_v5 }
 0x674   : > { %v3236_v8 = vmul.f32 %v5385_v18, %v3149_v49  ;;  %5386 = vpow2.f32 %v4962_v36  ;;  %v3228_v62 = vsel %vm6986_vm11, %v5381_v4, %v3224_v31  ;;  %vm3241_vm12 = vweird.f32 %v5385_v18 }
 0x675   : > { %5388 = vrcp.f32 %v6980_v52  ;;  %v3233_v50 = vsel %vm3230_vm13, %v3232_v6, %v3228_v62  ;;  %vm3242_vm15 = vmor %vm3240_vm14, %vm3241_vm12  ;;  %vm3255_vm1 = vweird.f32 %v6980_v52  ;;  %v3259_v21 = vand.u32 2147483647, %v6980_v52 }
 0x676   : > { %v3237_v39 = vsub.f32 1.0, %v3236_v8  ;;  %v3404_v53 = vmul.f32 %v3233_v50, %v6954_v0 }
 0x677   : > { %v3076_v59 = vpop.f32.mrf.mxu2  ;;  %vm3260_vm6 = vcmp.eq.f32.partialorder %v3259_v21, 8.507059e+37 }
 0x678   : > { %v3238_v60 = vmul.f32 %v5385_v18, %v3237_v39  ;;  %v6993_v63 = vadd.f32 %v6938_v42, %v3076_v59 }
 0x67a   : > { %v5387_v25 = vpop.eup %5386  ;;  %v3239_v58 = vadd.f32 %v5385_v18, %v3238_v60  ;;  %v4963_v1 = vmul.f32 -1.442695, %v6993_v63 }
 0x67b   : > { %v5389_v2 = vpop.eup %5388  ;;  %v3151_v48 = vadd.f32 1.0, %v5387_v25 }
 0x67c   : > { %v3243_v51 = vsel %vm3242_vm15, %v5385_v18, %v3239_v58  ;;  %v3251_v32 = vmul.f32 %v5389_v2, %v6980_v52  ;;  %5390 = vpow2.f32 %v4963_v1  ;;  %vm3256_vm3 = vweird.f32 %v5389_v2 }
 0x67d   : > { %v3248_v35 = vsel %vm3245_vm2, %v3247_v14, %v3243_v51  ;;  %5392 = vrcp.f32 %v3151_v48  ;;  %vm7010_vm4 = vmor %vm3255_vm1, %vm3256_vm3  ;;  %v3274_v29 = vand.u32 2147483647, %v3151_v48  ;;  %v3276_v61 = vand.u32 2147483648, %v3151_v48 }
 0x67e   : > { %v3405_v46 = vmul.f32 %v3248_v35, %v6958_v47  ;;  %v3252_v7 = vsub.f32 1.0, %v3251_v32  ;;  %v3261_v47 = vand.u32 2147483648, %v6980_v52  ;;  %vm3270_vm7 = vweird.f32 %v3151_v48 }
 0x67f   : > { %v3078_v30 = vpop.f32.mrf.mxu2  ;;  %v3277_v37 = vor.u32 1.1754944e-38, %v3276_v61  ;;  %vm3275_vm9 = vcmp.eq.f32.partialorder %v3274_v29, 8.507059e+37 }
 0x680   : > { %v3418_v44 = vpack.c.bf16 %v3405_v46, %v3404_v53  ;;  %v3253_v33 = vmul.f32 %v5389_v2, %v3252_v7  ;;  %v7000_v43 = vadd.f32 %v6938_v42, %v3078_v30  ;;  %v3262_v11 = vor.u32 1.1754944e-38, %v3261_v47 }
 0x682   : > { %v5391_v54 = vpop.eup %5390  ;;  %v4964_v13 = vmul.f32 -1.442695, %v7000_v43  ;;  %4981 = vmatmul.msk.bf16.gmra.mxu0 %vm710_vm0, %v3418_v44  ;;  %v3254_v24 = vadd.f32 %v5389_v2, %v3253_v33 }
 0x683   : > { %v5393_v45 = vpop.eup %5392  ;;  %v7004_v20 = vadd.f32 1.0, %v5391_v54 }
 0x684   : > { %v3266_v0 = vmul.f32 %v5393_v45, %v3151_v48  ;;  %5394 = vpow2.f32 %v4964_v13  ;;  %v3258_v22 = vsel %vm7010_vm4, %v5389_v2, %v3254_v24  ;;  %vm3271_vm5 = vweird.f32 %v5393_v45 }
 0x685   : > { %5396 = vrcp.f32 %v7004_v20  ;;  %v3263_v34 = vsel %vm3260_vm6, %v3262_v11, %v3258_v22  ;;  %vm3272_vm8 = vmor %vm3270_vm7, %vm3271_vm5  ;;  %vm3285_vm11 = vweird.f32 %v7004_v20  ;;  %v3289_v59 = vand.u32 2147483647, %v7004_v20 }
 0x686   : > { %v3267_v15 = vsub.f32 1.0, %v3266_v0  ;;  %v3406_v5 = vmul.f32 %v3263_v34, %v6971_v10 }
 0x687   : > { %v3081_v27 = vpop.f32.mrf.mxu2  ;;  %vm3290_vm14 = vcmp.eq.f32.partialorder %v3289_v59, 8.507059e+37 }
 0x688   : > { %v3268_v4 = vmul.f32 %v5393_v45, %v3267_v15  ;;  %v7017_v12 = vadd.f32 %v6938_v42, %v3081_v27 }
 0x68a   : > { %v5395_v49 = vpop.eup %5394  ;;  %v3269_v17 = vadd.f32 %v5393_v45, %v3268_v4  ;;  %v4965_v9 = vmul.f32 -1.442695, %v7017_v12 }
 0x68b   : > { %v5397_v28 = vpop.eup %5396  ;;  %v3153_v38 = vadd.f32 1.0, %v5395_v49 }
 0x68c   : > { %v3273_v23 = vsel %vm3272_vm8, %v5393_v45, %v3269_v17  ;;  %v3281_v41 = vmul.f32 %v5397_v28, %v7004_v20  ;;  %5398 = vpow2.f32 %v4965_v9  ;;  %vm3286_vm10 = vweird.f32 %v5397_v28 }
 0x68d   : > { %v3278_v16 = vsel %vm3275_vm9, %v3277_v37, %v3273_v23  ;;  %5400 = vrcp.f32 %v3153_v38  ;;  %vm7034_vm12 = vmor %vm3285_vm11, %vm3286_vm10  ;;  %v3304_v6 = vand.u32 2147483647, %v3153_v38  ;;  %v3306_v25 = vand.u32 2147483648, %v3153_v38 }
 0x68e   : > { %v3407_v36 = vmul.f32 %v3278_v16, %v6976_v19  ;;  %v3282_v18 = vsub.f32 1.0, %v3281_v41  ;;  %v3291_v19 = vand.u32 2147483648, %v7004_v20  ;;  %vm3300_vm15 = vweird.f32 %v3153_v38 }
 0x68f   : > { %v3083_v52 = vpop.f32.mrf.mxu2  ;;  %v3307_v46 = vor.u32 1.1754944e-38, %v3306_v25  ;;  %vm3305_vm3 = vcmp.eq.f32.partialorder %v3304_v6, 8.507059e+37 }
 0x690   : > { %v3419_v31 = vpack.c.bf16 %v3407_v36, %v3406_v5  ;;  %v3283_v8 = vmul.f32 %v5397_v28, %v3282_v18  ;;  %v7024_v26 = vadd.f32 %v6938_v42, %v3083_v52  ;;  %v3292_v14 = vor.u32 1.1754944e-38, %v3291_v19 }
 0x692   : > { %v5399_v3 = vpop.eup %5398  ;;  %v4966_v39 = vmul.f32 -1.442695, %v7024_v26  ;;  %4982 = vmatmul.msk.bf16.gmra.mxu0 %vm710_vm0, %v3419_v31  ;;  %v3284_v57 = vadd.f32 %v5397_v28, %v3283_v8  ;;  %v5098_v8 = vld [vmem:[%s7445_s6 + $0x48] sm:$0xff] }
 0x693   : > { %v5401_v55 = vpop.eup %5400  ;;  %v7028_v56 = vadd.f32 1.0, %v5399_v3  ;;  %3571 = vmatpush.bf16.msra.mxu1 %v5098_v8 }
 0x694   : > { %v3296_v10 = vmul.f32 %v5401_v55, %v3153_v38  ;;  %5402 = vpow2.f32 %v4966_v39  ;;  %v3288_v1 = vsel %vm7034_vm12, %v5397_v28, %v3284_v57  ;;  %vm3301_vm13 = vweird.f32 %v5401_v55 }
 0x695   : > { %5404 = vrcp.f32 %v7028_v56  ;;  %v3293_v53 = vsel %vm3290_vm14, %v3292_v14, %v3288_v1  ;;  %vm3302_vm2 = vmor %vm3300_vm15, %vm3301_vm13  ;;  %vm3315_vm4 = vweird.f32 %v7028_v56  ;;  %v3319_v27 = vand.u32 2147483647, %v7028_v56 }
 0x696   : > { %v3297_v62 = vsub.f32 1.0, %v3296_v10  ;;  %v3408_v54 = vmul.f32 %v3293_v53, %v6993_v63 }
 0x697   : > { %v3086_v58 = vpop.f32.mrf.mxu2  ;;  %vm3320_vm7 = vcmp.eq.f32.partialorder %v3319_v27, 8.507059e+37 }
 0x698   : > { %v3298_v2 = vmul.f32 %v5401_v55, %v3297_v62  ;;  %v7041_v50 = vadd.f32 %v6938_v42, %v3086_v58  ;;  %v5097_v62 = vld [vmem:[%s7445_s6 + $0x40] sm:$0xff] }
 0x699   : > { %3572 = vmatpush.bf16.msra.mxu1 %v5097_v62 }
 0x69a   : > { %v5403_v48 = vpop.eup %5402  ;;  %v3299_v51 = vadd.f32 %v5401_v55, %v3298_v2  ;;  %v4967_v32 = vmul.f32 -1.442695, %v7041_v50 }
 0x69b   : > { %v5405_v35 = vpop.eup %5404  ;;  %v3155_v7 = vadd.f32 1.0, %v5403_v48 }
 0x69c   : > { %v3303_v30 = vsel %vm3302_vm2, %v5401_v55, %v3299_v51  ;;  %v3311_v44 = vmul.f32 %v5405_v35, %v7028_v56  ;;  %5406 = vpow2.f32 %v4967_v32  ;;  %vm3316_vm1 = vweird.f32 %v5405_v35 }
 0x69d   : > { %v3308_v33 = vsel %vm3305_vm3, %v3307_v46, %v3303_v30  ;;  %5408 = vrcp.f32 %v3155_v7  ;;  %vm7058_vm5 = vmor %vm3315_vm4, %vm3316_vm1  ;;  %v3334_v11 = vand.u32 2147483647, %v3155_v7  ;;  %v3336_v49 = vand.u32 2147483648, %v3155_v7 }
 0x69e   : > { %v3409_v13 = vmul.f32 %v3308_v33, %v7000_v43  ;;  %v3312_v45 = vsub.f32 1.0, %v3311_v44  ;;  %v3321_v43 = vand.u32 2147483648, %v7028_v56  ;;  %vm3330_vm8 = vweird.f32 %v3155_v7 }
 0x69f   : > { %v3088_v20 = vpop.f32.mrf.mxu2  ;;  %v3337_v36 = vor.u32 1.1754944e-38, %v3336_v49  ;;  %vm3335_vm10 = vcmp.eq.f32.partialorder %v3334_v11, 8.507059e+37 }
 0x6a0   : > { %v3420_v24 = vpack.c.bf16 %v3409_v13, %v3408_v54  ;;  %v3313_v0 = vmul.f32 %v5405_v35, %v3312_v45  ;;  %v7048_v47 = vadd.f32 %v6938_v42, %v3088_v20  ;;  %v3322_v37 = vor.u32 1.1754944e-38, %v3321_v43 }
 0x6a2   : > { %v5407_v21 = vpop.eup %5406  ;;  %v4968_v15 = vmul.f32 -1.442695, %v7048_v47  ;;  %4983 = vmatmul.msk.bf16.gmra.mxu0 %vm710_vm0, %v3420_v24  ;;  %v3314_v61 = vadd.f32 %v5405_v35, %v3313_v0 }
 0x6a3   : > { %v5409_v40 = vpop.eup %5408  ;;  %v7052_v29 = vadd.f32 1.0, %v5407_v21 }
 0x6a4   : > { %v3326_v63 = vmul.f32 %v5409_v40, %v3155_v7  ;;  %5410 = vpow2.f32 %v4968_v15  ;;  %v3318_v9 = vsel %vm7058_vm5, %v5405_v35, %v3314_v61  ;;  %vm3331_vm6 = vweird.f32 %v5409_v40 }
 0x6a5   : > { %5412 = vrcp.f32 %v7052_v29  ;;  %v3323_v5 = vsel %vm3320_vm7, %v3322_v37, %v3318_v9  ;;  %vm3332_vm9 = vmor %vm3330_vm8, %vm3331_vm6  ;;  %v3351_v1 = vand.u32 2147483648, %v7052_v29  ;;  %vm3345_vm12 = vweird.f32 %v7052_v29 }
 0x6a6   : > { %v3327_v22 = vsub.f32 1.0, %v3326_v63  ;;  %v3410_v39 = vmul.f32 %v3323_v5, %v7017_v12 }
 0x6a7   : > { %v3091_v17 = vpop.f32.mrf.mxu2  ;;  %v3352_v35 = vor.u32 1.1754944e-38, %v3351_v1 }
 0x6a8   : > { %v3328_v28 = vmul.f32 %v5409_v40, %v3327_v22  ;;  %v7065_v34 = vadd.f32 %v6938_v42, %v3091_v17 }
 0x6aa   : > { %v5411_v38 = vpop.eup %5410  ;;  %v3329_v23 = vadd.f32 %v5409_v40, %v3328_v28  ;;  %v4969_v41 = vmul.f32 -1.442695, %v7065_v34 }
 0x6ab   : > { %v5413_v16 = vpop.eup %5412  ;;  %v3157_v18 = vadd.f32 1.0, %v5411_v38  ;;  %v5165_v38 = vld [vmem:[%s7446_s7 + $0x5] ss:$0 sm:$0xff] }
 0x6ac   : > { %v3333_v52 = vsel %vm3332_vm9, %v5409_v40, %v3329_v23  ;;  %v3341_v31 = vmul.f32 %v5413_v16, %v7052_v29  ;;  %5414 = vpow2.f32 %v4969_v41  ;;  %vm3346_vm11 = vweird.f32 %v5413_v16 }
 0x6ad   : > { %v3338_v3 = vsel %vm3335_vm10, %v3337_v36, %v3333_v52  ;;  %5416 = vrcp.f32 %v3157_v18  ;;  %vm3347_vm13 = vmor %vm3345_vm12, %vm3346_vm11  ;;  %v3366_v14 = vand.u32 2147483648, %v3157_v18  ;;  %v3364_v32 = vand.u32 2147483647, %v3157_v18 }
 0x6ae   : > { %v3411_v55 = vmul.f32 %v3338_v3, %v7024_v26  ;;  %v3342_v56 = vsub.f32 1.0, %v3341_v31  ;;  %vm3360_vm2 = vweird.f32 %v3157_v18 }
 0x6af   : > { %v3093_v57 = vpop.f32.mrf.mxu2  ;;  %v3367_v44 = vor.u32 1.1754944e-38, %v3366_v14  ;;  %vm3365_vm1 = vcmp.eq.f32.partialorder %v3364_v32, 8.507059e+37 }
 0x6b0   : > { %v3421_v10 = vpack.c.bf16 %v3411_v55, %v3410_v39  ;;  %v3343_v19 = vmul.f32 %v5413_v16, %v3342_v56  ;;  %v7075_v59 = vadd.f32 %v6938_v42, %v3093_v57  ;;  %v3349_v42 = vand.u32 2147483647, %v7052_v29 }
 0x6b2   : > { %v5415_v60 = vpop.eup %5414  ;;  %v4970_v6 = vmul.f32 -1.442695, %v7075_v59  ;;  %4984 = vmatmul.msk.bf16.gmra.mxu0 %vm710_vm0, %v3421_v10  ;;  %v3344_v25 = vadd.f32 %v5413_v16, %v3343_v19  ;;  %vm3350_vm15 = vcmp.eq.f32.partialorder %v3349_v42, 8.507059e+37 }
 0x6b3   : > { %v5417_v12 = vpop.eup %5416  ;;  %v3158_v26 = vadd.f32 1.0, %v5415_v60 }
 0x6b4   : > { %v3356_v58 = vmul.f32 %v5417_v12, %v3157_v18  ;;  %5418 = vpow2.f32 %v4970_v6  ;;  %v3348_v48 = vsel %vm3347_vm13, %v5413_v16, %v3344_v25  ;;  %vm3361_vm14 = vweird.f32 %v5417_v12 }
 0x6b5   : > { %5420 = vrcp.f32 %v3158_v26  ;;  %v3353_v30 = vsel %vm3350_vm15, %v3352_v35, %v3348_v48  ;;  %vm3362_vm3 = vmor %vm3360_vm2, %vm3361_vm14  ;;  %v3381_v63 = vand.u32 2147483648, %v3158_v26  ;;  %vm3375_vm5 = vweird.f32 %v3158_v26 }
 0x6b6   : > { %v3357_v2 = vsub.f32 1.0, %v3356_v58  ;;  %v3412_v20 = vmul.f32 %v3353_v30, %v7041_v50  ;;  %v3379_v43 = vand.u32 2147483647, %v3158_v26 }
 0x6b7   : > { %v3382_v49 = vor.u32 1.1754944e-38, %v3381_v63 }
 0x6b8   : > { %v3358_v51 = vmul.f32 %v5417_v12, %v3357_v2  ;;  %vm3380_vm8 = vcmp.eq.f32.partialorder %v3379_v43, 8.507059e+37 }
 0x6ba   : > { %v5419_v53 = vpop.eup %5418  ;;  %v3359_v46 = vadd.f32 %v5417_v12, %v3358_v51 }
 0x6bb   : > { %v5421_v7 = vpop.eup %5420  ;;  %v3159_v33 = vadd.f32 1.0, %v5419_v53 }
 0x6bc   : > { %v3363_v54 = vsel %vm3362_vm3, %v5417_v12, %v3359_v46  ;;  %v3371_v13 = vmul.f32 %v5421_v7, %v3158_v26  ;;  %vm3376_vm4 = vweird.f32 %v5421_v7 }
 0x6bd   : > { %v3368_v45 = vsel %vm3365_vm1, %v3367_v44, %v3363_v54  ;;  %5422 = vrcp.f32 %v3159_v33  ;;  %vm3377_vm6 = vmor %vm3375_vm5, %vm3376_vm4  ;;  %v3396_v22 = vand.u32 2147483648, %v3159_v33  ;;  %vm3390_vm9 = vweird.f32 %v3159_v33 }
 0x6be   : > { %v3413_v24 = vmul.f32 %v3368_v45, %v7048_v47  ;;  %v3372_v0 = vsub.f32 1.0, %v3371_v13  ;;  %v3394_v47 = vand.u32 2147483647, %v3159_v33 }
 0x6bf   : > { %v3397_v28 = vor.u32 1.1754944e-38, %v3396_v22 }
 0x6c0   : > { %v3422_v21 = vpack.c.bf16 %v3413_v24, %v3412_v20  ;;  %v3373_v15 = vmul.f32 %v5421_v7, %v3372_v0  ;;  %vm3395_vm11 = vcmp.eq.f32.partialorder %v3394_v47, 8.507059e+37  ;;  %v5100_v24 = vld [vmem:[%s7445_s6 + $0x58] sm:$0xff] }
 0x6c1   : > { %3990 = vmatpush.bf16.msrb.mxu3 %v5100_v24 }
 0x6c2   : > { %4985 = vmatmul.msk.bf16.gmra.mxu0 %vm710_vm0, %v3422_v21  ;;  %v3374_v29 = vadd.f32 %v5421_v7, %v3373_v15 }
 0x6c3   : > { %v5423_v40 = vpop.eup %5422 }
 0x6c4   : > { %v3386_v61 = vmul.f32 %v5423_v40, %v3159_v33  ;;  %v3378_v11 = vsel %vm3377_vm6, %v5421_v7, %v3374_v29  ;;  %vm3391_vm7 = vweird.f32 %v5423_v40  ;;  %v7104_v33 = vld [vmem:[%s7446_s7 + $0x6] ss:$0 sm:$0xff] }
 0x6c5   : > { %v3383_v9 = vsel %vm3380_vm8, %v3382_v49, %v3378_v11  ;;  %vm3392_vm10 = vmor %vm3390_vm9, %vm3391_vm7 }
 0x6c6   : > { %v3387_v27 = vsub.f32 1.0, %v3386_v61  ;;  %v3414_v41 = vmul.f32 %v3383_v9, %v7065_v34 }
 0x6c7   : > { %v3475_v4 = vpop.f32.mrf.mxu0 }
 0x6c8   : > { %v3388_v50 = vmul.f32 %v5423_v40, %v3387_v27  ;;  %v3476_v18 = vadd.f32 %v5165_v38, %v3475_v4 }
 0x6ca   : > { %v3389_v17 = vadd.f32 %v5423_v40, %v3388_v50 }
 0x6cc   : > { %v3393_v37 = vsel %vm3392_vm10, %v5423_v40, %v3389_v17  ;;  %v5099_v40 = vld [vmem:[%s7445_s6 + $0x50] sm:$0xff] }
 0x6cd   : > { %v3398_v23 = vsel %vm3395_vm11, %v3397_v28, %v3393_v37  ;;  %3991 = vmatpush.bf16.msrb.mxu3 %v5099_v40 }
 0x6ce   : > { %v3415_v16 = vmul.f32 %v3398_v23, %v7075_v59 }
 0x6cf   : > { %v3477_v5 = vpop.f32.mrf.mxu0 }
 0x6d0   : > { %v3423_v36 = vpack.c.bf16 %v3415_v16, %v3414_v41  ;;  %v3478_v52 = vadd.f32 %v5165_v38, %v3477_v5 }
 0x6d2   : > { %v3515_v31 = vpack.c.bf16 %v3478_v52, %v3476_v18  ;;  %4986 = vmatmul.msk.bf16.gmra.mxu0 %vm710_vm0, %v3423_v36 }
 0x6d4   : > { %4995 = vmatmul.msk.bf16.vlgmr.msra.gmra.mxu1 %vm710_vm0, %v3515_v31 }
 0x6ef   : > { %v3480_v8 = vpop.f32.mrf.mxu0 }
 0x6f0   : > { %v3481_v39 = vadd.f32 %v5165_v38, %v3480_v8 }
 0x6f7   : > { %v3482_v3 = vpop.f32.mrf.mxu0 }
 0x6f8   : > { %v3483_v55 = vadd.f32 %v5165_v38, %v3482_v3 }
 0x6fa   : > { %v3516_v56 = vpack.c.bf16 %v3483_v55, %v3481_v39 }
 0x6fc   : > { %4996 = vmatmul.msk.bf16.gmra.mxu1 %vm710_vm0, %v3516_v56 }
 0x6ff   : > { %v3485_v57 = vpop.f32.mrf.mxu0 }
 0x700   : > { %v3486_v10 = vadd.f32 %v5165_v38, %v3485_v57 }
 0x707   : > { %v3487_v34 = vpop.f32.mrf.mxu0 }
 0x708   : > { %v3488_v19 = vadd.f32 %v5165_v38, %v3487_v34 }
 0x70a   : > { %v3517_v59 = vpack.c.bf16 %v3488_v19, %v3486_v10 }
 0x70c   : > { %4997 = vmatmul.msk.bf16.gmra.mxu1 %vm710_vm0, %v3517_v59 }
 0x70f   : > { %v3490_v62 = vpop.f32.mrf.mxu0 }
 0x710   : > { %v3491_v6 = vadd.f32 %v5165_v38, %v3490_v62 }
 0x717   : > { %v3492_v60 = vpop.f32.mrf.mxu0 }
 0x718   : > { %v3493_v12 = vadd.f32 %v5165_v38, %v3492_v60 }
 0x71a   : > { %v3518_v26 = vpack.c.bf16 %v3493_v12, %v3491_v6 }
 0x71c   : > { %4998 = vmatmul.msk.bf16.gmra.mxu1 %vm710_vm0, %v3518_v26 }
 0x71f   : > { %v3495_v25 = vpop.f32.mrf.mxu0 }
 0x720   : > { %v3496_v1 = vadd.f32 %v5165_v38, %v3495_v25 }
 0x727   : > { %v3497_v58 = vpop.f32.mrf.mxu0 }
 0x728   : > { %v3498_v42 = vadd.f32 %v5165_v38, %v3497_v58 }
 0x72a   : > { %v3519_v2 = vpack.c.bf16 %v3498_v42, %v3496_v1 }
 0x72c   : > { %4999 = vmatmul.msk.bf16.gmra.mxu1 %vm710_vm0, %v3519_v2 }
 0x72f   : > { %v3500_v14 = vpop.f32.mrf.mxu0 }
 0x730   : > { %v3501_v51 = vadd.f32 %v5165_v38, %v3500_v14 }
 0x737   : > { %v3502_v48 = vpop.f32.mrf.mxu0 }
 0x738   : > { %v3503_v32 = vadd.f32 %v5165_v38, %v3502_v48 }
 0x73a   : > { %v3520_v35 = vpack.c.bf16 %v3503_v32, %v3501_v51 }
 0x73c   : > { %5000 = vmatmul.msk.bf16.gmra.mxu1 %vm710_vm0, %v3520_v35 }
 0x73f   : > { %v3505_v53 = vpop.f32.mrf.mxu0 }
 0x740   : > { %v3506_v7 = vadd.f32 %v5165_v38, %v3505_v53 }
 0x747   : > { %v3507_v46 = vpop.f32.mrf.mxu0 }
 0x748   : > { %v3508_v30 = vadd.f32 %v5165_v38, %v3507_v46 }
 0x74a   : > { %v3521_v44 = vpack.c.bf16 %v3508_v30, %v3506_v7 }
 0x74c   : > { %5001 = vmatmul.msk.bf16.gmra.mxu1 %vm710_vm0, %v3521_v44 }
 0x74f   : > { %v3510_v54 = vpop.f32.mrf.mxu0 }
 0x750   : > { %v3511_v21 = vadd.f32 %v5165_v38, %v3510_v54 }
 0x751   : > { %v3574_v13 = vpop.f32.mrf.mxu1 }
 0x752   : > { %v3575_v45 = vadd.f32 %v7104_v33, %v3574_v13 }
 0x754   : > { %v5003_v20 = vmul.f32 -1.442695, %v3575_v45 }
 0x756   : > { %5424 = vpow2.f32 %v5003_v20 }
 0x757   : > { %v3512_v0 = vpop.f32.mrf.mxu0 }
 0x758   : > { %v3513_v15 = vadd.f32 %v5165_v38, %v3512_v0 }
 0x759   : > { %v3576_v29 = vpop.f32.mrf.mxu1 }
 0x75a   : > { %v3522_v61 = vpack.c.bf16 %v3513_v15, %v3511_v21  ;;  %v3577_v63 = vadd.f32 %v7104_v33, %v3576_v29 }
 0x75c   : > { %v5425_v43 = vpop.eup %5424  ;;  %v5004_v27 = vmul.f32 -1.442695, %v3577_v63  ;;  %5002 = vmatmul.msk.bf16.gmra.mxu1 %vm710_vm0, %v3522_v61 }
 0x75d   : > { %v3662_v22 = vadd.f32 1.0, %v5425_v43 }
 0x75e   : > { %5426 = vpow2.f32 %v5004_v27 }
 0x75f   : > { %5428 = vrcp.f32 %v3662_v22  ;;  %v3689_v38 = vand.u32 2147483648, %v3662_v22  ;;  %vm3683_vm13 = vweird.f32 %v3662_v22  ;;  %v3687_v23 = vand.u32 2147483647, %v3662_v22 }
 0x761   : > { %v3690_v52 = vor.u32 1.1754944e-38, %v3689_v38  ;;  %vm3688_vm2 = vcmp.eq.f32.partialorder %v3687_v23, 8.507059e+37 }
 0x764   : > { %v5427_v4 = vpop.eup %5426 }
 0x765   : > { %v5429_v11 = vpop.eup %5428  ;;  %v3663_v50 = vadd.f32 1.0, %v5427_v4 }
 0x766   : > { %v3679_v47 = vmul.f32 %v5429_v11, %v3662_v22  ;;  %vm3684_vm12 = vweird.f32 %v5429_v11 }
 0x767   : > { %5430 = vrcp.f32 %v3663_v50  ;;  %vm3685_vm14 = vmor %vm3683_vm13, %vm3684_vm12  ;;  %v3704_v16 = vand.u32 2147483648, %v3663_v50  ;;  %v3702_v18 = vand.u32 2147483647, %v3663_v50  ;;  %vm3698_vm3 = vweird.f32 %v3663_v50 }
 0x768   : > { %v3680_v49 = vsub.f32 1.0, %v3679_v47 }
 0x769   : > { %v3705_v3 = vor.u32 1.1754944e-38, %v3704_v16  ;;  %vm3703_vm4 = vcmp.eq.f32.partialorder %v3702_v18, 8.507059e+37 }
 0x76a   : > { %v3681_v17 = vmul.f32 %v5429_v11, %v3680_v49 }
 0x76c   : > { %v3682_v28 = vadd.f32 %v5429_v11, %v3681_v17 }
 0x76d   : > { %v5431_v9 = vpop.eup %5430 }
 0x76e   : > { %v3694_v37 = vmul.f32 %v5431_v9, %v3663_v50  ;;  %v3686_v5 = vsel %vm3685_vm14, %v5429_v11, %v3682_v28  ;;  %vm3699_vm15 = vweird.f32 %v5431_v9 }
 0x76f   : > { %v3691_v8 = vsel %vm3688_vm2, %v3690_v52, %v3686_v5  ;;  %vm3700_vm1 = vmor %vm3698_vm3, %vm3699_vm15 }
 0x770   : > { %v3695_v41 = vsub.f32 1.0, %v3694_v37  ;;  %v3918_v56 = vmul.f32 %v3691_v8, %v3575_v45 }
 0x772   : > { %v3696_v36 = vmul.f32 %v5431_v9, %v3695_v41 }
 0x774   : > { %v3697_v31 = vadd.f32 %v5431_v9, %v3696_v36 }
 0x776   : > { %v3701_v39 = vsel %vm3700_vm1, %v5431_v9, %v3697_v31 }
 0x777   : > { %v3706_v55 = vsel %vm3703_vm4, %v3705_v3, %v3701_v39 }
 0x778   : > { %v3919_v57 = vmul.f32 %v3706_v55, %v3577_v63 }
 0x779   : > { %v3579_v34 = vpop.f32.mrf.mxu1 }
 0x77a   : > { %v3934_v10 = vpack.c.bf16 %v3919_v57, %v3918_v56  ;;  %v3580_v19 = vadd.f32 %v7104_v33, %v3579_v34 }
 0x77c   : > { %v5005_v59 = vmul.f32 -1.442695, %v3580_v19  ;;  %5027 = vmatmul.msk.bf16.vlgmr.msrb.gmra.mxu3 %vm710_vm0, %v3934_v10 }
 0x77e   : > { %5432 = vpow2.f32 %v5005_v59 }
 0x781   : > { %v3581_v62 = vpop.f32.mrf.mxu1 }
 0x782   : > { %v3582_v60 = vadd.f32 %v7104_v33, %v3581_v62 }
 0x784   : > { %v5433_v6 = vpop.eup %5432  ;;  %v5006_v12 = vmul.f32 -1.442695, %v3582_v60 }
 0x785   : > { %v3664_v26 = vadd.f32 1.0, %v5433_v6 }
 0x786   : > { %5434 = vpow2.f32 %v5006_v12 }
 0x787   : > { %5436 = vrcp.f32 %v3664_v26  ;;  %v3719_v45 = vand.u32 2147483648, %v3664_v26  ;;  %vm3713_vm6 = vweird.f32 %v3664_v26  ;;  %v3717_v20 = vand.u32 2147483647, %v3664_v26 }
 0x789   : > { %v3584_v25 = vpop.f32.mrf.mxu1  ;;  %v3720_v43 = vor.u32 1.1754944e-38, %v3719_v45  ;;  %vm3718_vm9 = vcmp.eq.f32.partialorder %v3717_v20, 8.507059e+37 }
 0x78a   : > { %v7119_v58 = vadd.f32 %v7104_v33, %v3584_v25 }
 0x78c   : > { %v5435_v1 = vpop.eup %5434  ;;  %v5007_v42 = vmul.f32 -1.442695, %v7119_v58 }
 0x78d   : > { %v5437_v2 = vpop.eup %5436  ;;  %v3665_v14 = vadd.f32 1.0, %v5435_v1 }
 0x78e   : > { %v3709_v48 = vmul.f32 %v5437_v2, %v3664_v26  ;;  %5438 = vpow2.f32 %v5007_v42  ;;  %vm3714_vm5 = vweird.f32 %v5437_v2 }
 0x78f   : > { %5440 = vrcp.f32 %v3665_v14  ;;  %vm7129_vm7 = vmor %vm3713_vm6, %vm3714_vm5  ;;  %v3732_v21 = vand.u32 2147483647, %v3665_v14  ;;  %v3734_v15 = vand.u32 2147483648, %v3665_v14  ;;  %vm3728_vm10 = vweird.f32 %v3665_v14 }
 0x790   : > { %v3710_v51 = vsub.f32 1.0, %v3709_v48 }
 0x791   : > { %v3586_v32 = vpop.f32.mrf.mxu1  ;;  %v3735_v47 = vor.u32 1.1754944e-38, %v3734_v15  ;;  %vm3733_vm12 = vcmp.eq.f32.partialorder %v3732_v21, 8.507059e+37 }
 0x792   : > { %v3711_v35 = vmul.f32 %v5437_v2, %v3710_v51  ;;  %v7123_v53 = vadd.f32 %v7104_v33, %v3586_v32 }
 0x794   : > { %v5439_v46 = vpop.eup %5438  ;;  %v5008_v7 = vmul.f32 -1.442695, %v7123_v53  ;;  %v3712_v54 = vadd.f32 %v5437_v2, %v3711_v35 }
 0x795   : > { %v5441_v30 = vpop.eup %5440  ;;  %v7126_v44 = vadd.f32 1.0, %v5439_v46 }
 0x796   : > { %v3724_v13 = vmul.f32 %v5441_v30, %v3665_v14  ;;  %5442 = vpow2.f32 %v5008_v7  ;;  %v3716_v29 = vsel %vm7129_vm7, %v5437_v2, %v3712_v54  ;;  %vm3729_vm8 = vweird.f32 %v5441_v30 }
 0x797   : > { %5444 = vrcp.f32 %v7126_v44  ;;  %v3721_v50 = vsel %vm3718_vm9, %v3720_v43, %v3716_v29  ;;  %vm3730_vm11 = vmor %vm3728_vm10, %vm3729_vm8  ;;  %v3749_v55 = vand.u32 2147483648, %v7126_v44  ;;  %vm3743_vm14 = vweird.f32 %v7126_v44 }
 0x798   : > { %v3725_v24 = vsub.f32 1.0, %v3724_v13  ;;  %v3920_v37 = vmul.f32 %v3721_v50, %v3580_v19  ;;  %v3747_v56 = vand.u32 2147483647, %v7126_v44 }
 0x799   : > { %v3589_v40 = vpop.f32.mrf.mxu1  ;;  %v3750_v12 = vor.u32 1.1754944e-38, %v3749_v55 }
 0x79a   : > { %v3726_v61 = vmul.f32 %v5441_v30, %v3725_v24  ;;  %v7136_v63 = vadd.f32 %v7104_v33, %v3589_v40  ;;  %vm3748_vm3 = vcmp.eq.f32.partialorder %v3747_v56, 8.507059e+37 }
 0x79c   : > { %v5443_v27 = vpop.eup %5442  ;;  %v3727_v22 = vadd.f32 %v5441_v30, %v3726_v61  ;;  %v5009_v4 = vmul.f32 -1.442695, %v7136_v63 }
 0x79d   : > { %v5445_v11 = vpop.eup %5444  ;;  %v3667_v49 = vadd.f32 1.0, %v5443_v27 }
 0x79e   : > { %v3731_v17 = vsel %vm3730_vm11, %v5441_v30, %v3727_v22  ;;  %v3739_v9 = vmul.f32 %v5445_v11, %v7126_v44  ;;  %5446 = vpow2.f32 %v5009_v4  ;;  %vm3744_vm13 = vweird.f32 %v5445_v11 }
 0x79f   : > { %v3736_v28 = vsel %vm3733_vm12, %v3735_v47, %v3731_v17  ;;  %5448 = vrcp.f32 %v3667_v49  ;;  %vm7151_vm15 = vmor %vm3743_vm14, %vm3744_vm13  ;;  %v3762_v10 = vand.u32 2147483647, %v3667_v49  ;;  %v3764_v19 = vand.u32 2147483648, %v3667_v49 }
 0x7a0   : > { %v3921_v38 = vmul.f32 %v3736_v28, %v3582_v60  ;;  %v3740_v23 = vsub.f32 1.0, %v3739_v9  ;;  %vm3758_vm1 = vweird.f32 %v3667_v49 }
 0x7a1   : > { %v3591_v41 = vpop.f32.mrf.mxu1  ;;  %v3765_v14 = vor.u32 1.1754944e-38, %v3764_v19  ;;  %vm3763_vm5 = vcmp.eq.f32.partialorder %v3762_v10, 8.507059e+37 }
 0x7a2   : > { %v3935_v16 = vpack.c.bf16 %v3921_v38, %v3920_v37  ;;  %v3741_v5 = vmul.f32 %v5445_v11, %v3740_v23  ;;  %v7141_v36 = vadd.f32 %v7104_v33, %v3591_v41 }
 0x7a4   : > { %v5447_v18 = vpop.eup %5446  ;;  %v5010_v52 = vmul.f32 -1.442695, %v7141_v36  ;;  %5028 = vmatmul.msk.bf16.gmra.mxu3 %vm710_vm0, %v3935_v16  ;;  %v3742_v3 = vadd.f32 %v5445_v11, %v3741_v5 }
 0x7a5   : > { %v5449_v31 = vpop.eup %5448  ;;  %v7145_v8 = vadd.f32 1.0, %v5447_v18 }
 0x7a6   : > { %v3754_v39 = vmul.f32 %v5449_v31, %v3667_v49  ;;  %5450 = vpow2.f32 %v5010_v52  ;;  %v3746_v62 = vsel %vm7151_vm15, %v5445_v11, %v3742_v3  ;;  %vm3759_vm2 = vweird.f32 %v5449_v31 }
 0x7a7   : > { %5452 = vrcp.f32 %v7145_v8  ;;  %v3751_v2 = vsel %vm3748_vm3, %v3750_v12, %v3746_v62  ;;  %vm3760_vm4 = vmor %vm3758_vm1, %vm3759_vm2  ;;  %vm3773_vm7 = vweird.f32 %v7145_v8  ;;  %v3777_v40 = vand.u32 2147483647, %v7145_v8 }
 0x7a8   : > { %v3755_v57 = vsub.f32 1.0, %v3754_v39  ;;  %v3922_v46 = vmul.f32 %v3751_v2, %v7119_v58 }
 0x7a9   : > { %v3594_v59 = vpop.f32.mrf.mxu1  ;;  %vm3778_vm10 = vcmp.eq.f32.partialorder %v3777_v40, 8.507059e+37 }
 0x7aa   : > { %v3756_v60 = vmul.f32 %v5449_v31, %v3755_v57  ;;  %v7158_v6 = vadd.f32 %v7104_v33, %v3594_v59 }
 0x7ac   : > { %v5451_v26 = vpop.eup %5450  ;;  %v3757_v25 = vadd.f32 %v5449_v31, %v3756_v60  ;;  %v5011_v1 = vmul.f32 -1.442695, %v7158_v6 }
 0x7ad   : > { %v5453_v42 = vpop.eup %5452  ;;  %v3669_v48 = vadd.f32 1.0, %v5451_v26 }
 0x7ae   : > { %v3761_v51 = vsel %vm3760_vm4, %v5449_v31, %v3757_v25  ;;  %v3769_v32 = vmul.f32 %v5453_v42, %v7145_v8  ;;  %5454 = vpow2.f32 %v5011_v1  ;;  %vm3774_vm6 = vweird.f32 %v5453_v42 }
 0x7af   : > { %v3766_v35 = vsel %vm3763_vm5, %v3765_v14, %v3761_v51  ;;  %5456 = vrcp.f32 %v3669_v48  ;;  %vm7175_vm8 = vmor %vm3773_vm7, %vm3774_vm6  ;;  %v3792_v43 = vand.u32 2147483647, %v3669_v48  ;;  %v3794_v27 = vand.u32 2147483648, %v3669_v48 }
 0x7b0   : > { %v3923_v7 = vmul.f32 %v3766_v35, %v7123_v53  ;;  %v3770_v30 = vsub.f32 1.0, %v3769_v32  ;;  %v3779_v53 = vand.u32 2147483648, %v7145_v8  ;;  %vm3788_vm11 = vweird.f32 %v3669_v48 }
 0x7b1   : > { %v3596_v44 = vpop.f32.mrf.mxu1  ;;  %v3795_v38 = vor.u32 1.1754944e-38, %v3794_v27  ;;  %vm3793_vm13 = vcmp.eq.f32.partialorder %v3792_v43, 8.507059e+37 }
 0x7b2   : > { %v3936_v54 = vpack.c.bf16 %v3923_v7, %v3922_v46  ;;  %v3771_v13 = vmul.f32 %v5453_v42, %v3770_v30  ;;  %v7165_v45 = vadd.f32 %v7104_v33, %v3596_v44  ;;  %v3780_v47 = vor.u32 1.1754944e-38, %v3779_v53 }
 0x7b4   : > { %v5455_v20 = vpop.eup %5454  ;;  %v5012_v24 = vmul.f32 -1.442695, %v7165_v45  ;;  %5029 = vmatmul.msk.bf16.gmra.mxu3 %vm710_vm0, %v3936_v54  ;;  %v3772_v15 = vadd.f32 %v5453_v42, %v3771_v13 }
 0x7b5   : > { %v5457_v0 = vpop.eup %5456  ;;  %v7169_v21 = vadd.f32 1.0, %v5455_v20 }
 0x7b6   : > { %v3784_v58 = vmul.f32 %v5457_v0, %v3669_v48  ;;  %5458 = vpow2.f32 %v5012_v24  ;;  %v3776_v4 = vsel %vm7175_vm8, %v5453_v42, %v3772_v15  ;;  %vm3789_vm9 = vweird.f32 %v5457_v0 }
 0x7b7   : > { %5460 = vrcp.f32 %v7169_v21  ;;  %v3781_v37 = vsel %vm3778_vm10, %v3780_v47, %v3776_v4  ;;  %vm3790_vm12 = vmor %vm3788_vm11, %vm3789_vm9  ;;  %vm3803_vm15 = vweird.f32 %v7169_v21  ;;  %v3807_v59 = vand.u32 2147483647, %v7169_v21 }
 0x7b8   : > { %v3785_v29 = vsub.f32 1.0, %v3784_v58  ;;  %v3924_v18 = vmul.f32 %v3781_v37, %v7136_v63 }
 0x7b9   : > { %v3599_v22 = vpop.f32.mrf.mxu1  ;;  %vm3808_vm1 = vcmp.eq.f32.partialorder %v3807_v59, 8.507059e+37 }
 0x7ba   : > { %v3786_v11 = vmul.f32 %v5457_v0, %v3785_v29  ;;  %v7182_v50 = vadd.f32 %v7104_v33, %v3599_v22 }
 0x7bc   : > { %v5459_v49 = vpop.eup %5458  ;;  %v3787_v17 = vadd.f32 %v5457_v0, %v3786_v11  ;;  %v5013_v9 = vmul.f32 -1.442695, %v7182_v50 }
 0x7bd   : > { %v5461_v28 = vpop.eup %5460  ;;  %v3671_v23 = vadd.f32 1.0, %v5459_v49 }
 0x7be   : > { %v3791_v41 = vsel %vm3790_vm12, %v5457_v0, %v3787_v17  ;;  %v3799_v16 = vmul.f32 %v5461_v28, %v7169_v21  ;;  %5462 = vpow2.f32 %v5013_v9  ;;  %vm3804_vm14 = vweird.f32 %v5461_v28 }
 0x7bf   : > { %v3796_v5 = vsel %vm3793_vm13, %v3795_v38, %v3791_v41  ;;  %5464 = vrcp.f32 %v3671_v23  ;;  %vm7199_vm2 = vmor %vm3803_vm15, %vm3804_vm14  ;;  %v3822_v12 = vand.u32 2147483647, %v3671_v23  ;;  %v3824_v26 = vand.u32 2147483648, %v3671_v23 }
 0x7c0   : > { %v3925_v52 = vmul.f32 %v3796_v5, %v7141_v36  ;;  %v3800_v31 = vsub.f32 1.0, %v3799_v16  ;;  %v3809_v36 = vand.u32 2147483648, %v7169_v21  ;;  %vm3818_vm4 = vweird.f32 %v3671_v23 }
 0x7c1   : > { %v3601_v8 = vpop.f32.mrf.mxu1  ;;  %v3825_v7 = vor.u32 1.1754944e-38, %v3824_v26  ;;  %vm3823_vm6 = vcmp.eq.f32.partialorder %v3822_v12, 8.507059e+37 }
 0x7c2   : > { %v3937_v3 = vpack.c.bf16 %v3925_v52, %v3924_v18  ;;  %v3801_v39 = vmul.f32 %v5461_v28, %v3800_v31  ;;  %v7189_v55 = vadd.f32 %v7104_v33, %v3601_v8  ;;  %v3810_v14 = vor.u32 1.1754944e-38, %v3809_v36 }
 0x7c4   : > { %v5463_v56 = vpop.eup %5462  ;;  %v5014_v57 = vmul.f32 -1.442695, %v7189_v55  ;;  %5030 = vmatmul.msk.bf16.gmra.mxu3 %vm710_vm0, %v3937_v3  ;;  %v3802_v19 = vadd.f32 %v5461_v28, %v3801_v39 }
 0x7c5   : > { %v5465_v34 = vpop.eup %5464  ;;  %v7193_v10 = vadd.f32 1.0, %v5463_v56 }
 0x7c6   : > { %v3814_v63 = vmul.f32 %v5465_v34, %v3671_v23  ;;  %5466 = vpow2.f32 %v5014_v57  ;;  %v3806_v1 = vsel %vm7199_vm2, %v5461_v28, %v3802_v19  ;;  %vm3819_vm3 = vweird.f32 %v5465_v34 }
 0x7c7   : > { %5468 = vrcp.f32 %v7193_v10  ;;  %v3811_v46 = vsel %vm3808_vm1, %v3810_v14, %v3806_v1  ;;  %vm3820_vm5 = vmor %vm3818_vm4, %vm3819_vm3  ;;  %vm3833_vm8 = vweird.f32 %v7193_v10  ;;  %v3837_v22 = vand.u32 2147483647, %v7193_v10 }
 0x7c8   : > { %v3815_v62 = vsub.f32 1.0, %v3814_v63  ;;  %v3926_v20 = vmul.f32 %v3811_v46, %v7158_v6 }
 0x7c9   : > { %v3604_v25 = vpop.f32.mrf.mxu1  ;;  %vm3838_vm11 = vcmp.eq.f32.partialorder %v3837_v22, 8.507059e+37 }
 0x7ca   : > { %v3816_v42 = vmul.f32 %v5465_v34, %v3815_v62  ;;  %v7206_v2 = vadd.f32 %v7104_v33, %v3604_v25 }
 0x7cc   : > { %v5467_v48 = vpop.eup %5466  ;;  %v3817_v51 = vadd.f32 %v5465_v34, %v3816_v42  ;;  %v5015_v32 = vmul.f32 -1.442695, %v7206_v2 }
 0x7cd   : > { %v5469_v35 = vpop.eup %5468  ;;  %v3673_v30 = vadd.f32 1.0, %v5467_v48 }
 0x7ce   : > { %v3821_v44 = vsel %vm3820_vm5, %v5465_v34, %v3817_v51  ;;  %v3829_v54 = vmul.f32 %v5469_v35, %v7193_v10  ;;  %5470 = vpow2.f32 %v5015_v32  ;;  %vm3834_vm7 = vweird.f32 %v5469_v35 }
 0x7cf   : > { %v3826_v13 = vsel %vm3823_vm6, %v3825_v7, %v3821_v44  ;;  %5472 = vrcp.f32 %v3673_v30  ;;  %vm7223_vm9 = vmor %vm3833_vm8, %vm3834_vm7  ;;  %v3852_v47 = vand.u32 2147483647, %v3673_v30  ;;  %v3854_v49 = vand.u32 2147483648, %v3673_v30 }
 0x7d0   : > { %v3927_v24 = vmul.f32 %v3826_v13, %v7165_v45  ;;  %v3830_v0 = vsub.f32 1.0, %v3829_v54  ;;  %v3839_v45 = vand.u32 2147483648, %v7193_v10  ;;  %vm3848_vm12 = vweird.f32 %v3673_v30 }
 0x7d1   : > { %v3606_v21 = vpop.f32.mrf.mxu1  ;;  %v3855_v52 = vor.u32 1.1754944e-38, %v3854_v49  ;;  %vm3853_vm14 = vcmp.eq.f32.partialorder %v3852_v47, 8.507059e+37  ;;  %v7250_v47 = vld [vmem:[%s7446_s7 + $0x7] ss:$0 sm:$0xff] }
 0x7d2   : > { %v3938_v15 = vpack.c.bf16 %v3927_v24, %v3926_v20  ;;  %v3831_v58 = vmul.f32 %v5469_v35, %v3830_v0  ;;  %v7213_v53 = vadd.f32 %v7104_v33, %v3606_v21  ;;  %v3840_v38 = vor.u32 1.1754944e-38, %v3839_v45 }
 0x7d4   : > { %v5471_v40 = vpop.eup %5470  ;;  %v5016_v29 = vmul.f32 -1.442695, %v7213_v53  ;;  %5031 = vmatmul.msk.bf16.gmra.mxu3 %vm710_vm0, %v3938_v15  ;;  %v3832_v27 = vadd.f32 %v5469_v35, %v3831_v58 }
 0x7d5   : > { %v5473_v61 = vpop.eup %5472  ;;  %v7217_v43 = vadd.f32 1.0, %v5471_v40 }
 0x7d6   : > { %v3844_v6 = vmul.f32 %v5473_v61, %v3673_v30  ;;  %5474 = vpow2.f32 %v5016_v29  ;;  %v3836_v9 = vsel %vm7223_vm9, %v5469_v35, %v3832_v27  ;;  %vm3849_vm10 = vweird.f32 %v5473_v61 }
 0x7d7   : > { %5476 = vrcp.f32 %v7217_v43  ;;  %v3841_v18 = vsel %vm3838_vm11, %v3840_v38, %v3836_v9  ;;  %vm3850_vm13 = vmor %vm3848_vm12, %vm3849_vm10  ;;  %vm3863_vm2 = vweird.f32 %v7217_v43 }
 0x7d8   : > { %v3845_v4 = vsub.f32 1.0, %v3844_v6  ;;  %v3928_v56 = vmul.f32 %v3841_v18, %v7182_v50  ;;  %v3869_v50 = vand.u32 2147483648, %v7217_v43 }
 0x7d9   : > { %v3609_v17 = vpop.f32.mrf.mxu1 }
 0x7da   : > { %v3846_v28 = vmul.f32 %v5473_v61, %v3845_v4  ;;  %v7230_v37 = vadd.f32 %v7104_v33, %v3609_v17  ;;  %v3870_v51 = vor.u32 1.1754944e-38, %v3869_v50 }
 0x7dc   : > { %v5475_v23 = vpop.eup %5474  ;;  %v3847_v41 = vadd.f32 %v5473_v61, %v3846_v28  ;;  %v5017_v16 = vmul.f32 -1.442695, %v7230_v37 }
 0x7dd   : > { %v5477_v5 = vpop.eup %5476  ;;  %v3675_v31 = vadd.f32 1.0, %v5475_v23 }
 0x7de   : > { %v3851_v8 = vsel %vm3850_vm13, %v5473_v61, %v3847_v41  ;;  %v3859_v3 = vmul.f32 %v5477_v5, %v7217_v43  ;;  %5478 = vpow2.f32 %v5017_v16  ;;  %vm3864_vm15 = vweird.f32 %v5477_v5 }
 0x7df   : > { %v3856_v39 = vsel %vm3853_vm14, %v3855_v52, %v3851_v8  ;;  %5480 = vrcp.f32 %v3675_v31  ;;  %vm3865_vm3 = vmor %vm3863_vm2, %vm3864_vm15  ;;  %v3884_v1 = vand.u32 2147483648, %v3675_v31  ;;  %v3882_v48 = vand.u32 2147483647, %v3675_v31  ;;  %v5102_v52 = vld [vmem:[%s7445_s6 + $0x68] sm:$0xff] }
 0x7e0   : > { %v3929_v57 = vmul.f32 %v3856_v39, %v7189_v55  ;;  %v3860_v34 = vsub.f32 1.0, %v3859_v3  ;;  %v3867_v55 = vand.u32 2147483647, %v7217_v43  ;;  %vm3878_vm5 = vweird.f32 %v3675_v31  ;;  %4407 = vmatpush.bf16.msrb.mxu2 %v5102_v52 }
 0x7e1   : > { %v3611_v10 = vpop.f32.mrf.mxu1  ;;  %v3885_v30 = vor.u32 1.1754944e-38, %v3884_v1  ;;  %vm3883_vm7 = vcmp.eq.f32.partialorder %v3882_v48, 8.507059e+37 }
 0x7e2   : > { %v3939_v19 = vpack.c.bf16 %v3929_v57, %v3928_v56  ;;  %v3861_v63 = vmul.f32 %v5477_v5, %v3860_v34  ;;  %v7237_v36 = vadd.f32 %v7104_v33, %v3611_v10  ;;  %vm3868_vm4 = vcmp.eq.f32.partialorder %v3867_v55, 8.507059e+37 }
 0x7e4   : > { %v5479_v59 = vpop.eup %5478  ;;  %v5018_v62 = vmul.f32 -1.442695, %v7237_v36  ;;  %5032 = vmatmul.msk.bf16.gmra.mxu3 %vm710_vm0, %v3939_v19  ;;  %v3862_v26 = vadd.f32 %v5477_v5, %v3861_v63 }
 0x7e5   : > { %v5481_v60 = vpop.eup %5480  ;;  %v3676_v12 = vadd.f32 1.0, %v5479_v59 }
 0x7e6   : > { %v3874_v25 = vmul.f32 %v5481_v60, %v3675_v31  ;;  %5482 = vpow2.f32 %v5018_v62  ;;  %v3866_v42 = vsel %vm3865_vm3, %v5477_v5, %v3862_v26  ;;  %vm3879_vm1 = vweird.f32 %v5481_v60  ;;  %v5101_v31 = vld [vmem:[%s7445_s6 + $0x60] sm:$0xff] }
 0x7e7   : > { %5484 = vrcp.f32 %v3676_v12  ;;  %v3871_v7 = vsel %vm3868_vm4, %v3870_v51, %v3866_v42  ;;  %vm3880_vm6 = vmor %vm3878_vm5, %vm3879_vm1  ;;  %v3899_v43 = vand.u32 2147483648, %v3676_v12  ;;  %vm3893_vm9 = vweird.f32 %v3676_v12  ;;  %4408 = vmatpush.bf16.msrb.mxu2 %v5101_v31 }
 0x7e8   : > { %v3875_v33 = vsub.f32 1.0, %v3874_v25  ;;  %v3930_v24 = vmul.f32 %v3871_v7, %v7206_v2  ;;  %v3897_v27 = vand.u32 2147483647, %v3676_v12 }
 0x7ea   : > { %v3876_v14 = vmul.f32 %v5481_v60, %v3875_v33  ;;  %vm3898_vm12 = vcmp.eq.f32.partialorder %v3897_v27, 8.507059e+37 }
 0x7ec   : > { %v5483_v32 = vpop.eup %5482  ;;  %v3877_v35 = vadd.f32 %v5481_v60, %v3876_v14 }
 0x7ed   : > { %v5485_v46 = vpop.eup %5484  ;;  %v3677_v44 = vadd.f32 1.0, %v5483_v32 }
 0x7ee   : > { %v3881_v54 = vsel %vm3880_vm6, %v5481_v60, %v3877_v35  ;;  %v3889_v13 = vmul.f32 %v5485_v46, %v3676_v12  ;;  %vm3894_vm8 = vweird.f32 %v5485_v46 }
 0x7ef   : > { %v3886_v20 = vsel %vm3883_vm7, %v3885_v30, %v3881_v54  ;;  %5486 = vrcp.f32 %v3677_v44  ;;  %vm3895_vm10 = vmor %vm3893_vm9, %vm3894_vm8  ;;  %v3914_v45 = vand.u32 2147483648, %v3677_v44  ;;  %v3912_v2 = vand.u32 2147483647, %v3677_v44 }
 0x7f0   : > { %v3931_v0 = vmul.f32 %v3886_v20, %v7213_v53  ;;  %v3890_v21 = vsub.f32 1.0, %v3889_v13  ;;  %v3900_v53 = vor.u32 1.1754944e-38, %v3899_v43  ;;  %vm3908_vm13 = vweird.f32 %v3677_v44 }
 0x7f1   : > { %v3915_v17 = vor.u32 1.1754944e-38, %v3914_v45  ;;  %vm3913_vm15 = vcmp.eq.f32.partialorder %v3912_v2, 8.507059e+37 }
 0x7f2   : > { %v3940_v15 = vpack.c.bf16 %v3931_v0, %v3930_v24  ;;  %v3891_v58 = vmul.f32 %v5485_v46, %v3890_v21 }
 0x7f4   : > { %5033 = vmatmul.msk.bf16.gmra.mxu3 %vm710_vm0, %v3940_v15  ;;  %v3892_v29 = vadd.f32 %v5485_v46, %v3891_v58 }
 0x7f5   : > { %v5487_v40 = vpop.eup %5486 }
 0x7f6   : > { %v3904_v61 = vmul.f32 %v5487_v40, %v3677_v44  ;;  %v3896_v22 = vsel %vm3895_vm10, %v5485_v46, %v3892_v29  ;;  %vm3909_vm11 = vweird.f32 %v5487_v40 }
 0x7f7   : > { %v3901_v49 = vsel %vm3898_vm12, %v3900_v53, %v3896_v22  ;;  %vm3910_vm14 = vmor %vm3908_vm13, %vm3909_vm11 }
 0x7f8   : > { %v3905_v6 = vsub.f32 1.0, %v3904_v61  ;;  %v3932_v23 = vmul.f32 %v3901_v49, %v7230_v37 }
 0x7fa   : > { %v3906_v4 = vmul.f32 %v5487_v40, %v3905_v6 }
 0x7fc   : > { %v3907_v11 = vadd.f32 %v5487_v40, %v3906_v4 }
 0x7fe   : > { %v3911_v9 = vsel %vm3910_vm14, %v5487_v40, %v3907_v11 }
 0x7ff   : > { %v3916_v28 = vsel %vm3913_vm15, %v3915_v17, %v3911_v9  ;;  %v3993_v38 = vpop.f32.mrf.mxu3 }
 0x800   : > { %v3933_v41 = vmul.f32 %v3916_v28, %v7237_v36  ;;  %v3994_v16 = vadd.f32 %v7250_v47, %v3993_v38 }
 0x802   : > { %v3941_v5 = vpack.c.bf16 %v3933_v41, %v3932_v23  ;;  %v5035_v18 = vmul.f32 -1.442695, %v3994_v16 }
 0x804   : > { %5488 = vpow2.f32 %v5035_v18  ;;  %5034 = vmatmul.msk.bf16.gmra.mxu3 %vm710_vm0, %v3941_v5 }
 0x807   : > { %v3995_v8 = vpop.f32.mrf.mxu3 }
 0x808   : > { %v3996_v37 = vadd.f32 %v7250_v47, %v3995_v8 }
 0x80a   : > { %v5489_v3 = vpop.eup %5488  ;;  %v5036_v39 = vmul.f32 -1.442695, %v3996_v37 }
 0x80b   : > { %v4081_v56 = vadd.f32 1.0, %v5489_v3 }
 0x80c   : > { %5490 = vpow2.f32 %v5036_v39 }
 0x80d   : > { %5492 = vrcp.f32 %v4081_v56  ;;  %v4108_v12 = vand.u32 2147483648, %v4081_v56  ;;  %vm4102_vm3 = vweird.f32 %v4081_v56  ;;  %v4106_v26 = vand.u32 2147483647, %v4081_v56 }
 0x80f   : > { %v4109_v42 = vor.u32 1.1754944e-38, %v4108_v12  ;;  %vm4107_vm5 = vcmp.eq.f32.partialorder %v4106_v26, 8.507059e+37 }
 0x812   : > { %v5491_v57 = vpop.eup %5490 }
 0x813   : > { %v5493_v34 = vpop.eup %5492  ;;  %v4082_v10 = vadd.f32 1.0, %v5491_v57 }
 0x814   : > { %v4098_v19 = vmul.f32 %v5493_v34, %v4081_v56  ;;  %vm4103_vm2 = vweird.f32 %v5493_v34 }
 0x815   : > { %5494 = vrcp.f32 %v4082_v10  ;;  %vm4104_vm1 = vmor %vm4102_vm3, %vm4103_vm2  ;;  %v4123_v50 = vand.u32 2147483648, %v4082_v10  ;;  %v4121_v1 = vand.u32 2147483647, %v4082_v10  ;;  %vm4117_vm6 = vweird.f32 %v4082_v10 }
 0x816   : > { %v4099_v63 = vsub.f32 1.0, %v4098_v19 }
 0x817   : > { %v4124_v51 = vor.u32 1.1754944e-38, %v4123_v50  ;;  %vm4122_vm8 = vcmp.eq.f32.partialorder %v4121_v1, 8.507059e+37 }
 0x818   : > { %v4100_v36 = vmul.f32 %v5493_v34, %v4099_v63 }
 0x81a   : > { %v4101_v62 = vadd.f32 %v5493_v34, %v4100_v36 }
 0x81b   : > { %v5495_v59 = vpop.eup %5494 }
 0x81c   : > { %v4113_v60 = vmul.f32 %v5495_v59, %v4082_v10  ;;  %v4105_v55 = vsel %vm4104_vm1, %v5493_v34, %v4101_v62  ;;  %vm4118_vm4 = vweird.f32 %v5495_v59 }
 0x81d   : > { %v4110_v48 = vsel %vm4107_vm5, %v4109_v42, %v4105_v55  ;;  %vm4119_vm7 = vmor %vm4117_vm6, %vm4118_vm4 }
 0x81e   : > { %v4114_v25 = vsub.f32 1.0, %v4113_v60  ;;  %v4337_v46 = vmul.f32 %v4110_v48, %v3994_v16 }
 0x820   : > { %v4115_v33 = vmul.f32 %v5495_v59, %v4114_v25 }
 0x822   : > { %v4116_v14 = vadd.f32 %v5495_v59, %v4115_v33 }
 0x824   : > { %v4120_v32 = vsel %vm4119_vm7, %v5495_v59, %v4116_v14 }
 0x825   : > { %v4125_v35 = vsel %vm4122_vm8, %v4124_v51, %v4120_v32 }
 0x826   : > { %v4338_v7 = vmul.f32 %v4125_v35, %v3996_v37 }
 0x827   : > { %v3998_v30 = vpop.f32.mrf.mxu3 }
 0x828   : > { %v4353_v44 = vpack.c.bf16 %v4338_v7, %v4337_v46  ;;  %v3999_v54 = vadd.f32 %v7250_v47, %v3998_v30 }
 0x82a   : > { %v5037_v13 = vmul.f32 -1.442695, %v3999_v54  ;;  %5059 = vmatmul.msk.bf16.vlgmr.msrb.gmra.mxu2 %vm710_vm0, %v4353_v44 }
 0x82c   : > { %5496 = vpow2.f32 %v5037_v13 }
 0x82f   : > { %v4000_v20 = vpop.f32.mrf.mxu3 }
 0x830   : > { %v4001_v24 = vadd.f32 %v7250_v47, %v4000_v20 }
 0x832   : > { %v5497_v0 = vpop.eup %5496  ;;  %v5038_v21 = vmul.f32 -1.442695, %v4001_v24 }
 0x833   : > { %v4083_v15 = vadd.f32 1.0, %v5497_v0 }
 0x834   : > { %5498 = vpow2.f32 %v5038_v21 }
 0x835   : > { %5500 = vrcp.f32 %v4083_v15  ;;  %v4138_v38 = vand.u32 2147483648, %v4083_v15  ;;  %vm4132_vm10 = vweird.f32 %v4083_v15  ;;  %v4136_v23 = vand.u32 2147483647, %v4083_v15 }
 0x837   : > { %v4003_v58 = vpop.f32.mrf.mxu3  ;;  %v4139_v3 = vor.u32 1.1754944e-38, %v4138_v38  ;;  %vm4137_vm13 = vcmp.eq.f32.partialorder %v4136_v23, 8.507059e+37 }
 0x838   : > { %v7267_v40 = vadd.f32 %v7250_v47, %v4003_v58 }
 0x83a   : > { %v5499_v29 = vpop.eup %5498  ;;  %v5039_v61 = vmul.f32 -1.442695, %v7267_v40 }
 0x83b   : > { %v5501_v43 = vpop.eup %5500  ;;  %v4084_v27 = vadd.f32 1.0, %v5499_v29 }
 0x83c   : > { %v4128_v6 = vmul.f32 %v5501_v43, %v4083_v15  ;;  %5502 = vpow2.f32 %v5039_v61  ;;  %vm4133_vm9 = vweird.f32 %v5501_v43 }
 0x83d   : > { %5504 = vrcp.f32 %v4084_v27  ;;  %vm7277_vm11 = vmor %vm4132_vm10, %vm4133_vm9  ;;  %v4151_v5 = vand.u32 2147483647, %v4084_v27  ;;  %v4153_v18 = vand.u32 2147483648, %v4084_v27  ;;  %vm4147_vm14 = vweird.f32 %v4084_v27 }
 0x83e   : > { %v4129_v45 = vsub.f32 1.0, %v4128_v6 }
 0x83f   : > { %v4005_v22 = vpop.f32.mrf.mxu3  ;;  %v4154_v19 = vor.u32 1.1754944e-38, %v4153_v18  ;;  %vm4152_vm2 = vcmp.eq.f32.partialorder %v4151_v5, 8.507059e+37 }
 0x840   : > { %v4130_v4 = vmul.f32 %v5501_v43, %v4129_v45  ;;  %v7271_v2 = vadd.f32 %v7250_v47, %v4005_v22 }
 0x842   : > { %v5503_v53 = vpop.eup %5502  ;;  %v5040_v11 = vmul.f32 -1.442695, %v7271_v2  ;;  %v4131_v9 = vadd.f32 %v5501_v43, %v4130_v4 }
 0x843   : > { %v5505_v49 = vpop.eup %5504  ;;  %v7274_v17 = vadd.f32 1.0, %v5503_v53 }
 0x844   : > { %v4143_v28 = vmul.f32 %v5505_v49, %v4084_v27  ;;  %5506 = vpow2.f32 %v5040_v11  ;;  %v4135_v31 = vsel %vm7277_vm11, %v5501_v43, %v4131_v9  ;;  %vm4148_vm12 = vweird.f32 %v5505_v49 }
 0x845   : > { %5508 = vrcp.f32 %v7274_v17  ;;  %v4140_v10 = vsel %vm4137_vm13, %v4139_v3, %v4135_v31  ;;  %vm4149_vm15 = vmor %vm4147_vm14, %vm4148_vm12  ;;  %v4168_v35 = vand.u32 2147483648, %v7274_v17  ;;  %vm4162_vm1 = vweird.f32 %v7274_v17 }
 0x846   : > { %v4144_v41 = vsub.f32 1.0, %v4143_v28  ;;  %v4339_v60 = vmul.f32 %v4140_v10, %v3999_v54  ;;  %v4166_v46 = vand.u32 2147483647, %v7274_v17 }
 0x847   : > { %v4008_v52 = vpop.f32.mrf.mxu3  ;;  %v4169_v21 = vor.u32 1.1754944e-38, %v4168_v35 }
 0x848   : > { %v4145_v8 = vmul.f32 %v5505_v49, %v4144_v41  ;;  %v7284_v37 = vadd.f32 %v7250_v47, %v4008_v52  ;;  %vm4167_vm6 = vcmp.eq.f32.partialorder %v4166_v46, 8.507059e+37 }
 0x84a   : > { %v5507_v39 = vpop.eup %5506  ;;  %v4146_v56 = vadd.f32 %v5505_v49, %v4145_v8  ;;  %v5041_v57 = vmul.f32 -1.442695, %v7284_v37 }
 0x84b   : > { %v5509_v34 = vpop.eup %5508  ;;  %v4086_v63 = vadd.f32 1.0, %v5507_v39 }
 0x84c   : > { %v4150_v36 = vsel %vm4149_vm15, %v5505_v49, %v4146_v56  ;;  %v4158_v59 = vmul.f32 %v5509_v34, %v7274_v17  ;;  %5510 = vpow2.f32 %v5041_v57  ;;  %vm4163_vm3 = vweird.f32 %v5509_v34 }
 0x84d   : > { %v4155_v62 = vsel %vm4152_vm2, %v4154_v19, %v4150_v36  ;;  %5512 = vrcp.f32 %v4086_v63  ;;  %vm7299_vm4 = vmor %vm4162_vm1, %vm4163_vm3  ;;  %v4181_v44 = vand.u32 2147483647, %v4086_v63  ;;  %v4183_v54 = vand.u32 2147483648, %v4086_v63 }
 0x84e   : > { %v4340_v12 = vmul.f32 %v4155_v62, %v4001_v24  ;;  %v4159_v26 = vsub.f32 1.0, %v4158_v59  ;;  %vm4177_vm7 = vweird.f32 %v4086_v63 }
 0x84f   : > { %v4010_v25 = vpop.f32.mrf.mxu3  ;;  %v4184_v27 = vor.u32 1.1754944e-38, %v4183_v54  ;;  %vm4182_vm9 = vcmp.eq.f32.partialorder %v4181_v44, 8.507059e+37 }
 0x850   : > { %v4354_v50 = vpack.c.bf16 %v4340_v12, %v4339_v60  ;;  %v4160_v55 = vmul.f32 %v5509_v34, %v4159_v26  ;;  %v7289_v33 = vadd.f32 %v7250_v47, %v4010_v25 }
 0x852   : > { %v5511_v1 = vpop.eup %5510  ;;  %v5042_v42 = vmul.f32 -1.442695, %v7289_v33  ;;  %5060 = vmatmul.msk.bf16.gmra.mxu2 %vm710_vm0, %v4354_v50  ;;  %v4161_v51 = vadd.f32 %v5509_v34, %v4160_v55 }
 0x853   : > { %v5513_v14 = vpop.eup %5512  ;;  %v7293_v48 = vadd.f32 1.0, %v5511_v1 }
 0x854   : > { %v4173_v32 = vmul.f32 %v5513_v14, %v4086_v63  ;;  %5514 = vpow2.f32 %v5042_v42  ;;  %v4165_v20 = vsel %vm7299_vm4, %v5509_v34, %v4161_v51  ;;  %vm4178_vm5 = vweird.f32 %v5513_v14 }
 0x855   : > { %5516 = vrcp.f32 %v7293_v48  ;;  %v4170_v43 = vsel %vm4167_vm6, %v4169_v21, %v4165_v20  ;;  %vm4179_vm8 = vmor %vm4177_vm7, %vm4178_vm5  ;;  %vm4192_vm11 = vweird.f32 %v7293_v48  ;;  %v4196_v52 = vand.u32 2147483647, %v7293_v48 }
 0x856   : > { %v4174_v7 = vsub.f32 1.0, %v4173_v32  ;;  %v4341_v53 = vmul.f32 %v4170_v43, %v7267_v40 }
 0x857   : > { %v4013_v13 = vpop.f32.mrf.mxu3  ;;  %vm4197_vm14 = vcmp.eq.f32.partialorder %v4196_v52, 8.507059e+37 }
 0x858   : > { %v4175_v24 = vmul.f32 %v5513_v14, %v4174_v7  ;;  %v7306_v0 = vadd.f32 %v7250_v47, %v4013_v13 }
 0x85a   : > { %v5515_v15 = vpop.eup %5514  ;;  %v4176_v58 = vadd.f32 %v5513_v14, %v4175_v24  ;;  %v5043_v29 = vmul.f32 -1.442695, %v7306_v0 }
 0x85b   : > { %v5517_v61 = vpop.eup %5516  ;;  %v4088_v6 = vadd.f32 1.0, %v5515_v15 }
 0x85c   : > { %v4180_v45 = vsel %vm4179_vm8, %v5513_v14, %v4176_v58  ;;  %v4188_v22 = vmul.f32 %v5517_v61, %v7293_v48  ;;  %5518 = vpow2.f32 %v5043_v29  ;;  %vm4193_vm10 = vweird.f32 %v5517_v61 }
 0x85d   : > { %v4185_v4 = vsel %vm4182_vm9, %v4184_v27, %v4180_v45  ;;  %5520 = vrcp.f32 %v4088_v6  ;;  %vm7323_vm12 = vmor %vm4192_vm11, %vm4193_vm10  ;;  %v4211_v3 = vand.u32 2147483647, %v4088_v6  ;;  %v4213_v39 = vand.u32 2147483648, %v4088_v6 }
 0x85e   : > { %v4342_v11 = vmul.f32 %v4185_v4, %v7271_v2  ;;  %v4189_v49 = vsub.f32 1.0, %v4188_v22  ;;  %v4198_v2 = vand.u32 2147483648, %v7293_v48  ;;  %vm4207_vm15 = vweird.f32 %v4088_v6 }
 0x85f   : > { %v4015_v17 = vpop.f32.mrf.mxu3  ;;  %v4214_v12 = vor.u32 1.1754944e-38, %v4213_v39  ;;  %vm4212_vm3 = vcmp.eq.f32.partialorder %v4211_v3, 8.507059e+37 }
 0x860   : > { %v4355_v9 = vpack.c.bf16 %v4342_v11, %v4341_v53  ;;  %v4190_v28 = vmul.f32 %v5517_v61, %v4189_v49  ;;  %v7313_v38 = vadd.f32 %v7250_v47, %v4015_v17  ;;  %v4199_v19 = vor.u32 1.1754944e-38, %v4198_v2 }
 0x862   : > { %v5519_v23 = vpop.eup %5518  ;;  %v5044_v41 = vmul.f32 -1.442695, %v7313_v38  ;;  %5061 = vmatmul.msk.bf16.gmra.mxu2 %vm710_vm0, %v4355_v9  ;;  %v4191_v18 = vadd.f32 %v5517_v61, %v4190_v28 }
 0x863   : > { %v5521_v16 = vpop.eup %5520  ;;  %v7317_v5 = vadd.f32 1.0, %v5519_v23 }
 0x864   : > { %v4203_v40 = vmul.f32 %v5521_v16, %v4088_v6  ;;  %5522 = vpow2.f32 %v5044_v41  ;;  %v4195_v57 = vsel %vm7323_vm12, %v5517_v61, %v4191_v18  ;;  %vm4208_vm13 = vweird.f32 %v5521_v16 }
 0x865   : > { %5524 = vrcp.f32 %v7317_v5  ;;  %v4200_v60 = vsel %vm4197_vm14, %v4199_v19, %v4195_v57  ;;  %vm4209_vm2 = vmor %vm4207_vm15, %vm4208_vm13  ;;  %vm4222_vm4 = vweird.f32 %v7317_v5  ;;  %v4226_v13 = vand.u32 2147483647, %v7317_v5 }
 0x866   : > { %v4204_v31 = vsub.f32 1.0, %v4203_v40  ;;  %v4343_v1 = vmul.f32 %v4200_v60, %v7284_v37 }
 0x867   : > { %v4018_v56 = vpop.f32.mrf.mxu3  ;;  %vm4227_vm7 = vcmp.eq.f32.partialorder %v4226_v13, 8.507059e+37 }
 0x868   : > { %v4205_v34 = vmul.f32 %v5521_v16, %v4204_v31  ;;  %v7330_v10 = vadd.f32 %v7250_v47, %v4018_v56 }
 0x86a   : > { %v5523_v63 = vpop.eup %5522  ;;  %v4206_v36 = vadd.f32 %v5521_v16, %v4205_v34  ;;  %v5045_v59 = vmul.f32 -1.442695, %v7330_v10 }
 0x86b   : > { %v5525_v62 = vpop.eup %5524  ;;  %v4090_v26 = vadd.f32 1.0, %v5523_v63 }
 0x86c   : > { %v4210_v25 = vsel %vm4209_vm2, %v5521_v16, %v4206_v36  ;;  %v4218_v50 = vmul.f32 %v5525_v62, %v7317_v5  ;;  %5526 = vpow2.f32 %v5045_v59  ;;  %vm4223_vm1 = vweird.f32 %v5525_v62 }
 0x86d   : > { %v4215_v55 = vsel %vm4212_vm3, %v4214_v12, %v4210_v25  ;;  %5528 = vrcp.f32 %v4090_v26  ;;  %vm7347_vm5 = vmor %vm4222_vm4, %vm4223_vm1  ;;  %v4241_v21 = vand.u32 2147483647, %v4090_v26  ;;  %v4243_v15 = vand.u32 2147483648, %v4090_v26 }
 0x86e   : > { %v4344_v42 = vmul.f32 %v4215_v55, %v7289_v33  ;;  %v4219_v14 = vsub.f32 1.0, %v4218_v50  ;;  %v4228_v33 = vand.u32 2147483648, %v7317_v5  ;;  %vm4237_vm8 = vweird.f32 %v4090_v26 }
 0x86f   : > { %v4020_v48 = vpop.f32.mrf.mxu3  ;;  %v4244_v11 = vor.u32 1.1754944e-38, %v4243_v15  ;;  %vm4242_vm10 = vcmp.eq.f32.partialorder %v4241_v21, 8.507059e+37 }
 0x870   : > { %v4356_v51 = vpack.c.bf16 %v4344_v42, %v4343_v1  ;;  %v4220_v32 = vmul.f32 %v5525_v62, %v4219_v14  ;;  %v7337_v35 = vadd.f32 %v7250_v47, %v4020_v48  ;;  %v4229_v27 = vor.u32 1.1754944e-38, %v4228_v33 }
 0x872   : > { %v5527_v46 = vpop.eup %5526  ;;  %v5046_v7 = vmul.f32 -1.442695, %v7337_v35  ;;  %5062 = vmatmul.msk.bf16.gmra.mxu2 %vm710_vm0, %v4356_v51  ;;  %v4221_v54 = vadd.f32 %v5525_v62, %v4220_v32 }
 0x873   : > { %v5529_v30 = vpop.eup %5528  ;;  %v7341_v44 = vadd.f32 1.0, %v5527_v46 }
 0x874   : > { %v4233_v37 = vmul.f32 %v5529_v30, %v4090_v26  ;;  %5530 = vpow2.f32 %v5046_v7  ;;  %v4225_v29 = vsel %vm7347_vm5, %v5525_v62, %v4221_v54  ;;  %vm4238_vm6 = vweird.f32 %v5529_v30 }
 0x875   : > { %5532 = vrcp.f32 %v7341_v44  ;;  %v4230_v53 = vsel %vm4227_vm7, %v4229_v27, %v4225_v29  ;;  %vm4239_vm9 = vmor %vm4237_vm8, %vm4238_vm6  ;;  %vm4252_vm12 = vweird.f32 %v7341_v44  ;;  %v4256_v56 = vand.u32 2147483647, %v7341_v44 }
 0x876   : > { %v4234_v20 = vsub.f32 1.0, %v4233_v37  ;;  %v4345_v23 = vmul.f32 %v4230_v53, %v7306_v0 }
 0x877   : > { %v4023_v58 = vpop.f32.mrf.mxu3  ;;  %vm4257_vm15 = vcmp.eq.f32.partialorder %v4256_v56, 8.507059e+37 }
 0x878   : > { %v4235_v61 = vmul.f32 %v5529_v30, %v4234_v20  ;;  %v7354_v43 = vadd.f32 %v7250_v47, %v4023_v58 }
 0x87a   : > { %v5531_v6 = vpop.eup %5530  ;;  %v4236_v45 = vadd.f32 %v5529_v30, %v4235_v61  ;;  %v5047_v22 = vmul.f32 -1.442695, %v7354_v43 }
 0x87b   : > { %v5533_v4 = vpop.eup %5532  ;;  %v4092_v49 = vadd.f32 1.0, %v5531_v6 }
 0x87c   : > { %v4240_v17 = vsel %vm4239_vm9, %v5529_v30, %v4236_v45  ;;  %v4248_v9 = vmul.f32 %v5533_v4, %v7341_v44  ;;  %5534 = vpow2.f32 %v5047_v22  ;;  %vm4253_vm11 = vweird.f32 %v5533_v4 }
 0x87d   : > { %v4245_v28 = vsel %vm4242_vm10, %v4244_v11, %v4240_v17  ;;  %5536 = vrcp.f32 %v4092_v49  ;;  %vm7371_vm13 = vmor %vm4252_vm12, %vm4253_vm11  ;;  %v4271_v19 = vand.u32 2147483647, %v4092_v49  ;;  %v4273_v63 = vand.u32 2147483648, %v4092_v49 }
 0x87e   : > { %v4346_v41 = vmul.f32 %v4245_v28, %v7313_v38  ;;  %v4249_v16 = vsub.f32 1.0, %v4248_v9  ;;  %v4258_v38 = vand.u32 2147483648, %v7341_v44  ;;  %vm4267_vm2 = vweird.f32 %v4092_v49 }
 0x87f   : > { %v4025_v5 = vpop.f32.mrf.mxu3  ;;  %v4274_v42 = vor.u32 1.1754944e-38, %v4273_v63  ;;  %vm4272_vm1 = vcmp.eq.f32.partialorder %v4271_v19, 8.507059e+37 }
 0x880   : > { %v4357_v18 = vpack.c.bf16 %v4346_v41, %v4345_v23  ;;  %v4250_v40 = vmul.f32 %v5533_v4, %v4249_v16  ;;  %v7361_v2 = vadd.f32 %v7250_v47, %v4025_v5  ;;  %v4259_v12 = vor.u32 1.1754944e-38, %v4258_v38 }
 0x882   : > { %v5535_v52 = vpop.eup %5534  ;;  %v5048_v31 = vmul.f32 -1.442695, %v7361_v2  ;;  %5063 = vmatmul.msk.bf16.gmra.mxu2 %vm710_vm0, %v4357_v18  ;;  %v4251_v39 = vadd.f32 %v5533_v4, %v4250_v40 }
 0x883   : > { %v5537_v8 = vpop.eup %5536  ;;  %v7365_v3 = vadd.f32 1.0, %v5535_v52 }
 0x884   : > { %v4263_v0 = vmul.f32 %v5537_v8, %v4092_v49  ;;  %5538 = vpow2.f32 %v5048_v31  ;;  %v4255_v59 = vsel %vm7371_vm13, %v5533_v4, %v4251_v39  ;;  %vm4268_vm14 = vweird.f32 %v5537_v8 }
 0x885   : > { %5540 = vrcp.f32 %v7365_v3  ;;  %v4260_v1 = vsel %vm4257_vm15, %v4259_v12, %v4255_v59  ;;  %vm4269_vm3 = vmor %vm4267_vm2, %vm4268_vm14  ;;  %vm4282_vm5 = vweird.f32 %v7365_v3 }
 0x886   : > { %v4264_v57 = vsub.f32 1.0, %v4263_v0  ;;  %v4347_v46 = vmul.f32 %v4260_v1, %v7330_v10  ;;  %v4288_v10 = vand.u32 2147483648, %v7365_v3 }
 0x887   : > { %v4028_v36 = vpop.f32.mrf.mxu3 }
 0x888   : > { %v4265_v62 = vmul.f32 %v5537_v8, %v4264_v57  ;;  %v7378_v60 = vadd.f32 %v7250_v47, %v4028_v36  ;;  %v4289_v45 = vor.u32 1.1754944e-38, %v4288_v10 }
 0x88a   : > { %v5539_v26 = vpop.eup %5538  ;;  %v4266_v25 = vadd.f32 %v5537_v8, %v4265_v62  ;;  %v5049_v50 = vmul.f32 -1.442695, %v7378_v60 }
 0x88b   : > { %v5541_v55 = vpop.eup %5540  ;;  %v4094_v14 = vadd.f32 1.0, %v5539_v26 }
 0x88c   : > { %v4270_v48 = vsel %vm4269_vm3, %v5537_v8, %v4266_v25  ;;  %v4278_v51 = vmul.f32 %v5541_v55, %v7365_v3  ;;  %5542 = vpow2.f32 %v5049_v50  ;;  %vm4283_vm4 = vweird.f32 %v5541_v55 }
 0x88d   : > { %v4275_v32 = vsel %vm4272_vm1, %v4274_v42, %v4270_v48  ;;  %5544 = vrcp.f32 %v4094_v14  ;;  %vm4284_vm6 = vmor %vm4282_vm5, %vm4283_vm4  ;;  %v4303_v29 = vand.u32 2147483648, %v4094_v14  ;;  %v4301_v6 = vand.u32 2147483647, %v4094_v14 }
 0x88e   : > { %v4348_v7 = vmul.f32 %v4275_v32, %v7337_v35  ;;  %v4279_v30 = vsub.f32 1.0, %v4278_v51  ;;  %v4286_v35 = vand.u32 2147483647, %v7365_v3  ;;  %vm4297_vm9 = vweird.f32 %v4094_v14 }
 0x88f   : > { %v4030_v44 = vpop.f32.mrf.mxu3  ;;  %v4304_v49 = vor.u32 1.1754944e-38, %v4303_v29  ;;  %vm4302_vm11 = vcmp.eq.f32.partialorder %v4301_v6, 8.507059e+37  ;;  %vm4450_vm4 = vcmask 64512  }
 0x890   : > { %v4358_v54 = vpack.c.bf16 %v4348_v7, %v4347_v46  ;;  %v4280_v37 = vmul.f32 %v5541_v55, %v4279_v30  ;;  %v7385_v33 = vadd.f32 %v7250_v47, %v4030_v44  ;;  %vm4287_vm8 = vcmp.eq.f32.partialorder %v4286_v35, 8.507059e+37 }
 0x892   : > { %v5543_v13 = vpop.eup %5542  ;;  %v5050_v20 = vmul.f32 -1.442695, %v7385_v33  ;;  %5064 = vmatmul.msk.bf16.gmra.mxu2 %vm710_vm0, %v4358_v54  ;;  %v4281_v15 = vadd.f32 %v5541_v55, %v4280_v37 }
 0x893   : > { %v5545_v24 = vpop.eup %5544  ;;  %v4095_v21 = vadd.f32 1.0, %v5543_v13 }
 0x894   : > { %v4293_v58 = vmul.f32 %v5545_v24, %v4094_v14  ;;  %5546 = vpow2.f32 %v5050_v20  ;;  %v4285_v61 = vsel %vm4284_vm6, %v5541_v55, %v4281_v15  ;;  %vm4298_vm7 = vweird.f32 %v5545_v24 }
 0x895   : > { %5548 = vrcp.f32 %v4095_v21  ;;  %v4290_v11 = vsel %vm4287_vm8, %v4289_v45, %v4285_v61  ;;  %vm4299_vm10 = vmor %vm4297_vm9, %vm4298_vm7  ;;  %v4318_v3 = vand.u32 2147483648, %v4095_v21  ;;  %vm4312_vm13 = vweird.f32 %v4095_v21 }
 0x896   : > { %v4294_v47 = vsub.f32 1.0, %v4293_v58  ;;  %v4349_v41 = vmul.f32 %v4290_v11, %v7354_v43  ;;  %v4316_v39 = vand.u32 2147483647, %v4095_v21 }
 0x897   : > { %v4319_v57 = vor.u32 1.1754944e-38, %v4318_v3 }
 0x898   : > { %v4295_v27 = vmul.f32 %v5545_v24, %v4294_v47  ;;  %vm4317_vm2 = vcmp.eq.f32.partialorder %v4316_v39, 8.507059e+37 }
 0x89a   : > { %v5547_v22 = vpop.eup %5546  ;;  %v4296_v4 = vadd.f32 %v5545_v24, %v4295_v27 }
 0x89b   : > { %v5549_v53 = vpop.eup %5548  ;;  %v4096_v17 = vadd.f32 1.0, %v5547_v22 }
 0x89c   : > { %v4300_v9 = vsel %vm4299_vm10, %v5545_v24, %v4296_v4  ;;  %v4308_v28 = vmul.f32 %v5549_v53, %v4095_v21  ;;  %vm4313_vm12 = vweird.f32 %v5549_v53 }
 0x89d   : > { %v4305_v23 = vsel %vm4302_vm11, %v4304_v49, %v4300_v9  ;;  %5550 = vrcp.f32 %v4096_v17  ;;  %vm4314_vm14 = vmor %vm4312_vm13, %vm4313_vm12  ;;  %v4333_v38 = vand.u32 2147483648, %v4096_v17  ;;  %vm4327_vm3 = vweird.f32 %v4096_v17 }
 0x89e   : > { %v4350_v16 = vmul.f32 %v4305_v23, %v7361_v2  ;;  %v4309_v5 = vsub.f32 1.0, %v4308_v28  ;;  %v4331_v2 = vand.u32 2147483647, %v4096_v17 }
 0x89f   : > { %v4334_v63 = vor.u32 1.1754944e-38, %v4333_v38 }
 0x8a0   : > { %v4359_v18 = vpack.c.bf16 %v4350_v16, %v4349_v41  ;;  %v4310_v40 = vmul.f32 %v5549_v53, %v4309_v5  ;;  %vm4332_vm5 = vcmp.eq.f32.partialorder %v4331_v2, 8.507059e+37 }
 0x8a2   : > { %5065 = vmatmul.msk.bf16.gmra.mxu2 %vm710_vm0, %v4359_v18  ;;  %v4311_v31 = vadd.f32 %v5549_v53, %v4310_v40 }
 0x8a3   : > { %v5551_v52 = vpop.eup %5550 }
 0x8a4   : > { %v4323_v8 = vmul.f32 %v5551_v52, %v4096_v17  ;;  %v4315_v43 = vsel %vm4314_vm14, %v5549_v53, %v4311_v31  ;;  %vm4328_vm15 = vweird.f32 %v5551_v52 }
 0x8a5   : > { %v4320_v19 = vsel %vm4317_vm2, %v4319_v57, %v4315_v43  ;;  %vm4329_vm1 = vmor %vm4327_vm3, %vm4328_vm15 }
 0x8a6   : > { %v4324_v0 = vsub.f32 1.0, %v4323_v8  ;;  %v4351_v12 = vmul.f32 %v4320_v19, %v7378_v60 }
 0x8a8   : > { %v4325_v56 = vmul.f32 %v5551_v52, %v4324_v0 }
 0x8aa   : > { %v4326_v34 = vadd.f32 %v5551_v52, %v4325_v56 }
 0x8ac   : > { %v4330_v36 = vsel %vm4329_vm1, %v5551_v52, %v4326_v34 }
 0x8ad   : > { %v4335_v59 = vsel %vm4332_vm5, %v4334_v63, %v4330_v36  ;;  %v4410_v62 = vpop.f32.mrf.mxu2 }
 0x8ae   : > { %v4352_v26 = vmul.f32 %v4335_v59, %v7385_v33  ;;  %4451 = vst.msk [vmem:[%s7399_s16] sm:$0xff] %vm4450_vm4, %v4410_v62 }
 0x8b0   : > { %v4360_v25 = vpack.c.bf16 %v4352_v26, %v4351_v12 }
 0x8b2   : > { %5066 = vmatmul.msk.bf16.gmra.mxu2 %vm710_vm0, %v4360_v25 }
 0x8b5   : > { %v4412_v50 = vpop.f32.mrf.mxu2 }
 0x8b6   : > { %4452 = vst.msk [vmem:[%s7399_s16 + $0x8] sm:$0xff] %vm4450_vm4, %v4412_v50 }
 0x8d5   : > { %v4415_v55 = vpop.f32.mrf.mxu2 }
 0x8d6   : > { %4453 = vst.msk [vmem:[%s7399_s16 + $0x10] sm:$0xff] %vm4450_vm4, %v4415_v55 }
 0x8dd   : > { %v4417_v1 = vpop.f32.mrf.mxu2 }
 0x8de   : > { %4454 = vst.msk [vmem:[%s7399_s16 + $0x18] sm:$0xff] %vm4450_vm4, %v4417_v1 }
 0x8e5   : > { %v4420_v60 = vpop.f32.mrf.mxu2 }
 0x8e6   : > { %4455 = vst.msk [vmem:[%s7399_s16 + $0x20] sm:$0xff] %vm4450_vm4, %v4420_v60 }
 0x8ed   : > { %v4422_v42 = vpop.f32.mrf.mxu2 }
 0x8ee   : > { %4456 = vst.msk [vmem:[%s7399_s16 + $0x28] sm:$0xff] %vm4450_vm4, %v4422_v42 }
 0x8f5   : > { %v4425_v14 = vpop.f32.mrf.mxu2 }
 0x8f6   : > { %4457 = vst.msk [vmem:[%s7399_s16 + $0x30] sm:$0xff] %vm4450_vm4, %v4425_v14 }
 0x8fd   : > { %v4427_v48 = vpop.f32.mrf.mxu2 }
 0x8fe   : > { %4458 = vst.msk [vmem:[%s7399_s16 + $0x38] sm:$0xff] %vm4450_vm4, %v4427_v48 }
 0x905   : > { %v4430_v51 = vpop.f32.mrf.mxu2 }
 0x906   : > { %4459 = vst.msk [vmem:[%s7399_s16 + $0x40] sm:$0xff] %vm4450_vm4, %v4430_v51 }
 0x90d   : > { %v4432_v32 = vpop.f32.mrf.mxu2 }
 0x90e   : > { %4460 = vst.msk [vmem:[%s7399_s16 + $0x48] sm:$0xff] %vm4450_vm4, %v4432_v32 }
 0x915   : > { %v4435_v46 = vpop.f32.mrf.mxu2 }
 0x916   : > { %4461 = vst.msk [vmem:[%s7399_s16 + $0x50] sm:$0xff] %vm4450_vm4, %v4435_v46 }
 0x91d   : > { %v4437_v7 = vpop.f32.mrf.mxu2 }
 0x91e   : > { %4462 = vst.msk [vmem:[%s7399_s16 + $0x58] sm:$0xff] %vm4450_vm4, %v4437_v7 }
 0x925   : > { %v4440_v30 = vpop.f32.mrf.mxu2 }
 0x926   : > { %4463 = vst.msk [vmem:[%s7399_s16 + $0x60] sm:$0xff] %vm4450_vm4, %v4440_v30 }
 0x92d   : > { %v4442_v44 = vpop.f32.mrf.mxu2 }
 0x92e   : > { %4464 = vst.msk [vmem:[%s7399_s16 + $0x68] sm:$0xff] %vm4450_vm4, %v4442_v44 }
 0x935   : > { %v4445_v54 = vpop.f32.mrf.mxu2 }
 0x936   : > { %4465 = vst.msk [vmem:[%s7399_s16 + $0x70] sm:$0xff] %vm4450_vm4, %v4445_v54 }
 0x93d   : > { %v4447_v37 = vpop.f32.mrf.mxu2 }
 0x93e   : > { %4466 = vst.msk [vmem:[%s7399_s16 + $0x78] sm:$0xff] %vm4450_vm4, %v4447_v37 }
 0x93f PF: > { %s18_s27 = sadd.s32 1, %s5559_s27  }
 0x940   : > { %p15_p6 = scmp.ge.s32.totalorder %s18_s27, 4  }
 0x942   :  { %17 = sbr.rel (!%p15_p6) target bundleno = 1 (0x1), region = 92 }

</bundles_post_ra>
